<compile_context>
chip_gen: v6e
topology: v6e:2x2x1
jax: 0.10.0
libtpu: 0.0.40
codegen_flags: <defaults>
</compile_context>

<pallas_src>
import jax
import jax.numpy as jnp
from jax.experimental import pallas as pl
from jax.experimental.pallas import tpu as pltpu

BN_EPS = 1e-5

# Geometry implied by fc1 = Linear(6*16*24, 128): x is (N, 2, 32, 97).
C_IN, H_IN, W_IN = 2, 32, 97
C1 = 4                       # conv1: Conv2d(2, 4, (1, 3), stride=(1, 2))
C2, H2, W2 = 6, 16, 24       # conv2: Conv2d(4, 6, (2, 2), stride=(2, 2)) output
HW2 = H2 * W2                # 384 lanes per (channel, phase) block
N_OFF = 5                    # x column offset 4*w2 + off, off = 2*dw + kw in [0,5)
P_BLOCKS = C_IN * 2 * N_OFF  # 20 patch blocks (ci, dh, off)
FC1_IN = C2 * HW2            # 2304
FC1_OUT = 128

# Offsets into the packed SMEM scalar table.
IDX_W1 = 0                             # 24: w1[c1, ci, kw]
IDX_W2 = IDX_W1 + C1 * C_IN * 3        # 96: w2[c2, c1, dh, dw]
IDX_G1 = IDX_W2 + C2 * C1 * 4          # 4
IDX_BE1 = IDX_G1 + C1                  # 4
IDX_G2 = IDX_BE1 + C1                  # 6
IDX_BE2 = IDX_G2 + C2                  # 6
IDX_BFC2 = IDX_BE2 + C2                # 1
SCAL_LEN = IDX_BFC2 + 1                # 141


# ------------------------------ fused kernel -------------------------------- #

def _make_fused_kernel(n_batch: int):
    cnt1 = float(n_batch * 4 * HW2)    # elements per conv1 channel (N*32*48)
    cnt2 = float(n_batch * HW2)        # elements per conv2 channel (N*16*24)

    def kernel(p_ref, scal_ref, vtab_ref, wfc1_hbm, o_ref,
               act_scr, wfc1_vmem, sem):
        # Stream the big fc1 weight HBM->VMEM; it overlaps all conv/BN work.
        wcp = pltpu.make_async_copy(wfc1_hbm, wfc1_vmem, sem)
        wcp.start()

        def pblk(ci, dh, off):
            b = (ci * 2 + dh) * N_OFF + off
            return p_ref[:, b * HW2:(b + 1) * HW2]             # (N, 384)

        def w1(c1, ci, kw):
            return scal_ref[IDX_W1 + (c1 * C_IN + ci) * 3 + kw]

        def w2(c2, c1, dh, dw):
            return scal_ref[IDX_W2 + ((c2 * C1 + c1) * 2 + dh) * 2 + dw]

        # ---- conv1 as unrolled scalar*block VPU FMAs -------------------------
        # Block (c1, ph=dh*2+dw) holds conv1[n, c1, 2*h2+dh, 2*w2+dw] at lane
        # h2*24+w2 (batch on sublanes).  Conv biases dropped: training-mode BN
        # subtracts the batch mean, so a per-channel constant cancels exactly.
        for c1 in range(C1):
            for dh in range(2):
                for dw in range(2):
                    acc = None
                    for ci in range(C_IN):
                        for kw in range(3):
                            t = w1(c1, ci, kw) * pblk(ci, dh, 2 * dw + kw)
                            acc = t if acc is None else acc + t
                    blk = c1 * 4 + dh * 2 + dw
                    act_scr[:, blk * HW2:(blk + 1) * HW2] = acc

        # ---- BN1 (two-pass batch stats, biased var) + ReLU, in place ---------
        for c1 in range(C1):
            lo, hi = c1 * 4 * HW2, (c1 + 1) * 4 * HW2
            zc = act_scr[:, lo:hi]                             # (N, 1536)
            m = jnp.sum(zc) * (1.0 / cnt1)
            d = zc - m
            v = jnp.sum(d * d) * (1.0 / cnt1)
            s = scal_ref[IDX_G1 + c1] * jax.lax.rsqrt(v + BN_EPS)
            act_scr[:, lo:hi] = jnp.maximum(d * s + scal_ref[IDX_BE1 + c1], 0.0)

        # ---- conv2 (stride == kernel == 2x2 -> taps are the 16 phase blocks) --
        acc2 = [None] * C2
        for c1 in range(C1):
            for dh in range(2):
                for dw in range(2):
                    blk = c1 * 4 + dh * 2 + dw
                    yb = act_scr[:, blk * HW2:(blk + 1) * HW2]
                    for c2 in range(C2):
                        t = w2(c2, c1, dh, dw) * yb
                        acc2[c2] = t if acc2[c2] is None else acc2[c2] + t

        # ---- BN2 + ReLU per channel; concat IS torch's out.view(N, -1) -------
        y2_blocks = []
        for c2 in range(C2):
            z = acc2[c2]
            m = jnp.sum(z) * (1.0 / cnt2)
            d = z - m
            v = jnp.sum(d * d) * (1.0 / cnt2)
            s = scal_ref[IDX_G2 + c2] * jax.lax.rsqrt(v + BN_EPS)
            y2_blocks.append(jnp.maximum(d * s + scal_ref[IDX_BE2 + c2], 0.0))
        flat = jnp.concatenate(y2_blocks, axis=1)              # (N, 2304), free

        b_fc2 = scal_ref[IDX_BFC2]                             # SMEM read pre-wait

        # ---- fc1 (MXU, bf16 weight streamed above) -> ReLU -> fc2 ------------
        wcp.wait()
        h = jnp.dot(flat.astype(jnp.bfloat16), wfc1_vmem[...],
                    preferred_element_type=jnp.float32)
        h = jnp.maximum(h + vtab_ref[0:1, :], 0.0)             # (N, 128)
        o_ref[...] = jnp.sum(h * vtab_ref[1:2, :], axis=1, keepdims=True) + b_fc2

    return kernel


# ------------------------------ wrapper glue --------------------------------- #

def _prep_patches(x):
    """(N,2,32,97) -> (N, 20*384) conv1 patch blocks via one fused XLA transpose.

    Lane index = ((ci*2 + dh)*5 + off)*384 + h2*24 + w2 with value
    x[n, ci, 2*h2 + dh, 4*w2 + off], off = 2*dw + kw in [0, 5).
    """
    n = x.shape[0]
    a = x[:, :, :, : 4 * W2].reshape(n, C_IN, H2, 2, W2, 4)    # off 0..3
    b = x[:, :, :, 4::4].reshape(n, C_IN, H2, 2, W2, 1)        # off 4
    p = jnp.concatenate([a, b], axis=-1)                       # [n,ci,h2,dh,w2,off]
    p = p.transpose(0, 1, 3, 5, 2, 4)                          # [n,ci,dh,off,h2,w2]
    return p.reshape(n, P_BLOCKS * HW2)


@jax.jit
def critic_forward(prep, x):
    assert x.shape[1:] == (C_IN, H_IN, W_IN), x.shape
    n = x.shape[0]
    # TODO(synk): for large N, tile the batch on a grid (two-sweep BN stats,
    # per-channel sum/sumsq accumulated across tiles), mark it "parallel" for
    # v7x's two TensorCores, and re-derive VMEM budget (v7x: 64 MiB physical).
    patches = _prep_patches(x)
    return pl.pallas_call(
        _make_fused_kernel(n),
        grid=(1,),
        in_specs=[
            pl.BlockSpec((n, P_BLOCKS * HW2), lambda i: (0, 0)),      # patches
            pl.BlockSpec(memory_space=pltpu.MemorySpace.SMEM),        # scalar table
            pl.BlockSpec((2, FC1_OUT), lambda i: (0, 0)),             # bfc1 / wfc2
            pl.BlockSpec(memory_space=pl.ANY),                        # wfc1 in HBM
        ],
        out_specs=pl.BlockSpec((n, 1), lambda i: (0, 0)),
        out_shape=jax.ShapeDtypeStruct((n, 1), jnp.float32),
        scratch_shapes=[
            pltpu.VMEM((n, 16 * HW2), jnp.float32),       # conv1/y1 activations
            pltpu.VMEM((FC1_IN, FC1_OUT), jnp.bfloat16),  # fc1 weight landing buf
            pltpu.SemaphoreType.DMA(()),
        ],
        compiler_params=pltpu.CompilerParams(
            dimension_semantics=("arbitrary",),
            vmem_limit_bytes=32 * 1024 * 1024,
        ),
    )(patches, prep["scal"], prep["vtab"], prep["wfc1"])


# ------------------------------ parameters ----------------------------------- #

def init_params(key):
    k = jax.random.split(key, 6)
    p = {}
    # Conv2d(2,4,(1,3)) — kaiming_normal_, mode='fan_out': std = sqrt(2/(4*1*3))
    p["w_conv1"] = jax.random.normal(k[0], (4, 2, 1, 3), jnp.float32) * jnp.sqrt(2.0 / 12.0)
    p["b_conv1"] = jax.random.uniform(k[1], (4,), jnp.float32, -1.0, 1.0) / jnp.sqrt(2 * 1 * 3)
    # Conv2d(4,6,(2,2)) — std = sqrt(2/(6*2*2))
    p["w_conv2"] = jax.random.normal(k[2], (6, 4, 2, 2), jnp.float32) * jnp.sqrt(2.0 / 24.0)
    p["b_conv2"] = jax.random.uniform(k[3], (6,), jnp.float32, -1.0, 1.0) / jnp.sqrt(4 * 2 * 2)
    # Linear — normal(0, 0.01), bias 0
    p["w_fc1"] = jax.random.normal(k[4], (128, FC1_IN), jnp.float32) * 0.01
    p["b_fc1"] = jnp.zeros((128,), jnp.float32)
    p["w_fc2"] = jax.random.normal(k[5], (1, 128), jnp.float32) * 0.01
    p["b_fc2"] = jnp.zeros((1,), jnp.float32)
    # BatchNorm affine params at init
    p["bn1_g"] = jnp.ones((4,), jnp.float32)
    p["bn1_b"] = jnp.zeros((4,), jnp.float32)
    p["bn2_g"] = jnp.ones((6,), jnp.float32)
    p["bn2_b"] = jnp.zeros((6,), jnp.float32)
    return p


def prepare_params(p):
    """One-time layout prep: pack the tiny params into one SMEM scalar table and
    one (2,128) VMEM table; transpose + bf16-cast the fc1 weight (MXU operand).

    Conv biases are intentionally not packed: training-mode BN subtracts the
    batch mean, so a per-channel constant added by the conv bias cancels exactly.
    """
    scal = jnp.concatenate([
        p["w_conv1"].reshape(-1),        # 24, torch (c1, ci, 1, kw) order
        p["w_conv2"].reshape(-1),        # 96, torch (c2, c1, dh, dw) order
        p["bn1_g"], p["bn1_b"],
        p["bn2_g"], p["bn2_b"],
        p["b_fc2"],
    ]).astype(jnp.float32)
    assert scal.shape == (SCAL_LEN,), scal.shape
    vtab = jnp.stack([p["b_fc1"], p["w_fc2"].reshape(-1)], axis=0).astype(jnp.float32)
    # TODO(synk): int8 (v5e/v6e) / fp8 (v7x) wfc1 with per-output-channel scales.
    return {
        "scal": scal,                                   # (141,)  SMEM
        "vtab": vtab,                                   # (2,128) VMEM
        "wfc1": p["w_fc1"].T.astype(jnp.bfloat16),      # (2304,128) streamed manually
    }


# ------------------------------ pure-JAX reference --------------------------- #

def _critic_reference(p, x):
    def bn(y, g, b):
        m = jnp.mean(y, axis=(0, 2, 3), keepdims=True)
        v = jnp.mean(jnp.square(y - m), axis=(0, 2, 3), keepdims=True)
        return (y - m) * jax.lax.rsqrt(v + BN_EPS) * g.reshape(1, -1, 1, 1) \
            + b.reshape(1, -1, 1, 1)

    dn = ("NCHW", "OIHW", "NCHW")
    y = jax.lax.conv_general_dilated(x, p["w_conv1"], (1, 2), "VALID",
                                     dimension_numbers=dn)
    y = jnp.maximum(bn(y + p["b_conv1"].reshape(1, -1, 1, 1), p["bn1_g"], p["bn1_b"]), 0.0)
    y = jax.lax.conv_general_dilated(y, p["w_conv2"], (2, 2), "VALID",
                                     dimension_numbers=dn)
    y = jnp.maximum(bn(y + p["b_conv2"].reshape(1, -1, 1, 1), p["bn2_g"], p["bn2_b"]), 0.0)
    flat = y.reshape(x.shape[0], -1)                     # torch view(N,-1): (C,H,W) order
    h = jnp.maximum(flat @ p["w_fc1"].T + p["b_fc1"], 0.0)
    return h @ p["w_fc2"].T + p["b_fc2"]


# ---------------------------------- main ------------------------------------- #

if __name__ == "__main__":
    key = jax.random.PRNGKey(0)
    pkey, xkey = jax.random.split(key)
    params = init_params(pkey)
    prep = prepare_params(params)

    # Input shape implied by fc1 = Linear(6*16*24, 128): (N, 2, 32, 97)
    x = jax.random.normal(xkey, (2, C_IN, H_IN, W_IN), jnp.float32)

    out = critic_forward(prep, x)
    jax.block_until_ready(out)
    assert out.shape == (2, 1), out.shape

    # Correctness vs pure-JAX reference (loose tol: fc1 operands are bf16 on MXU).
    ref = _critic_reference(params, x)
    err = float(jnp.max(jnp.abs(out - ref)))
    scale = float(jnp.max(jnp.abs(ref))) + 1e-6
    assert err <= 2e-3 + 5e-2 * scale, (err, scale)

    print("KERNEL_OK")
</pallas_src>

<mosaic_0001>
module attributes {stable_mosaic.version = 11 : i64} {
  func.func @kernel(%arg0: i32, %arg1: memref<2x7680xf32, #tpu.memory_space<vmem>>, %arg2: memref<141xf32, #tpu.memory_space<smem>>, %arg3: memref<2x128xf32, #tpu.memory_space<vmem>>, %arg4: memref<2304x128xbf16, #tpu.memory_space<any>>, %arg5: memref<2x1xf32, #tpu.memory_space<vmem>>, %arg6: memref<2x6144xf32, #tpu.memory_space<vmem>>, %arg7: memref<2304x128xbf16, #tpu.memory_space<vmem>>, %arg8: memref<!tpu.dma_semaphore, #tpu.memory_space<semaphore_mem>>) attributes {dimension_semantics = [#tpu.dimension_semantics<arbitrary>], iteration_bounds = array<i64: 1>, scalar_prefetch = 0 : i64, scratch_operands = 3 : i64, tpu.core_type = #tpu.core_type<tc>, window_params = [{pipeline_mode = #tpu.pipeline_mode<synchronous>, transform_indices = @transform_0, window_bounds = array<i64: 2, 7680>}, {transform_indices = @transform_1, window_bounds = array<i64: 141>}, {pipeline_mode = #tpu.pipeline_mode<synchronous>, transform_indices = @transform_2, window_bounds = array<i64: 2, 128>}, {}, {pipeline_mode = #tpu.pipeline_mode<synchronous>, transform_indices = @transform_4, window_bounds = array<i64: 2, 1>}]} {
    tpu.enqueue_dma source(%arg4 : memref<2304x128xbf16, #tpu.memory_space<any>>) target(%arg7 : memref<2304x128xbf16, #tpu.memory_space<vmem>>) target_semaphore(%arg8 : memref<!tpu.dma_semaphore, #tpu.memory_space<semaphore_mem>>)
    %c0 = arith.constant 0 : index
    %0 = memref.load %arg2[%c0] : memref<141xf32, #tpu.memory_space<smem>>
    %c0_0 = arith.constant 0 : index
    %c0_1 = arith.constant 0 : index
    %1 = vector.load %arg1[%c0_0, %c0_1] : memref<2x7680xf32, #tpu.memory_space<vmem>>, vector<2x384xf32>
    %2 = vector.broadcast %0 : f32 to vector<2x384xf32>
    %3 = arith.mulf %2, %1 : vector<2x384xf32>
    %c1 = arith.constant 1 : index
    %4 = memref.load %arg2[%c1] : memref<141xf32, #tpu.memory_space<smem>>
    %c0_2 = arith.constant 0 : index
    %c384 = arith.constant 384 : index
    %5 = vector.load %arg1[%c0_2, %c384] : memref<2x7680xf32, #tpu.memory_space<vmem>>, vector<2x384xf32>
    %6 = vector.broadcast %4 : f32 to vector<2x384xf32>
    %7 = arith.mulf %6, %5 : vector<2x384xf32>
    %8 = arith.addf %3, %7 : vector<2x384xf32>
    %c2 = arith.constant 2 : index
    %9 = memref.load %arg2[%c2] : memref<141xf32, #tpu.memory_space<smem>>
    %c0_3 = arith.constant 0 : index
    %c768 = arith.constant 768 : index
    %10 = vector.load %arg1[%c0_3, %c768] : memref<2x7680xf32, #tpu.memory_space<vmem>>, vector<2x384xf32>
    %11 = vector.broadcast %9 : f32 to vector<2x384xf32>
    %12 = arith.mulf %11, %10 : vector<2x384xf32>
    %13 = arith.addf %8, %12 : vector<2x384xf32>
    %c3 = arith.constant 3 : index
    %14 = memref.load %arg2[%c3] : memref<141xf32, #tpu.memory_space<smem>>
    %c0_4 = arith.constant 0 : index
    %c3840 = arith.constant 3840 : index
    %15 = vector.load %arg1[%c0_4, %c3840] : memref<2x7680xf32, #tpu.memory_space<vmem>>, vector<2x384xf32>
    %16 = vector.broadcast %14 : f32 to vector<2x384xf32>
    %17 = arith.mulf %16, %15 : vector<2x384xf32>
    %18 = arith.addf %13, %17 : vector<2x384xf32>
    %c4 = arith.constant 4 : index
    %19 = memref.load %arg2[%c4] : memref<141xf32, #tpu.memory_space<smem>>
    %c0_5 = arith.constant 0 : index
    %c4224 = arith.constant 4224 : index
    %20 = vector.load %arg1[%c0_5, %c4224] : memref<2x7680xf32, #tpu.memory_space<vmem>>, vector<2x384xf32>
    %21 = vector.broadcast %19 : f32 to vector<2x384xf32>
    %22 = arith.mulf %21, %20 : vector<2x384xf32>
    %23 = arith.addf %18, %22 : vector<2x384xf32>
    %c5 = arith.constant 5 : index
    %24 = memref.load %arg2[%c5] : memref<141xf32, #tpu.memory_space<smem>>
    %c0_6 = arith.constant 0 : index
    %c4608 = arith.constant 4608 : index
    %25 = vector.load %arg1[%c0_6, %c4608] : memref<2x7680xf32, #tpu.memory_space<vmem>>, vector<2x384xf32>
    %26 = vector.broadcast %24 : f32 to vector<2x384xf32>
    %27 = arith.mulf %26, %25 : vector<2x384xf32>
    %28 = arith.addf %23, %27 : vector<2x384xf32>
    %c0_7 = arith.constant 0 : index
    %c0_8 = arith.constant 0 : index
    %29 = vector.load %arg6[%c0_7, %c0_8] : memref<2x6144xf32, #tpu.memory_space<vmem>>, vector<2x384xf32>
    tpu.vector_store %arg6[%c0_7, %c0_8], %28 {strides = array<i32>} : memref<2x6144xf32, #tpu.memory_space<vmem>>, vector<2x384xf32>,
    %c0_9 = arith.constant 0 : index
    %30 = memref.load %arg2[%c0_9] : memref<141xf32, #tpu.memory_space<smem>>
    %c0_10 = arith.constant 0 : index
    %c768_11 = arith.constant 768 : index
    %31 = vector.load %arg1[%c0_10, %c768_11] : memref<2x7680xf32, #tpu.memory_space<vmem>>, vector<2x384xf32>
    %32 = vector.broadcast %30 : f32 to vector<2x384xf32>
    %33 = arith.mulf %32, %31 : vector<2x384xf32>
    %c1_12 = arith.constant 1 : index
    %34 = memref.load %arg2[%c1_12] : memref<141xf32, #tpu.memory_space<smem>>
    %c0_13 = arith.constant 0 : index
    %c1152 = arith.constant 1152 : index
    %35 = vector.load %arg1[%c0_13, %c1152] : memref<2x7680xf32, #tpu.memory_space<vmem>>, vector<2x384xf32>
    %36 = vector.broadcast %34 : f32 to vector<2x384xf32>
    %37 = arith.mulf %36, %35 : vector<2x384xf32>
    %38 = arith.addf %33, %37 : vector<2x384xf32>
    %c2_14 = arith.constant 2 : index
    %39 = memref.load %arg2[%c2_14] : memref<141xf32, #tpu.memory_space<smem>>
    %c0_15 = arith.constant 0 : index
    %c1536 = arith.constant 1536 : index
    %40 = vector.load %arg1[%c0_15, %c1536] : memref<2x7680xf32, #tpu.memory_space<vmem>>, vector<2x384xf32>
    %41 = vector.broadcast %39 : f32 to vector<2x384xf32>
    %42 = arith.mulf %41, %40 : vector<2x384xf32>
    %43 = arith.addf %38, %42 : vector<2x384xf32>
    %c3_16 = arith.constant 3 : index
    %44 = memref.load %arg2[%c3_16] : memref<141xf32, #tpu.memory_space<smem>>
    %c0_17 = arith.constant 0 : index
    %c4608_18 = arith.constant 4608 : index
    %45 = vector.load %arg1[%c0_17, %c4608_18] : memref<2x7680xf32, #tpu.memory_space<vmem>>, vector<2x384xf32>
    %46 = vector.broadcast %44 : f32 to vector<2x384xf32>
    %47 = arith.mulf %46, %45 : vector<2x384xf32>
    %48 = arith.addf %43, %47 : vector<2x384xf32>
    %c4_19 = arith.constant 4 : index
    %49 = memref.load %arg2[%c4_19] : memref<141xf32, #tpu.memory_space<smem>>
    %c0_20 = arith.constant 0 : index
    %c4992 = arith.constant 4992 : index
    %50 = vector.load %arg1[%c0_20, %c4992] : memref<2x7680xf32, #tpu.memory_space<vmem>>, vector<2x384xf32>
    %51 = vector.broadcast %49 : f32 to vector<2x384xf32>
    %52 = arith.mulf %51, %50 : vector<2x384xf32>
    %53 = arith.addf %48, %52 : vector<2x384xf32>
    %c5_21 = arith.constant 5 : index
    %54 = memref.load %arg2[%c5_21] : memref<141xf32, #tpu.memory_space<smem>>
    %c0_22 = arith.constant 0 : index
    %c5376 = arith.constant 5376 : index
    %55 = vector.load %arg1[%c0_22, %c5376] : memref<2x7680xf32, #tpu.memory_space<vmem>>, vector<2x384xf32>
    %56 = vector.broadcast %54 : f32 to vector<2x384xf32>
    %57 = arith.mulf %56, %55 : vector<2x384xf32>
    %58 = arith.addf %53, %57 : vector<2x384xf32>
    %c0_23 = arith.constant 0 : index
    %c384_24 = arith.constant 384 : index
    %59 = vector.load %arg6[%c0_23, %c384_24] : memref<2x6144xf32, #tpu.memory_space<vmem>>, vector<2x384xf32>
    tpu.vector_store %arg6[%c0_23, %c384_24], %58 {strides = array<i32>} : memref<2x6144xf32, #tpu.memory_space<vmem>>, vector<2x384xf32>,
    %c0_25 = arith.constant 0 : index
    %60 = memref.load %arg2[%c0_25] : memref<141xf32, #tpu.memory_space<smem>>
    %c0_26 = arith.constant 0 : index
    %c1920 = arith.constant 1920 : index
    %61 = vector.load %arg1[%c0_26, %c1920] : memref<2x7680xf32, #tpu.memory_space<vmem>>, vector<2x384xf32>
    %62 = vector.broadcast %60 : f32 to vector<2x384xf32>
    %63 = arith.mulf %62, %61 : vector<2x384xf32>
    %c1_27 = arith.constant 1 : index
    %64 = memref.load %arg2[%c1_27] : memref<141xf32, #tpu.memory_space<smem>>
    %c0_28 = arith.constant 0 : index
    %c2304 = arith.constant 2304 : index
    %65 = vector.load %arg1[%c0_28, %c2304] : memref<2x7680xf32, #tpu.memory_space<vmem>>, vector<2x384xf32>
    %66 = vector.broadcast %64 : f32 to vector<2x384xf32>
    %67 = arith.mulf %66, %65 : vector<2x384xf32>
    %68 = arith.addf %63, %67 : vector<2x384xf32>
    %c2_29 = arith.constant 2 : index
    %69 = memref.load %arg2[%c2_29] : memref<141xf32, #tpu.memory_space<smem>>
    %c0_30 = arith.constant 0 : index
    %c2688 = arith.constant 2688 : index
    %70 = vector.load %arg1[%c0_30, %c2688] : memref<2x7680xf32, #tpu.memory_space<vmem>>, vector<2x384xf32>
    %71 = vector.broadcast %69 : f32 to vector<2x384xf32>
    %72 = arith.mulf %71, %70 : vector<2x384xf32>
    %73 = arith.addf %68, %72 : vector<2x384xf32>
    %c3_31 = arith.constant 3 : index
    %74 = memref.load %arg2[%c3_31] : memref<141xf32, #tpu.memory_space<smem>>
    %c0_32 = arith.constant 0 : index
    %c5760 = arith.constant 5760 : index
    %75 = vector.load %arg1[%c0_32, %c5760] : memref<2x7680xf32, #tpu.memory_space<vmem>>, vector<2x384xf32>
    %76 = vector.broadcast %74 : f32 to vector<2x384xf32>
    %77 = arith.mulf %76, %75 : vector<2x384xf32>
    %78 = arith.addf %73, %77 : vector<2x384xf32>
    %c4_33 = arith.constant 4 : index
    %79 = memref.load %arg2[%c4_33] : memref<141xf32, #tpu.memory_space<smem>>
    %c0_34 = arith.constant 0 : index
    %c6144 = arith.constant 6144 : index
    %80 = vector.load %arg1[%c0_34, %c6144] : memref<2x7680xf32, #tpu.memory_space<vmem>>, vector<2x384xf32>
    %81 = vector.broadcast %79 : f32 to vector<2x384xf32>
    %82 = arith.mulf %81, %80 : vector<2x384xf32>
    %83 = arith.addf %78, %82 : vector<2x384xf32>
    %c5_35 = arith.constant 5 : index
    %84 = memref.load %arg2[%c5_35] : memref<141xf32, #tpu.memory_space<smem>>
    %c0_36 = arith.constant 0 : index
    %c6528 = arith.constant 6528 : index
    %85 = vector.load %arg1[%c0_36, %c6528] : memref<2x7680xf32, #tpu.memory_space<vmem>>, vector<2x384xf32>
    %86 = vector.broadcast %84 : f32 to vector<2x384xf32>
    %87 = arith.mulf %86, %85 : vector<2x384xf32>
    %88 = arith.addf %83, %87 : vector<2x384xf32>
    %c0_37 = arith.constant 0 : index
    %c768_38 = arith.constant 768 : index
    %89 = vector.load %arg6[%c0_37, %c768_38] : memref<2x6144xf32, #tpu.memory_space<vmem>>, vector<2x384xf32>
    tpu.vector_store %arg6[%c0_37, %c768_38], %88 {strides = array<i32>} : memref<2x6144xf32, #tpu.memory_space<vmem>>, vector<2x384xf32>,
    %c0_39 = arith.constant 0 : index
    %90 = memref.load %arg2[%c0_39] : memref<141xf32, #tpu.memory_space<smem>>
    %c0_40 = arith.constant 0 : index
    %c2688_41 = arith.constant 2688 : index
    %91 = vector.load %arg1[%c0_40, %c2688_41] : memref<2x7680xf32, #tpu.memory_space<vmem>>, vector<2x384xf32>
    %92 = vector.broadcast %90 : f32 to vector<2x384xf32>
    %93 = arith.mulf %92, %91 : vector<2x384xf32>
    %c1_42 = arith.constant 1 : index
    %94 = memref.load %arg2[%c1_42] : memref<141xf32, #tpu.memory_space<smem>>
    %c0_43 = arith.constant 0 : index
    %c3072 = arith.constant 3072 : index
    %95 = vector.load %arg1[%c0_43, %c3072] : memref<2x7680xf32, #tpu.memory_space<vmem>>, vector<2x384xf32>
    %96 = vector.broadcast %94 : f32 to vector<2x384xf32>
    %97 = arith.mulf %96, %95 : vector<2x384xf32>
    %98 = arith.addf %93, %97 : vector<2x384xf32>
    %c2_44 = arith.constant 2 : index
    %99 = memref.load %arg2[%c2_44] : memref<141xf32, #tpu.memory_space<smem>>
    %c0_45 = arith.constant 0 : index
    %c3456 = arith.constant 3456 : index
    %100 = vector.load %arg1[%c0_45, %c3456] : memref<2x7680xf32, #tpu.memory_space<vmem>>, vector<2x384xf32>
    %101 = vector.broadcast %99 : f32 to vector<2x384xf32>
    %102 = arith.mulf %101, %100 : vector<2x384xf32>
    %103 = arith.addf %98, %102 : vector<2x384xf32>
    %c3_46 = arith.constant 3 : index
    %104 = memref.load %arg2[%c3_46] : memref<141xf32, #tpu.memory_space<smem>>
    %c0_47 = arith.constant 0 : index
    %c6528_48 = arith.constant 6528 : index
    %105 = vector.load %arg1[%c0_47, %c6528_48] : memref<2x7680xf32, #tpu.memory_space<vmem>>, vector<2x384xf32>
    %106 = vector.broadcast %104 : f32 to vector<2x384xf32>
    %107 = arith.mulf %106, %105 : vector<2x384xf32>
    %108 = arith.addf %103, %107 : vector<2x384xf32>
    %c4_49 = arith.constant 4 : index
    %109 = memref.load %arg2[%c4_49] : memref<141xf32, #tpu.memory_space<smem>>
    %c0_50 = arith.constant 0 : index
    %c6912 = arith.constant 6912 : index
    %110 = vector.load %arg1[%c0_50, %c6912] : memref<2x7680xf32, #tpu.memory_space<vmem>>, vector<2x384xf32>
    %111 = vector.broadcast %109 : f32 to vector<2x384xf32>
    %112 = arith.mulf %111, %110 : vector<2x384xf32>
    %113 = arith.addf %108, %112 : vector<2x384xf32>
    %c5_51 = arith.constant 5 : index
    %114 = memref.load %arg2[%c5_51] : memref<141xf32, #tpu.memory_space<smem>>
    %c0_52 = arith.constant 0 : index
    %c7296 = arith.constant 7296 : index
    %115 = vector.load %arg1[%c0_52, %c7296] : memref<2x7680xf32, #tpu.memory_space<vmem>>, vector<2x384xf32>
    %116 = vector.broadcast %114 : f32 to vector<2x384xf32>
    %117 = arith.mulf %116, %115 : vector<2x384xf32>
    %118 = arith.addf %113, %117 : vector<2x384xf32>
    %c0_53 = arith.constant 0 : index
    %c1152_54 = arith.constant 1152 : index
    %119 = vector.load %arg6[%c0_53, %c1152_54] : memref<2x6144xf32, #tpu.memory_space<vmem>>, vector<2x384xf32>
    tpu.vector_store %arg6[%c0_53, %c1152_54], %118 {strides = array<i32>} : memref<2x6144xf32, #tpu.memory_space<vmem>>, vector<2x384xf32>,
    %c6 = arith.constant 6 : index
    %120 = memref.load %arg2[%c6] : memref<141xf32, #tpu.memory_space<smem>>
    %c0_55 = arith.constant 0 : index
    %c0_56 = arith.constant 0 : index
    %121 = vector.load %arg1[%c0_55, %c0_56] : memref<2x7680xf32, #tpu.memory_space<vmem>>, vector<2x384xf32>
    %122 = vector.broadcast %120 : f32 to vector<2x384xf32>
    %123 = arith.mulf %122, %121 : vector<2x384xf32>
    %c7 = arith.constant 7 : index
    %124 = memref.load %arg2[%c7] : memref<141xf32, #tpu.memory_space<smem>>
    %c0_57 = arith.constant 0 : index
    %c384_58 = arith.constant 384 : index
    %125 = vector.load %arg1[%c0_57, %c384_58] : memref<2x7680xf32, #tpu.memory_space<vmem>>, vector<2x384xf32>
    %126 = vector.broadcast %124 : f32 to vector<2x384xf32>
    %127 = arith.mulf %126, %125 : vector<2x384xf32>
    %128 = arith.addf %123, %127 : vector<2x384xf32>
    %c8 = arith.constant 8 : index
    %129 = memref.load %arg2[%c8] : memref<141xf32, #tpu.memory_space<smem>>
    %c0_59 = arith.constant 0 : index
    %c768_60 = arith.constant 768 : index
    %130 = vector.load %arg1[%c0_59, %c768_60] : memref<2x7680xf32, #tpu.memory_space<vmem>>, vector<2x384xf32>
    %131 = vector.broadcast %129 : f32 to vector<2x384xf32>
    %132 = arith.mulf %131, %130 : vector<2x384xf32>
    %133 = arith.addf %128, %132 : vector<2x384xf32>
    %c9 = arith.constant 9 : index
    %134 = memref.load %arg2[%c9] : memref<141xf32, #tpu.memory_space<smem>>
    %c0_61 = arith.constant 0 : index
    %c3840_62 = arith.constant 3840 : index
    %135 = vector.load %arg1[%c0_61, %c3840_62] : memref<2x7680xf32, #tpu.memory_space<vmem>>, vector<2x384xf32>
    %136 = vector.broadcast %134 : f32 to vector<2x384xf32>
    %137 = arith.mulf %136, %135 : vector<2x384xf32>
    %138 = arith.addf %133, %137 : vector<2x384xf32>
    %c10 = arith.constant 10 : index
    %139 = memref.load %arg2[%c10] : memref<141xf32, #tpu.memory_space<smem>>
    %c0_63 = arith.constant 0 : index
    %c4224_64 = arith.constant 4224 : index
    %140 = vector.load %arg1[%c0_63, %c4224_64] : memref<2x7680xf32, #tpu.memory_space<vmem>>, vector<2x384xf32>
    %141 = vector.broadcast %139 : f32 to vector<2x384xf32>
    %142 = arith.mulf %141, %140 : vector<2x384xf32>
    %143 = arith.addf %138, %142 : vector<2x384xf32>
    %c11 = arith.constant 11 : index
    %144 = memref.load %arg2[%c11] : memref<141xf32, #tpu.memory_space<smem>>
    %c0_65 = arith.constant 0 : index
    %c4608_66 = arith.constant 4608 : index
    %145 = vector.load %arg1[%c0_65, %c4608_66] : memref<2x7680xf32, #tpu.memory_space<vmem>>, vector<2x384xf32>
    %146 = vector.broadcast %144 : f32 to vector<2x384xf32>
    %147 = arith.mulf %146, %145 : vector<2x384xf32>
    %148 = arith.addf %143, %147 : vector<2x384xf32>
    %c0_67 = arith.constant 0 : index
    %c1536_68 = arith.constant 1536 : index
    %149 = vector.load %arg6[%c0_67, %c1536_68] : memref<2x6144xf32, #tpu.memory_space<vmem>>, vector<2x384xf32>
    tpu.vector_store %arg6[%c0_67, %c1536_68], %148 {strides = array<i32>} : memref<2x6144xf32, #tpu.memory_space<vmem>>, vector<2x384xf32>,
    %c6_69 = arith.constant 6 : index
    %150 = memref.load %arg2[%c6_69] : memref<141xf32, #tpu.memory_space<smem>>
    %c0_70 = arith.constant 0 : index
    %c768_71 = arith.constant 768 : index
    %151 = vector.load %arg1[%c0_70, %c768_71] : memref<2x7680xf32, #tpu.memory_space<vmem>>, vector<2x384xf32>
    %152 = vector.broadcast %150 : f32 to vector<2x384xf32>
    %153 = arith.mulf %152, %151 : vector<2x384xf32>
    %c7_72 = arith.constant 7 : index
    %154 = memref.load %arg2[%c7_72] : memref<141xf32, #tpu.memory_space<smem>>
    %c0_73 = arith.constant 0 : index
    %c1152_74 = arith.constant 1152 : index
    %155 = vector.load %arg1[%c0_73, %c1152_74] : memref<2x7680xf32, #tpu.memory_space<vmem>>, vector<2x384xf32>
    %156 = vector.broadcast %154 : f32 to vector<2x384xf32>
    %157 = arith.mulf %156, %155 : vector<2x384xf32>
    %158 = arith.addf %153, %157 : vector<2x384xf32>
    %c8_75 = arith.constant 8 : index
    %159 = memref.load %arg2[%c8_75] : memref<141xf32, #tpu.memory_space<smem>>
    %c0_76 = arith.constant 0 : index
    %c1536_77 = arith.constant 1536 : index
    %160 = vector.load %arg1[%c0_76, %c1536_77] : memref<2x7680xf32, #tpu.memory_space<vmem>>, vector<2x384xf32>
    %161 = vector.broadcast %159 : f32 to vector<2x384xf32>
    %162 = arith.mulf %161, %160 : vector<2x384xf32>
    %163 = arith.addf %158, %162 : vector<2x384xf32>
    %c9_78 = arith.constant 9 : index
    %164 = memref.load %arg2[%c9_78] : memref<141xf32, #tpu.memory_space<smem>>
    %c0_79 = arith.constant 0 : index
    %c4608_80 = arith.constant 4608 : index
    %165 = vector.load %arg1[%c0_79, %c4608_80] : memref<2x7680xf32, #tpu.memory_space<vmem>>, vector<2x384xf32>
    %166 = vector.broadcast %164 : f32 to vector<2x384xf32>
    %167 = arith.mulf %166, %165 : vector<2x384xf32>
    %168 = arith.addf %163, %167 : vector<2x384xf32>
    %c10_81 = arith.constant 10 : index
    %169 = memref.load %arg2[%c10_81] : memref<141xf32, #tpu.memory_space<smem>>
    %c0_82 = arith.constant 0 : index
    %c4992_83 = arith.constant 4992 : index
    %170 = vector.load %arg1[%c0_82, %c4992_83] : memref<2x7680xf32, #tpu.memory_space<vmem>>, vector<2x384xf32>
    %171 = vector.broadcast %169 : f32 to vector<2x384xf32>
    %172 = arith.mulf %171, %170 : vector<2x384xf32>
    %173 = arith.addf %168, %172 : vector<2x384xf32>
    %c11_84 = arith.constant 11 : index
    %174 = memref.load %arg2[%c11_84] : memref<141xf32, #tpu.memory_space<smem>>
    %c0_85 = arith.constant 0 : index
    %c5376_86 = arith.constant 5376 : index
    %175 = vector.load %arg1[%c0_85, %c5376_86] : memref<2x7680xf32, #tpu.memory_space<vmem>>, vector<2x384xf32>
    %176 = vector.broadcast %174 : f32 to vector<2x384xf32>
    %177 = arith.mulf %176, %175 : vector<2x384xf32>
    %178 = arith.addf %173, %177 : vector<2x384xf32>
    %c0_87 = arith.constant 0 : index
    %c1920_88 = arith.constant 1920 : index
    %179 = vector.load %arg6[%c0_87, %c1920_88] : memref<2x6144xf32, #tpu.memory_space<vmem>>, vector<2x384xf32>
    tpu.vector_store %arg6[%c0_87, %c1920_88], %178 {strides = array<i32>} : memref<2x6144xf32, #tpu.memory_space<vmem>>, vector<2x384xf32>,
    %c6_89 = arith.constant 6 : index
    %180 = memref.load %arg2[%c6_89] : memref<141xf32, #tpu.memory_space<smem>>
    %c0_90 = arith.constant 0 : index
    %c1920_91 = arith.constant 1920 : index
    %181 = vector.load %arg1[%c0_90, %c1920_91] : memref<2x7680xf32, #tpu.memory_space<vmem>>, vector<2x384xf32>
    %182 = vector.broadcast %180 : f32 to vector<2x384xf32>
    %183 = arith.mulf %182, %181 : vector<2x384xf32>
    %c7_92 = arith.constant 7 : index
    %184 = memref.load %arg2[%c7_92] : memref<141xf32, #tpu.memory_space<smem>>
    %c0_93 = arith.constant 0 : index
    %c2304_94 = arith.constant 2304 : index
    %185 = vector.load %arg1[%c0_93, %c2304_94] : memref<2x7680xf32, #tpu.memory_space<vmem>>, vector<2x384xf32>
    %186 = vector.broadcast %184 : f32 to vector<2x384xf32>
    %187 = arith.mulf %186, %185 : vector<2x384xf32>
    %188 = arith.addf %183, %187 : vector<2x384xf32>
    %c8_95 = arith.constant 8 : index
    %189 = memref.load %arg2[%c8_95] : memref<141xf32, #tpu.memory_space<smem>>
    %c0_96 = arith.constant 0 : index
    %c2688_97 = arith.constant 2688 : index
    %190 = vector.load %arg1[%c0_96, %c2688_97] : memref<2x7680xf32, #tpu.memory_space<vmem>>, vector<2x384xf32>
    %191 = vector.broadcast %189 : f32 to vector<2x384xf32>
    %192 = arith.mulf %191, %190 : vector<2x384xf32>
    %193 = arith.addf %188, %192 : vector<2x384xf32>
    %c9_98 = arith.constant 9 : index
    %194 = memref.load %arg2[%c9_98] : memref<141xf32, #tpu.memory_space<smem>>
    %c0_99 = arith.constant 0 : index
    %c5760_100 = arith.constant 5760 : index
    %195 = vector.load %arg1[%c0_99, %c5760_100] : memref<2x7680xf32, #tpu.memory_space<vmem>>, vector<2x384xf32>
    %196 = vector.broadcast %194 : f32 to vector<2x384xf32>
    %197 = arith.mulf %196, %195 : vector<2x384xf32>
    %198 = arith.addf %193, %197 : vector<2x384xf32>
    %c10_101 = arith.constant 10 : index
    %199 = memref.load %arg2[%c10_101] : memref<141xf32, #tpu.memory_space<smem>>
    %c0_102 = arith.constant 0 : index
    %c6144_103 = arith.constant 6144 : index
    %200 = vector.load %arg1[%c0_102, %c6144_103] : memref<2x7680xf32, #tpu.memory_space<vmem>>, vector<2x384xf32>
    %201 = vector.broadcast %199 : f32 to vector<2x384xf32>
    %202 = arith.mulf %201, %200 : vector<2x384xf32>
    %203 = arith.addf %198, %202 : vector<2x384xf32>
    %c11_104 = arith.constant 11 : index
    %204 = memref.load %arg2[%c11_104] : memref<141xf32, #tpu.memory_space<smem>>
    %c0_105 = arith.constant 0 : index
    %c6528_106 = arith.constant 6528 : index
    %205 = vector.load %arg1[%c0_105, %c6528_106] : memref<2x7680xf32, #tpu.memory_space<vmem>>, vector<2x384xf32>
    %206 = vector.broadcast %204 : f32 to vector<2x384xf32>
    %207 = arith.mulf %206, %205 : vector<2x384xf32>
    %208 = arith.addf %203, %207 : vector<2x384xf32>
    %c0_107 = arith.constant 0 : index
    %c2304_108 = arith.constant 2304 : index
    %209 = vector.load %arg6[%c0_107, %c2304_108] : memref<2x6144xf32, #tpu.memory_space<vmem>>, vector<2x384xf32>
    tpu.vector_store %arg6[%c0_107, %c2304_108], %208 {strides = array<i32>} : memref<2x6144xf32, #tpu.memory_space<vmem>>, vector<2x384xf32>,
    %c6_109 = arith.constant 6 : index
    %210 = memref.load %arg2[%c6_109] : memref<141xf32, #tpu.memory_space<smem>>
    %c0_110 = arith.constant 0 : index
    %c2688_111 = arith.constant 2688 : index
    %211 = vector.load %arg1[%c0_110, %c2688_111] : memref<2x7680xf32, #tpu.memory_space<vmem>>, vector<2x384xf32>
    %212 = vector.broadcast %210 : f32 to vector<2x384xf32>
    %213 = arith.mulf %212, %211 : vector<2x384xf32>
    %c7_112 = arith.constant 7 : index
    %214 = memref.load %arg2[%c7_112] : memref<141xf32, #tpu.memory_space<smem>>
    %c0_113 = arith.constant 0 : index
    %c3072_114 = arith.constant 3072 : index
    %215 = vector.load %arg1[%c0_113, %c3072_114] : memref<2x7680xf32, #tpu.memory_space<vmem>>, vector<2x384xf32>
    %216 = vector.broadcast %214 : f32 to vector<2x384xf32>
    %217 = arith.mulf %216, %215 : vector<2x384xf32>
    %218 = arith.addf %213, %217 : vector<2x384xf32>
    %c8_115 = arith.constant 8 : index
    %219 = memref.load %arg2[%c8_115] : memref<141xf32, #tpu.memory_space<smem>>
    %c0_116 = arith.constant 0 : index
    %c3456_117 = arith.constant 3456 : index
    %220 = vector.load %arg1[%c0_116, %c3456_117] : memref<2x7680xf32, #tpu.memory_space<vmem>>, vector<2x384xf32>
    %221 = vector.broadcast %219 : f32 to vector<2x384xf32>
    %222 = arith.mulf %221, %220 : vector<2x384xf32>
    %223 = arith.addf %218, %222 : vector<2x384xf32>
    %c9_118 = arith.constant 9 : index
    %224 = memref.load %arg2[%c9_118] : memref<141xf32, #tpu.memory_space<smem>>
    %c0_119 = arith.constant 0 : index
    %c6528_120 = arith.constant 6528 : index
    %225 = vector.load %arg1[%c0_119, %c6528_120] : memref<2x7680xf32, #tpu.memory_space<vmem>>, vector<2x384xf32>
    %226 = vector.broadcast %224 : f32 to vector<2x384xf32>
    %227 = arith.mulf %226, %225 : vector<2x384xf32>
    %228 = arith.addf %223, %227 : vector<2x384xf32>
    %c10_121 = arith.constant 10 : index
    %229 = memref.load %arg2[%c10_121] : memref<141xf32, #tpu.memory_space<smem>>
    %c0_122 = arith.constant 0 : index
    %c6912_123 = arith.constant 6912 : index
    %230 = vector.load %arg1[%c0_122, %c6912_123] : memref<2x7680xf32, #tpu.memory_space<vmem>>, vector<2x384xf32>
    %231 = vector.broadcast %229 : f32 to vector<2x384xf32>
    %232 = arith.mulf %231, %230 : vector<2x384xf32>
    %233 = arith.addf %228, %232 : vector<2x384xf32>
    %c11_124 = arith.constant 11 : index
    %234 = memref.load %arg2[%c11_124] : memref<141xf32, #tpu.memory_space<smem>>
    %c0_125 = arith.constant 0 : index
    %c7296_126 = arith.constant 7296 : index
    %235 = vector.load %arg1[%c0_125, %c7296_126] : memref<2x7680xf32, #tpu.memory_space<vmem>>, vector<2x384xf32>
    %236 = vector.broadcast %234 : f32 to vector<2x384xf32>
    %237 = arith.mulf %236, %235 : vector<2x384xf32>
    %238 = arith.addf %233, %237 : vector<2x384xf32>
    %c0_127 = arith.constant 0 : index
    %c2688_128 = arith.constant 2688 : index
    %239 = vector.load %arg6[%c0_127, %c2688_128] : memref<2x6144xf32, #tpu.memory_space<vmem>>, vector<2x384xf32>
    tpu.vector_store %arg6[%c0_127, %c2688_128], %238 {strides = array<i32>} : memref<2x6144xf32, #tpu.memory_space<vmem>>, vector<2x384xf32>,
    %c12 = arith.constant 12 : index
    %240 = memref.load %arg2[%c12] : memref<141xf32, #tpu.memory_space<smem>>
    %c0_129 = arith.constant 0 : index
    %c0_130 = arith.constant 0 : index
    %241 = vector.load %arg1[%c0_129, %c0_130] : memref<2x7680xf32, #tpu.memory_space<vmem>>, vector<2x384xf32>
    %242 = vector.broadcast %240 : f32 to vector<2x384xf32>
    %243 = arith.mulf %242, %241 : vector<2x384xf32>
    %c13 = arith.constant 13 : index
    %244 = memref.load %arg2[%c13] : memref<141xf32, #tpu.memory_space<smem>>
    %c0_131 = arith.constant 0 : index
    %c384_132 = arith.constant 384 : index
    %245 = vector.load %arg1[%c0_131, %c384_132] : memref<2x7680xf32, #tpu.memory_space<vmem>>, vector<2x384xf32>
    %246 = vector.broadcast %244 : f32 to vector<2x384xf32>
    %247 = arith.mulf %246, %245 : vector<2x384xf32>
    %248 = arith.addf %243, %247 : vector<2x384xf32>
    %c14 = arith.constant 14 : index
    %249 = memref.load %arg2[%c14] : memref<141xf32, #tpu.memory_space<smem>>
    %c0_133 = arith.constant 0 : index
    %c768_134 = arith.constant 768 : index
    %250 = vector.load %arg1[%c0_133, %c768_134] : memref<2x7680xf32, #tpu.memory_space<vmem>>, vector<2x384xf32>
    %251 = vector.broadcast %249 : f32 to vector<2x384xf32>
    %252 = arith.mulf %251, %250 : vector<2x384xf32>
    %253 = arith.addf %248, %252 : vector<2x384xf32>
    %c15 = arith.constant 15 : index
    %254 = memref.load %arg2[%c15] : memref<141xf32, #tpu.memory_space<smem>>
    %c0_135 = arith.constant 0 : index
    %c3840_136 = arith.constant 3840 : index
    %255 = vector.load %arg1[%c0_135, %c3840_136] : memref<2x7680xf32, #tpu.memory_space<vmem>>, vector<2x384xf32>
    %256 = vector.broadcast %254 : f32 to vector<2x384xf32>
    %257 = arith.mulf %256, %255 : vector<2x384xf32>
    %258 = arith.addf %253, %257 : vector<2x384xf32>
    %c16 = arith.constant 16 : index
    %259 = memref.load %arg2[%c16] : memref<141xf32, #tpu.memory_space<smem>>
    %c0_137 = arith.constant 0 : index
    %c4224_138 = arith.constant 4224 : index
    %260 = vector.load %arg1[%c0_137, %c4224_138] : memref<2x7680xf32, #tpu.memory_space<vmem>>, vector<2x384xf32>
    %261 = vector.broadcast %259 : f32 to vector<2x384xf32>
    %262 = arith.mulf %261, %260 : vector<2x384xf32>
    %263 = arith.addf %258, %262 : vector<2x384xf32>
    %c17 = arith.constant 17 : index
    %264 = memref.load %arg2[%c17] : memref<141xf32, #tpu.memory_space<smem>>
    %c0_139 = arith.constant 0 : index
    %c4608_140 = arith.constant 4608 : index
    %265 = vector.load %arg1[%c0_139, %c4608_140] : memref<2x7680xf32, #tpu.memory_space<vmem>>, vector<2x384xf32>
    %266 = vector.broadcast %264 : f32 to vector<2x384xf32>
    %267 = arith.mulf %266, %265 : vector<2x384xf32>
    %268 = arith.addf %263, %267 : vector<2x384xf32>
    %c0_141 = arith.constant 0 : index
    %c3072_142 = arith.constant 3072 : index
    %269 = vector.load %arg6[%c0_141, %c3072_142] : memref<2x6144xf32, #tpu.memory_space<vmem>>, vector<2x384xf32>
    tpu.vector_store %arg6[%c0_141, %c3072_142], %268 {strides = array<i32>} : memref<2x6144xf32, #tpu.memory_space<vmem>>, vector<2x384xf32>,
    %c12_143 = arith.constant 12 : index
    %270 = memref.load %arg2[%c12_143] : memref<141xf32, #tpu.memory_space<smem>>
    %c0_144 = arith.constant 0 : index
    %c768_145 = arith.constant 768 : index
    %271 = vector.load %arg1[%c0_144, %c768_145] : memref<2x7680xf32, #tpu.memory_space<vmem>>, vector<2x384xf32>
    %272 = vector.broadcast %270 : f32 to vector<2x384xf32>
    %273 = arith.mulf %272, %271 : vector<2x384xf32>
    %c13_146 = arith.constant 13 : index
    %274 = memref.load %arg2[%c13_146] : memref<141xf32, #tpu.memory_space<smem>>
    %c0_147 = arith.constant 0 : index
    %c1152_148 = arith.constant 1152 : index
    %275 = vector.load %arg1[%c0_147, %c1152_148] : memref<2x7680xf32, #tpu.memory_space<vmem>>, vector<2x384xf32>
    %276 = vector.broadcast %274 : f32 to vector<2x384xf32>
    %277 = arith.mulf %276, %275 : vector<2x384xf32>
    %278 = arith.addf %273, %277 : vector<2x384xf32>
    %c14_149 = arith.constant 14 : index
    %279 = memref.load %arg2[%c14_149] : memref<141xf32, #tpu.memory_space<smem>>
    %c0_150 = arith.constant 0 : index
    %c1536_151 = arith.constant 1536 : index
    %280 = vector.load %arg1[%c0_150, %c1536_151] : memref<2x7680xf32, #tpu.memory_space<vmem>>, vector<2x384xf32>
    %281 = vector.broadcast %279 : f32 to vector<2x384xf32>
    %282 = arith.mulf %281, %280 : vector<2x384xf32>
    %283 = arith.addf %278, %282 : vector<2x384xf32>
    %c15_152 = arith.constant 15 : index
    %284 = memref.load %arg2[%c15_152] : memref<141xf32, #tpu.memory_space<smem>>
    %c0_153 = arith.constant 0 : index
    %c4608_154 = arith.constant 4608 : index
    %285 = vector.load %arg1[%c0_153, %c4608_154] : memref<2x7680xf32, #tpu.memory_space<vmem>>, vector<2x384xf32>
    %286 = vector.broadcast %284 : f32 to vector<2x384xf32>
    %287 = arith.mulf %286, %285 : vector<2x384xf32>
    %288 = arith.addf %283, %287 : vector<2x384xf32>
    %c16_155 = arith.constant 16 : index
    %289 = memref.load %arg2[%c16_155] : memref<141xf32, #tpu.memory_space<smem>>
    %c0_156 = arith.constant 0 : index
    %c4992_157 = arith.constant 4992 : index
    %290 = vector.load %arg1[%c0_156, %c4992_157] : memref<2x7680xf32, #tpu.memory_space<vmem>>, vector<2x384xf32>
    %291 = vector.broadcast %289 : f32 to vector<2x384xf32>
    %292 = arith.mulf %291, %290 : vector<2x384xf32>
    %293 = arith.addf %288, %292 : vector<2x384xf32>
    %c17_158 = arith.constant 17 : index
    %294 = memref.load %arg2[%c17_158] : memref<141xf32, #tpu.memory_space<smem>>
    %c0_159 = arith.constant 0 : index
    %c5376_160 = arith.constant 5376 : index
    %295 = vector.load %arg1[%c0_159, %c5376_160] : memref<2x7680xf32, #tpu.memory_space<vmem>>, vector<2x384xf32>
    %296 = vector.broadcast %294 : f32 to vector<2x384xf32>
    %297 = arith.mulf %296, %295 : vector<2x384xf32>
    %298 = arith.addf %293, %297 : vector<2x384xf32>
    %c0_161 = arith.constant 0 : index
    %c3456_162 = arith.constant 3456 : index
    %299 = vector.load %arg6[%c0_161, %c3456_162] : memref<2x6144xf32, #tpu.memory_space<vmem>>, vector<2x384xf32>
    tpu.vector_store %arg6[%c0_161, %c3456_162], %298 {strides = array<i32>} : memref<2x6144xf32, #tpu.memory_space<vmem>>, vector<2x384xf32>,
    %c12_163 = arith.constant 12 : index
    %300 = memref.load %arg2[%c12_163] : memref<141xf32, #tpu.memory_space<smem>>
    %c0_164 = arith.constant 0 : index
    %c1920_165 = arith.constant 1920 : index
    %301 = vector.load %arg1[%c0_164, %c1920_165] : memref<2x7680xf32, #tpu.memory_space<vmem>>, vector<2x384xf32>
    %302 = vector.broadcast %300 : f32 to vector<2x384xf32>
    %303 = arith.mulf %302, %301 : vector<2x384xf32>
    %c13_166 = arith.constant 13 : index
    %304 = memref.load %arg2[%c13_166] : memref<141xf32, #tpu.memory_space<smem>>
    %c0_167 = arith.constant 0 : index
    %c2304_168 = arith.constant 2304 : index
    %305 = vector.load %arg1[%c0_167, %c2304_168] : memref<2x7680xf32, #tpu.memory_space<vmem>>, vector<2x384xf32>
    %306 = vector.broadcast %304 : f32 to vector<2x384xf32>
    %307 = arith.mulf %306, %305 : vector<2x384xf32>
    %308 = arith.addf %303, %307 : vector<2x384xf32>
    %c14_169 = arith.constant 14 : index
    %309 = memref.load %arg2[%c14_169] : memref<141xf32, #tpu.memory_space<smem>>
    %c0_170 = arith.constant 0 : index
    %c2688_171 = arith.constant 2688 : index
    %310 = vector.load %arg1[%c0_170, %c2688_171] : memref<2x7680xf32, #tpu.memory_space<vmem>>, vector<2x384xf32>
    %311 = vector.broadcast %309 : f32 to vector<2x384xf32>
    %312 = arith.mulf %311, %310 : vector<2x384xf32>
    %313 = arith.addf %308, %312 : vector<2x384xf32>
    %c15_172 = arith.constant 15 : index
    %314 = memref.load %arg2[%c15_172] : memref<141xf32, #tpu.memory_space<smem>>
    %c0_173 = arith.constant 0 : index
    %c5760_174 = arith.constant 5760 : index
    %315 = vector.load %arg1[%c0_173, %c5760_174] : memref<2x7680xf32, #tpu.memory_space<vmem>>, vector<2x384xf32>
    %316 = vector.broadcast %314 : f32 to vector<2x384xf32>
    %317 = arith.mulf %316, %315 : vector<2x384xf32>
    %318 = arith.addf %313, %317 : vector<2x384xf32>
    %c16_175 = arith.constant 16 : index
    %319 = memref.load %arg2[%c16_175] : memref<141xf32, #tpu.memory_space<smem>>
    %c0_176 = arith.constant 0 : index
    %c6144_177 = arith.constant 6144 : index
    %320 = vector.load %arg1[%c0_176, %c6144_177] : memref<2x7680xf32, #tpu.memory_space<vmem>>, vector<2x384xf32>
    %321 = vector.broadcast %319 : f32 to vector<2x384xf32>
    %322 = arith.mulf %321, %320 : vector<2x384xf32>
    %323 = arith.addf %318, %322 : vector<2x384xf32>
    %c17_178 = arith.constant 17 : index
    %324 = memref.load %arg2[%c17_178] : memref<141xf32, #tpu.memory_space<smem>>
    %c0_179 = arith.constant 0 : index
    %c6528_180 = arith.constant 6528 : index
    %325 = vector.load %arg1[%c0_179, %c6528_180] : memref<2x7680xf32, #tpu.memory_space<vmem>>, vector<2x384xf32>
    %326 = vector.broadcast %324 : f32 to vector<2x384xf32>
    %327 = arith.mulf %326, %325 : vector<2x384xf32>
    %328 = arith.addf %323, %327 : vector<2x384xf32>
    %c0_181 = arith.constant 0 : index
    %c3840_182 = arith.constant 3840 : index
    %329 = vector.load %arg6[%c0_181, %c3840_182] : memref<2x6144xf32, #tpu.memory_space<vmem>>, vector<2x384xf32>
    tpu.vector_store %arg6[%c0_181, %c3840_182], %328 {strides = array<i32>} : memref<2x6144xf32, #tpu.memory_space<vmem>>, vector<2x384xf32>,
    %c12_183 = arith.constant 12 : index
    %330 = memref.load %arg2[%c12_183] : memref<141xf32, #tpu.memory_space<smem>>
    %c0_184 = arith.constant 0 : index
    %c2688_185 = arith.constant 2688 : index
    %331 = vector.load %arg1[%c0_184, %c2688_185] : memref<2x7680xf32, #tpu.memory_space<vmem>>, vector<2x384xf32>
    %332 = vector.broadcast %330 : f32 to vector<2x384xf32>
    %333 = arith.mulf %332, %331 : vector<2x384xf32>
    %c13_186 = arith.constant 13 : index
    %334 = memref.load %arg2[%c13_186] : memref<141xf32, #tpu.memory_space<smem>>
    %c0_187 = arith.constant 0 : index
    %c3072_188 = arith.constant 3072 : index
    %335 = vector.load %arg1[%c0_187, %c3072_188] : memref<2x7680xf32, #tpu.memory_space<vmem>>, vector<2x384xf32>
    %336 = vector.broadcast %334 : f32 to vector<2x384xf32>
    %337 = arith.mulf %336, %335 : vector<2x384xf32>
    %338 = arith.addf %333, %337 : vector<2x384xf32>
    %c14_189 = arith.constant 14 : index
    %339 = memref.load %arg2[%c14_189] : memref<141xf32, #tpu.memory_space<smem>>
    %c0_190 = arith.constant 0 : index
    %c3456_191 = arith.constant 3456 : index
    %340 = vector.load %arg1[%c0_190, %c3456_191] : memref<2x7680xf32, #tpu.memory_space<vmem>>, vector<2x384xf32>
    %341 = vector.broadcast %339 : f32 to vector<2x384xf32>
    %342 = arith.mulf %341, %340 : vector<2x384xf32>
    %343 = arith.addf %338, %342 : vector<2x384xf32>
    %c15_192 = arith.constant 15 : index
    %344 = memref.load %arg2[%c15_192] : memref<141xf32, #tpu.memory_space<smem>>
    %c0_193 = arith.constant 0 : index
    %c6528_194 = arith.constant 6528 : index
    %345 = vector.load %arg1[%c0_193, %c6528_194] : memref<2x7680xf32, #tpu.memory_space<vmem>>, vector<2x384xf32>
    %346 = vector.broadcast %344 : f32 to vector<2x384xf32>
    %347 = arith.mulf %346, %345 : vector<2x384xf32>
    %348 = arith.addf %343, %347 : vector<2x384xf32>
    %c16_195 = arith.constant 16 : index
    %349 = memref.load %arg2[%c16_195] : memref<141xf32, #tpu.memory_space<smem>>
    %c0_196 = arith.constant 0 : index
    %c6912_197 = arith.constant 6912 : index
    %350 = vector.load %arg1[%c0_196, %c6912_197] : memref<2x7680xf32, #tpu.memory_space<vmem>>, vector<2x384xf32>
    %351 = vector.broadcast %349 : f32 to vector<2x384xf32>
    %352 = arith.mulf %351, %350 : vector<2x384xf32>
    %353 = arith.addf %348, %352 : vector<2x384xf32>
    %c17_198 = arith.constant 17 : index
    %354 = memref.load %arg2[%c17_198] : memref<141xf32, #tpu.memory_space<smem>>
    %c0_199 = arith.constant 0 : index
    %c7296_200 = arith.constant 7296 : index
    %355 = vector.load %arg1[%c0_199, %c7296_200] : memref<2x7680xf32, #tpu.memory_space<vmem>>, vector<2x384xf32>
    %356 = vector.broadcast %354 : f32 to vector<2x384xf32>
    %357 = arith.mulf %356, %355 : vector<2x384xf32>
    %358 = arith.addf %353, %357 : vector<2x384xf32>
    %c0_201 = arith.constant 0 : index
    %c4224_202 = arith.constant 4224 : index
    %359 = vector.load %arg6[%c0_201, %c4224_202] : memref<2x6144xf32, #tpu.memory_space<vmem>>, vector<2x384xf32>
    tpu.vector_store %arg6[%c0_201, %c4224_202], %358 {strides = array<i32>} : memref<2x6144xf32, #tpu.memory_space<vmem>>, vector<2x384xf32>,
    %c18 = arith.constant 18 : index
    %360 = memref.load %arg2[%c18] : memref<141xf32, #tpu.memory_space<smem>>
    %c0_203 = arith.constant 0 : index
    %c0_204 = arith.constant 0 : index
    %361 = vector.load %arg1[%c0_203, %c0_204] : memref<2x7680xf32, #tpu.memory_space<vmem>>, vector<2x384xf32>
    %362 = vector.broadcast %360 : f32 to vector<2x384xf32>
    %363 = arith.mulf %362, %361 : vector<2x384xf32>
    %c19 = arith.constant 19 : index
    %364 = memref.load %arg2[%c19] : memref<141xf32, #tpu.memory_space<smem>>
    %c0_205 = arith.constant 0 : index
    %c384_206 = arith.constant 384 : index
    %365 = vector.load %arg1[%c0_205, %c384_206] : memref<2x7680xf32, #tpu.memory_space<vmem>>, vector<2x384xf32>
    %366 = vector.broadcast %364 : f32 to vector<2x384xf32>
    %367 = arith.mulf %366, %365 : vector<2x384xf32>
    %368 = arith.addf %363, %367 : vector<2x384xf32>
    %c20 = arith.constant 20 : index
    %369 = memref.load %arg2[%c20] : memref<141xf32, #tpu.memory_space<smem>>
    %c0_207 = arith.constant 0 : index
    %c768_208 = arith.constant 768 : index
    %370 = vector.load %arg1[%c0_207, %c768_208] : memref<2x7680xf32, #tpu.memory_space<vmem>>, vector<2x384xf32>
    %371 = vector.broadcast %369 : f32 to vector<2x384xf32>
    %372 = arith.mulf %371, %370 : vector<2x384xf32>
    %373 = arith.addf %368, %372 : vector<2x384xf32>
    %c21 = arith.constant 21 : index
    %374 = memref.load %arg2[%c21] : memref<141xf32, #tpu.memory_space<smem>>
    %c0_209 = arith.constant 0 : index
    %c3840_210 = arith.constant 3840 : index
    %375 = vector.load %arg1[%c0_209, %c3840_210] : memref<2x7680xf32, #tpu.memory_space<vmem>>, vector<2x384xf32>
    %376 = vector.broadcast %374 : f32 to vector<2x384xf32>
    %377 = arith.mulf %376, %375 : vector<2x384xf32>
    %378 = arith.addf %373, %377 : vector<2x384xf32>
    %c22 = arith.constant 22 : index
    %379 = memref.load %arg2[%c22] : memref<141xf32, #tpu.memory_space<smem>>
    %c0_211 = arith.constant 0 : index
    %c4224_212 = arith.constant 4224 : index
    %380 = vector.load %arg1[%c0_211, %c4224_212] : memref<2x7680xf32, #tpu.memory_space<vmem>>, vector<2x384xf32>
    %381 = vector.broadcast %379 : f32 to vector<2x384xf32>
    %382 = arith.mulf %381, %380 : vector<2x384xf32>
    %383 = arith.addf %378, %382 : vector<2x384xf32>
    %c23 = arith.constant 23 : index
    %384 = memref.load %arg2[%c23] : memref<141xf32, #tpu.memory_space<smem>>
    %c0_213 = arith.constant 0 : index
    %c4608_214 = arith.constant 4608 : index
    %385 = vector.load %arg1[%c0_213, %c4608_214] : memref<2x7680xf32, #tpu.memory_space<vmem>>, vector<2x384xf32>
    %386 = vector.broadcast %384 : f32 to vector<2x384xf32>
    %387 = arith.mulf %386, %385 : vector<2x384xf32>
    %388 = arith.addf %383, %387 : vector<2x384xf32>
    %c0_215 = arith.constant 0 : index
    %c4608_216 = arith.constant 4608 : index
    %389 = vector.load %arg6[%c0_215, %c4608_216] : memref<2x6144xf32, #tpu.memory_space<vmem>>, vector<2x384xf32>
    tpu.vector_store %arg6[%c0_215, %c4608_216], %388 {strides = array<i32>} : memref<2x6144xf32, #tpu.memory_space<vmem>>, vector<2x384xf32>,
    %c18_217 = arith.constant 18 : index
    %390 = memref.load %arg2[%c18_217] : memref<141xf32, #tpu.memory_space<smem>>
    %c0_218 = arith.constant 0 : index
    %c768_219 = arith.constant 768 : index
    %391 = vector.load %arg1[%c0_218, %c768_219] : memref<2x7680xf32, #tpu.memory_space<vmem>>, vector<2x384xf32>
    %392 = vector.broadcast %390 : f32 to vector<2x384xf32>
    %393 = arith.mulf %392, %391 : vector<2x384xf32>
    %c19_220 = arith.constant 19 : index
    %394 = memref.load %arg2[%c19_220] : memref<141xf32, #tpu.memory_space<smem>>
    %c0_221 = arith.constant 0 : index
    %c1152_222 = arith.constant 1152 : index
    %395 = vector.load %arg1[%c0_221, %c1152_222] : memref<2x7680xf32, #tpu.memory_space<vmem>>, vector<2x384xf32>
    %396 = vector.broadcast %394 : f32 to vector<2x384xf32>
    %397 = arith.mulf %396, %395 : vector<2x384xf32>
    %398 = arith.addf %393, %397 : vector<2x384xf32>
    %c20_223 = arith.constant 20 : index
    %399 = memref.load %arg2[%c20_223] : memref<141xf32, #tpu.memory_space<smem>>
    %c0_224 = arith.constant 0 : index
    %c1536_225 = arith.constant 1536 : index
    %400 = vector.load %arg1[%c0_224, %c1536_225] : memref<2x7680xf32, #tpu.memory_space<vmem>>, vector<2x384xf32>
    %401 = vector.broadcast %399 : f32 to vector<2x384xf32>
    %402 = arith.mulf %401, %400 : vector<2x384xf32>
    %403 = arith.addf %398, %402 : vector<2x384xf32>
    %c21_226 = arith.constant 21 : index
    %404 = memref.load %arg2[%c21_226] : memref<141xf32, #tpu.memory_space<smem>>
    %c0_227 = arith.constant 0 : index
    %c4608_228 = arith.constant 4608 : index
    %405 = vector.load %arg1[%c0_227, %c4608_228] : memref<2x7680xf32, #tpu.memory_space<vmem>>, vector<2x384xf32>
    %406 = vector.broadcast %404 : f32 to vector<2x384xf32>
    %407 = arith.mulf %406, %405 : vector<2x384xf32>
    %408 = arith.addf %403, %407 : vector<2x384xf32>
    %c22_229 = arith.constant 22 : index
    %409 = memref.load %arg2[%c22_229] : memref<141xf32, #tpu.memory_space<smem>>
    %c0_230 = arith.constant 0 : index
    %c4992_231 = arith.constant 4992 : index
    %410 = vector.load %arg1[%c0_230, %c4992_231] : memref<2x7680xf32, #tpu.memory_space<vmem>>, vector<2x384xf32>
    %411 = vector.broadcast %409 : f32 to vector<2x384xf32>
    %412 = arith.mulf %411, %410 : vector<2x384xf32>
    %413 = arith.addf %408, %412 : vector<2x384xf32>
    %c23_232 = arith.constant 23 : index
    %414 = memref.load %arg2[%c23_232] : memref<141xf32, #tpu.memory_space<smem>>
    %c0_233 = arith.constant 0 : index
    %c5376_234 = arith.constant 5376 : index
    %415 = vector.load %arg1[%c0_233, %c5376_234] : memref<2x7680xf32, #tpu.memory_space<vmem>>, vector<2x384xf32>
    %416 = vector.broadcast %414 : f32 to vector<2x384xf32>
    %417 = arith.mulf %416, %415 : vector<2x384xf32>
    %418 = arith.addf %413, %417 : vector<2x384xf32>
    %c0_235 = arith.constant 0 : index
    %c4992_236 = arith.constant 4992 : index
    %419 = vector.load %arg6[%c0_235, %c4992_236] : memref<2x6144xf32, #tpu.memory_space<vmem>>, vector<2x384xf32>
    tpu.vector_store %arg6[%c0_235, %c4992_236], %418 {strides = array<i32>} : memref<2x6144xf32, #tpu.memory_space<vmem>>, vector<2x384xf32>,
    %c18_237 = arith.constant 18 : index
    %420 = memref.load %arg2[%c18_237] : memref<141xf32, #tpu.memory_space<smem>>
    %c0_238 = arith.constant 0 : index
    %c1920_239 = arith.constant 1920 : index
    %421 = vector.load %arg1[%c0_238, %c1920_239] : memref<2x7680xf32, #tpu.memory_space<vmem>>, vector<2x384xf32>
    %422 = vector.broadcast %420 : f32 to vector<2x384xf32>
    %423 = arith.mulf %422, %421 : vector<2x384xf32>
    %c19_240 = arith.constant 19 : index
    %424 = memref.load %arg2[%c19_240] : memref<141xf32, #tpu.memory_space<smem>>
    %c0_241 = arith.constant 0 : index
    %c2304_242 = arith.constant 2304 : index
    %425 = vector.load %arg1[%c0_241, %c2304_242] : memref<2x7680xf32, #tpu.memory_space<vmem>>, vector<2x384xf32>
    %426 = vector.broadcast %424 : f32 to vector<2x384xf32>
    %427 = arith.mulf %426, %425 : vector<2x384xf32>
    %428 = arith.addf %423, %427 : vector<2x384xf32>
    %c20_243 = arith.constant 20 : index
    %429 = memref.load %arg2[%c20_243] : memref<141xf32, #tpu.memory_space<smem>>
    %c0_244 = arith.constant 0 : index
    %c2688_245 = arith.constant 2688 : index
    %430 = vector.load %arg1[%c0_244, %c2688_245] : memref<2x7680xf32, #tpu.memory_space<vmem>>, vector<2x384xf32>
    %431 = vector.broadcast %429 : f32 to vector<2x384xf32>
    %432 = arith.mulf %431, %430 : vector<2x384xf32>
    %433 = arith.addf %428, %432 : vector<2x384xf32>
    %c21_246 = arith.constant 21 : index
    %434 = memref.load %arg2[%c21_246] : memref<141xf32, #tpu.memory_space<smem>>
    %c0_247 = arith.constant 0 : index
    %c5760_248 = arith.constant 5760 : index
    %435 = vector.load %arg1[%c0_247, %c5760_248] : memref<2x7680xf32, #tpu.memory_space<vmem>>, vector<2x384xf32>
    %436 = vector.broadcast %434 : f32 to vector<2x384xf32>
    %437 = arith.mulf %436, %435 : vector<2x384xf32>
    %438 = arith.addf %433, %437 : vector<2x384xf32>
    %c22_249 = arith.constant 22 : index
    %439 = memref.load %arg2[%c22_249] : memref<141xf32, #tpu.memory_space<smem>>
    %c0_250 = arith.constant 0 : index
    %c6144_251 = arith.constant 6144 : index
    %440 = vector.load %arg1[%c0_250, %c6144_251] : memref<2x7680xf32, #tpu.memory_space<vmem>>, vector<2x384xf32>
    %441 = vector.broadcast %439 : f32 to vector<2x384xf32>
    %442 = arith.mulf %441, %440 : vector<2x384xf32>
    %443 = arith.addf %438, %442 : vector<2x384xf32>
    %c23_252 = arith.constant 23 : index
    %444 = memref.load %arg2[%c23_252] : memref<141xf32, #tpu.memory_space<smem>>
    %c0_253 = arith.constant 0 : index
    %c6528_254 = arith.constant 6528 : index
    %445 = vector.load %arg1[%c0_253, %c6528_254] : memref<2x7680xf32, #tpu.memory_space<vmem>>, vector<2x384xf32>
    %446 = vector.broadcast %444 : f32 to vector<2x384xf32>
    %447 = arith.mulf %446, %445 : vector<2x384xf32>
    %448 = arith.addf %443, %447 : vector<2x384xf32>
    %c0_255 = arith.constant 0 : index
    %c5376_256 = arith.constant 5376 : index
    %449 = vector.load %arg6[%c0_255, %c5376_256] : memref<2x6144xf32, #tpu.memory_space<vmem>>, vector<2x384xf32>
    tpu.vector_store %arg6[%c0_255, %c5376_256], %448 {strides = array<i32>} : memref<2x6144xf32, #tpu.memory_space<vmem>>, vector<2x384xf32>,
    %c18_257 = arith.constant 18 : index
    %450 = memref.load %arg2[%c18_257] : memref<141xf32, #tpu.memory_space<smem>>
    %c0_258 = arith.constant 0 : index
    %c2688_259 = arith.constant 2688 : index
    %451 = vector.load %arg1[%c0_258, %c2688_259] : memref<2x7680xf32, #tpu.memory_space<vmem>>, vector<2x384xf32>
    %452 = vector.broadcast %450 : f32 to vector<2x384xf32>
    %453 = arith.mulf %452, %451 : vector<2x384xf32>
    %c19_260 = arith.constant 19 : index
    %454 = memref.load %arg2[%c19_260] : memref<141xf32, #tpu.memory_space<smem>>
    %c0_261 = arith.constant 0 : index
    %c3072_262 = arith.constant 3072 : index
    %455 = vector.load %arg1[%c0_261, %c3072_262] : memref<2x7680xf32, #tpu.memory_space<vmem>>, vector<2x384xf32>
    %456 = vector.broadcast %454 : f32 to vector<2x384xf32>
    %457 = arith.mulf %456, %455 : vector<2x384xf32>
    %458 = arith.addf %453, %457 : vector<2x384xf32>
    %c20_263 = arith.constant 20 : index
    %459 = memref.load %arg2[%c20_263] : memref<141xf32, #tpu.memory_space<smem>>
    %c0_264 = arith.constant 0 : index
    %c3456_265 = arith.constant 3456 : index
    %460 = vector.load %arg1[%c0_264, %c3456_265] : memref<2x7680xf32, #tpu.memory_space<vmem>>, vector<2x384xf32>
    %461 = vector.broadcast %459 : f32 to vector<2x384xf32>
    %462 = arith.mulf %461, %460 : vector<2x384xf32>
    %463 = arith.addf %458, %462 : vector<2x384xf32>
    %c21_266 = arith.constant 21 : index
    %464 = memref.load %arg2[%c21_266] : memref<141xf32, #tpu.memory_space<smem>>
    %c0_267 = arith.constant 0 : index
    %c6528_268 = arith.constant 6528 : index
    %465 = vector.load %arg1[%c0_267, %c6528_268] : memref<2x7680xf32, #tpu.memory_space<vmem>>, vector<2x384xf32>
    %466 = vector.broadcast %464 : f32 to vector<2x384xf32>
    %467 = arith.mulf %466, %465 : vector<2x384xf32>
    %468 = arith.addf %463, %467 : vector<2x384xf32>
    %c22_269 = arith.constant 22 : index
    %469 = memref.load %arg2[%c22_269] : memref<141xf32, #tpu.memory_space<smem>>
    %c0_270 = arith.constant 0 : index
    %c6912_271 = arith.constant 6912 : index
    %470 = vector.load %arg1[%c0_270, %c6912_271] : memref<2x7680xf32, #tpu.memory_space<vmem>>, vector<2x384xf32>
    %471 = vector.broadcast %469 : f32 to vector<2x384xf32>
    %472 = arith.mulf %471, %470 : vector<2x384xf32>
    %473 = arith.addf %468, %472 : vector<2x384xf32>
    %c23_272 = arith.constant 23 : index
    %474 = memref.load %arg2[%c23_272] : memref<141xf32, #tpu.memory_space<smem>>
    %c0_273 = arith.constant 0 : index
    %c7296_274 = arith.constant 7296 : index
    %475 = vector.load %arg1[%c0_273, %c7296_274] : memref<2x7680xf32, #tpu.memory_space<vmem>>, vector<2x384xf32>
    %476 = vector.broadcast %474 : f32 to vector<2x384xf32>
    %477 = arith.mulf %476, %475 : vector<2x384xf32>
    %478 = arith.addf %473, %477 : vector<2x384xf32>
    %c0_275 = arith.constant 0 : index
    %c5760_276 = arith.constant 5760 : index
    %479 = vector.load %arg6[%c0_275, %c5760_276] : memref<2x6144xf32, #tpu.memory_space<vmem>>, vector<2x384xf32>
    tpu.vector_store %arg6[%c0_275, %c5760_276], %478 {strides = array<i32>} : memref<2x6144xf32, #tpu.memory_space<vmem>>, vector<2x384xf32>,
    %c0_277 = arith.constant 0 : index
    %c0_278 = arith.constant 0 : index
    %480 = vector.load %arg6[%c0_277, %c0_278] : memref<2x6144xf32, #tpu.memory_space<vmem>>, vector<2x1536xf32>
    %481 = vector.shape_cast %480 : vector<2x1536xf32> to vector<1x2x1536xf32>
    %cst = arith.constant dense<0.000000e+00> : vector<1xf32>
    %482 = vector.multi_reduction <add>, %481, %cst [1, 2] : vector<1x2x1536xf32> to vector<1xf32>
    %483 = vector.shape_cast %482 : vector<1xf32> to vector<1x1x1xf32>
    %484 = vector.extract %483[0, 0, 0] : f32 from vector<1x1x1xf32>
    %cst_279 = arith.constant 3.25520843E-4 : f32
    %485 = arith.mulf %484, %cst_279 : f32
    %486 = vector.broadcast %485 : f32 to vector<2x1536xf32>
    %487 = arith.subf %480, %486 : vector<2x1536xf32>
    %488 = arith.mulf %487, %487 : vector<2x1536xf32>
    %489 = vector.shape_cast %488 : vector<2x1536xf32> to vector<1x2x1536xf32>
    %cst_280 = arith.constant dense<0.000000e+00> : vector<1xf32>
    %490 = vector.multi_reduction <add>, %489, %cst_280 [1, 2] : vector<1x2x1536xf32> to vector<1xf32>
    %491 = vector.shape_cast %490 : vector<1xf32> to vector<1x1x1xf32>
    %492 = vector.extract %491[0, 0, 0] : f32 from vector<1x1x1xf32>
    %cst_281 = arith.constant 3.25520843E-4 : f32
    %493 = arith.mulf %492, %cst_281 : f32
    %c120 = arith.constant 120 : index
    %494 = memref.load %arg2[%c120] : memref<141xf32, #tpu.memory_space<smem>>
    %cst_282 = arith.constant 9.99999974E-6 : f32
    %495 = arith.addf %493, %cst_282 : f32
    %496 = math.rsqrt %495 : f32
    %497 = arith.mulf %494, %496 : f32
    %498 = vector.broadcast %497 : f32 to vector<2x1536xf32>
    %499 = arith.mulf %487, %498 : vector<2x1536xf32>
    %c124 = arith.constant 124 : index
    %500 = memref.load %arg2[%c124] : memref<141xf32, #tpu.memory_space<smem>>
    %501 = vector.broadcast %500 : f32 to vector<2x1536xf32>
    %502 = arith.addf %499, %501 : vector<2x1536xf32>
    %cst_283 = arith.constant 0.000000e+00 : f32
    %503 = vector.broadcast %cst_283 : f32 to vector<2x1536xf32>
    %504 = arith.maximumf %502, %503 : vector<2x1536xf32>
    %c0_284 = arith.constant 0 : index
    %c0_285 = arith.constant 0 : index
    %505 = vector.load %arg6[%c0_284, %c0_285] : memref<2x6144xf32, #tpu.memory_space<vmem>>, vector<2x1536xf32>
    tpu.vector_store %arg6[%c0_284, %c0_285], %504 {strides = array<i32>} : memref<2x6144xf32, #tpu.memory_space<vmem>>, vector<2x1536xf32>,
    %c0_286 = arith.constant 0 : index
    %c1536_287 = arith.constant 1536 : index
    %506 = vector.load %arg6[%c0_286, %c1536_287] : memref<2x6144xf32, #tpu.memory_space<vmem>>, vector<2x1536xf32>
    %507 = vector.shape_cast %506 : vector<2x1536xf32> to vector<1x2x1536xf32>
    %cst_288 = arith.constant dense<0.000000e+00> : vector<1xf32>
    %508 = vector.multi_reduction <add>, %507, %cst_288 [1, 2] : vector<1x2x1536xf32> to vector<1xf32>
    %509 = vector.shape_cast %508 : vector<1xf32> to vector<1x1x1xf32>
    %510 = vector.extract %509[0, 0, 0] : f32 from vector<1x1x1xf32>
    %cst_289 = arith.constant 3.25520843E-4 : f32
    %511 = arith.mulf %510, %cst_289 : f32
    %512 = vector.broadcast %511 : f32 to vector<2x1536xf32>
    %513 = arith.subf %506, %512 : vector<2x1536xf32>
    %514 = arith.mulf %513, %513 : vector<2x1536xf32>
    %515 = vector.shape_cast %514 : vector<2x1536xf32> to vector<1x2x1536xf32>
    %cst_290 = arith.constant dense<0.000000e+00> : vector<1xf32>
    %516 = vector.multi_reduction <add>, %515, %cst_290 [1, 2] : vector<1x2x1536xf32> to vector<1xf32>
    %517 = vector.shape_cast %516 : vector<1xf32> to vector<1x1x1xf32>
    %518 = vector.extract %517[0, 0, 0] : f32 from vector<1x1x1xf32>
    %cst_291 = arith.constant 3.25520843E-4 : f32
    %519 = arith.mulf %518, %cst_291 : f32
    %c121 = arith.constant 121 : index
    %520 = memref.load %arg2[%c121] : memref<141xf32, #tpu.memory_space<smem>>
    %cst_292 = arith.constant 9.99999974E-6 : f32
    %521 = arith.addf %519, %cst_292 : f32
    %522 = math.rsqrt %521 : f32
    %523 = arith.mulf %520, %522 : f32
    %524 = vector.broadcast %523 : f32 to vector<2x1536xf32>
    %525 = arith.mulf %513, %524 : vector<2x1536xf32>
    %c125 = arith.constant 125 : index
    %526 = memref.load %arg2[%c125] : memref<141xf32, #tpu.memory_space<smem>>
    %527 = vector.broadcast %526 : f32 to vector<2x1536xf32>
    %528 = arith.addf %525, %527 : vector<2x1536xf32>
    %cst_293 = arith.constant 0.000000e+00 : f32
    %529 = vector.broadcast %cst_293 : f32 to vector<2x1536xf32>
    %530 = arith.maximumf %528, %529 : vector<2x1536xf32>
    %c0_294 = arith.constant 0 : index
    %c1536_295 = arith.constant 1536 : index
    %531 = vector.load %arg6[%c0_294, %c1536_295] : memref<2x6144xf32, #tpu.memory_space<vmem>>, vector<2x1536xf32>
    tpu.vector_store %arg6[%c0_294, %c1536_295], %530 {strides = array<i32>} : memref<2x6144xf32, #tpu.memory_space<vmem>>, vector<2x1536xf32>,
    %c0_296 = arith.constant 0 : index
    %c3072_297 = arith.constant 3072 : index
    %532 = vector.load %arg6[%c0_296, %c3072_297] : memref<2x6144xf32, #tpu.memory_space<vmem>>, vector<2x1536xf32>
    %533 = vector.shape_cast %532 : vector<2x1536xf32> to vector<1x2x1536xf32>
    %cst_298 = arith.constant dense<0.000000e+00> : vector<1xf32>
    %534 = vector.multi_reduction <add>, %533, %cst_298 [1, 2] : vector<1x2x1536xf32> to vector<1xf32>
    %535 = vector.shape_cast %534 : vector<1xf32> to vector<1x1x1xf32>
    %536 = vector.extract %535[0, 0, 0] : f32 from vector<1x1x1xf32>
    %cst_299 = arith.constant 3.25520843E-4 : f32
    %537 = arith.mulf %536, %cst_299 : f32
    %538 = vector.broadcast %537 : f32 to vector<2x1536xf32>
    %539 = arith.subf %532, %538 : vector<2x1536xf32>
    %540 = arith.mulf %539, %539 : vector<2x1536xf32>
    %541 = vector.shape_cast %540 : vector<2x1536xf32> to vector<1x2x1536xf32>
    %cst_300 = arith.constant dense<0.000000e+00> : vector<1xf32>
    %542 = vector.multi_reduction <add>, %541, %cst_300 [1, 2] : vector<1x2x1536xf32> to vector<1xf32>
    %543 = vector.shape_cast %542 : vector<1xf32> to vector<1x1x1xf32>
    %544 = vector.extract %543[0, 0, 0] : f32 from vector<1x1x1xf32>
    %cst_301 = arith.constant 3.25520843E-4 : f32
    %545 = arith.mulf %544, %cst_301 : f32
    %c122 = arith.constant 122 : index
    %546 = memref.load %arg2[%c122] : memref<141xf32, #tpu.memory_space<smem>>
    %cst_302 = arith.constant 9.99999974E-6 : f32
    %547 = arith.addf %545, %cst_302 : f32
    %548 = math.rsqrt %547 : f32
    %549 = arith.mulf %546, %548 : f32
    %550 = vector.broadcast %549 : f32 to vector<2x1536xf32>
    %551 = arith.mulf %539, %550 : vector<2x1536xf32>
    %c126 = arith.constant 126 : index
    %552 = memref.load %arg2[%c126] : memref<141xf32, #tpu.memory_space<smem>>
    %553 = vector.broadcast %552 : f32 to vector<2x1536xf32>
    %554 = arith.addf %551, %553 : vector<2x1536xf32>
    %cst_303 = arith.constant 0.000000e+00 : f32
    %555 = vector.broadcast %cst_303 : f32 to vector<2x1536xf32>
    %556 = arith.maximumf %554, %555 : vector<2x1536xf32>
    %c0_304 = arith.constant 0 : index
    %c3072_305 = arith.constant 3072 : index
    %557 = vector.load %arg6[%c0_304, %c3072_305] : memref<2x6144xf32, #tpu.memory_space<vmem>>, vector<2x1536xf32>
    tpu.vector_store %arg6[%c0_304, %c3072_305], %556 {strides = array<i32>} : memref<2x6144xf32, #tpu.memory_space<vmem>>, vector<2x1536xf32>,
    %c0_306 = arith.constant 0 : index
    %c4608_307 = arith.constant 4608 : index
    %558 = vector.load %arg6[%c0_306, %c4608_307] : memref<2x6144xf32, #tpu.memory_space<vmem>>, vector<2x1536xf32>
    %559 = vector.shape_cast %558 : vector<2x1536xf32> to vector<1x2x1536xf32>
    %cst_308 = arith.constant dense<0.000000e+00> : vector<1xf32>
    %560 = vector.multi_reduction <add>, %559, %cst_308 [1, 2] : vector<1x2x1536xf32> to vector<1xf32>
    %561 = vector.shape_cast %560 : vector<1xf32> to vector<1x1x1xf32>
    %562 = vector.extract %561[0, 0, 0] : f32 from vector<1x1x1xf32>
    %cst_309 = arith.constant 3.25520843E-4 : f32
    %563 = arith.mulf %562, %cst_309 : f32
    %564 = vector.broadcast %563 : f32 to vector<2x1536xf32>
    %565 = arith.subf %558, %564 : vector<2x1536xf32>
    %566 = arith.mulf %565, %565 : vector<2x1536xf32>
    %567 = vector.shape_cast %566 : vector<2x1536xf32> to vector<1x2x1536xf32>
    %cst_310 = arith.constant dense<0.000000e+00> : vector<1xf32>
    %568 = vector.multi_reduction <add>, %567, %cst_310 [1, 2] : vector<1x2x1536xf32> to vector<1xf32>
    %569 = vector.shape_cast %568 : vector<1xf32> to vector<1x1x1xf32>
    %570 = vector.extract %569[0, 0, 0] : f32 from vector<1x1x1xf32>
    %cst_311 = arith.constant 3.25520843E-4 : f32
    %571 = arith.mulf %570, %cst_311 : f32
    %c123 = arith.constant 123 : index
    %572 = memref.load %arg2[%c123] : memref<141xf32, #tpu.memory_space<smem>>
    %cst_312 = arith.constant 9.99999974E-6 : f32
    %573 = arith.addf %571, %cst_312 : f32
    %574 = math.rsqrt %573 : f32
    %575 = arith.mulf %572, %574 : f32
    %576 = vector.broadcast %575 : f32 to vector<2x1536xf32>
    %577 = arith.mulf %565, %576 : vector<2x1536xf32>
    %c127 = arith.constant 127 : index
    %578 = memref.load %arg2[%c127] : memref<141xf32, #tpu.memory_space<smem>>
    %579 = vector.broadcast %578 : f32 to vector<2x1536xf32>
    %580 = arith.addf %577, %579 : vector<2x1536xf32>
    %cst_313 = arith.constant 0.000000e+00 : f32
    %581 = vector.broadcast %cst_313 : f32 to vector<2x1536xf32>
    %582 = arith.maximumf %580, %581 : vector<2x1536xf32>
    %c0_314 = arith.constant 0 : index
    %c4608_315 = arith.constant 4608 : index
    %583 = vector.load %arg6[%c0_314, %c4608_315] : memref<2x6144xf32, #tpu.memory_space<vmem>>, vector<2x1536xf32>
    tpu.vector_store %arg6[%c0_314, %c4608_315], %582 {strides = array<i32>} : memref<2x6144xf32, #tpu.memory_space<vmem>>, vector<2x1536xf32>,
    %c0_316 = arith.constant 0 : index
    %c0_317 = arith.constant 0 : index
    %584 = vector.load %arg6[%c0_316, %c0_317] : memref<2x6144xf32, #tpu.memory_space<vmem>>, vector<2x384xf32>
    %c24 = arith.constant 24 : index
    %585 = memref.load %arg2[%c24] : memref<141xf32, #tpu.memory_space<smem>>
    %586 = vector.broadcast %585 : f32 to vector<2x384xf32>
    %587 = arith.mulf %586, %584 : vector<2x384xf32>
    %c40 = arith.constant 40 : index
    %588 = memref.load %arg2[%c40] : memref<141xf32, #tpu.memory_space<smem>>
    %589 = vector.broadcast %588 : f32 to vector<2x384xf32>
    %590 = arith.mulf %589, %584 : vector<2x384xf32>
    %c56 = arith.constant 56 : index
    %591 = memref.load %arg2[%c56] : memref<141xf32, #tpu.memory_space<smem>>
    %592 = vector.broadcast %591 : f32 to vector<2x384xf32>
    %593 = arith.mulf %592, %584 : vector<2x384xf32>
    %c72 = arith.constant 72 : index
    %594 = memref.load %arg2[%c72] : memref<141xf32, #tpu.memory_space<smem>>
    %595 = vector.broadcast %594 : f32 to vector<2x384xf32>
    %596 = arith.mulf %595, %584 : vector<2x384xf32>
    %c88 = arith.constant 88 : index
    %597 = memref.load %arg2[%c88] : memref<141xf32, #tpu.memory_space<smem>>
    %598 = vector.broadcast %597 : f32 to vector<2x384xf32>
    %599 = arith.mulf %598, %584 : vector<2x384xf32>
    %c104 = arith.constant 104 : index
    %600 = memref.load %arg2[%c104] : memref<141xf32, #tpu.memory_space<smem>>
    %601 = vector.broadcast %600 : f32 to vector<2x384xf32>
    %602 = arith.mulf %601, %584 : vector<2x384xf32>
    %c0_318 = arith.constant 0 : index
    %c384_319 = arith.constant 384 : index
    %603 = vector.load %arg6[%c0_318, %c384_319] : memref<2x6144xf32, #tpu.memory_space<vmem>>, vector<2x384xf32>
    %c25 = arith.constant 25 : index
    %604 = memref.load %arg2[%c25] : memref<141xf32, #tpu.memory_space<smem>>
    %605 = vector.broadcast %604 : f32 to vector<2x384xf32>
    %606 = arith.mulf %605, %603 : vector<2x384xf32>
    %607 = arith.addf %587, %606 : vector<2x384xf32>
    %c41 = arith.constant 41 : index
    %608 = memref.load %arg2[%c41] : memref<141xf32, #tpu.memory_space<smem>>
    %609 = vector.broadcast %608 : f32 to vector<2x384xf32>
    %610 = arith.mulf %609, %603 : vector<2x384xf32>
    %611 = arith.addf %590, %610 : vector<2x384xf32>
    %c57 = arith.constant 57 : index
    %612 = memref.load %arg2[%c57] : memref<141xf32, #tpu.memory_space<smem>>
    %613 = vector.broadcast %612 : f32 to vector<2x384xf32>
    %614 = arith.mulf %613, %603 : vector<2x384xf32>
    %615 = arith.addf %593, %614 : vector<2x384xf32>
    %c73 = arith.constant 73 : index
    %616 = memref.load %arg2[%c73] : memref<141xf32, #tpu.memory_space<smem>>
    %617 = vector.broadcast %616 : f32 to vector<2x384xf32>
    %618 = arith.mulf %617, %603 : vector<2x384xf32>
    %619 = arith.addf %596, %618 : vector<2x384xf32>
    %c89 = arith.constant 89 : index
    %620 = memref.load %arg2[%c89] : memref<141xf32, #tpu.memory_space<smem>>
    %621 = vector.broadcast %620 : f32 to vector<2x384xf32>
    %622 = arith.mulf %621, %603 : vector<2x384xf32>
    %623 = arith.addf %599, %622 : vector<2x384xf32>
    %c105 = arith.constant 105 : index
    %624 = memref.load %arg2[%c105] : memref<141xf32, #tpu.memory_space<smem>>
    %625 = vector.broadcast %624 : f32 to vector<2x384xf32>
    %626 = arith.mulf %625, %603 : vector<2x384xf32>
    %627 = arith.addf %602, %626 : vector<2x384xf32>
    %c0_320 = arith.constant 0 : index
    %c768_321 = arith.constant 768 : index
    %628 = vector.load %arg6[%c0_320, %c768_321] : memref<2x6144xf32, #tpu.memory_space<vmem>>, vector<2x384xf32>
    %c26 = arith.constant 26 : index
    %629 = memref.load %arg2[%c26] : memref<141xf32, #tpu.memory_space<smem>>
    %630 = vector.broadcast %629 : f32 to vector<2x384xf32>
    %631 = arith.mulf %630, %628 : vector<2x384xf32>
    %632 = arith.addf %607, %631 : vector<2x384xf32>
    %c42 = arith.constant 42 : index
    %633 = memref.load %arg2[%c42] : memref<141xf32, #tpu.memory_space<smem>>
    %634 = vector.broadcast %633 : f32 to vector<2x384xf32>
    %635 = arith.mulf %634, %628 : vector<2x384xf32>
    %636 = arith.addf %611, %635 : vector<2x384xf32>
    %c58 = arith.constant 58 : index
    %637 = memref.load %arg2[%c58] : memref<141xf32, #tpu.memory_space<smem>>
    %638 = vector.broadcast %637 : f32 to vector<2x384xf32>
    %639 = arith.mulf %638, %628 : vector<2x384xf32>
    %640 = arith.addf %615, %639 : vector<2x384xf32>
    %c74 = arith.constant 74 : index
    %641 = memref.load %arg2[%c74] : memref<141xf32, #tpu.memory_space<smem>>
    %642 = vector.broadcast %641 : f32 to vector<2x384xf32>
    %643 = arith.mulf %642, %628 : vector<2x384xf32>
    %644 = arith.addf %619, %643 : vector<2x384xf32>
    %c90 = arith.constant 90 : index
    %645 = memref.load %arg2[%c90] : memref<141xf32, #tpu.memory_space<smem>>
    %646 = vector.broadcast %645 : f32 to vector<2x384xf32>
    %647 = arith.mulf %646, %628 : vector<2x384xf32>
    %648 = arith.addf %623, %647 : vector<2x384xf32>
    %c106 = arith.constant 106 : index
    %649 = memref.load %arg2[%c106] : memref<141xf32, #tpu.memory_space<smem>>
    %650 = vector.broadcast %649 : f32 to vector<2x384xf32>
    %651 = arith.mulf %650, %628 : vector<2x384xf32>
    %652 = arith.addf %627, %651 : vector<2x384xf32>
    %c0_322 = arith.constant 0 : index
    %c1152_323 = arith.constant 1152 : index
    %653 = vector.load %arg6[%c0_322, %c1152_323] : memref<2x6144xf32, #tpu.memory_space<vmem>>, vector<2x384xf32>
    %c27 = arith.constant 27 : index
    %654 = memref.load %arg2[%c27] : memref<141xf32, #tpu.memory_space<smem>>
    %655 = vector.broadcast %654 : f32 to vector<2x384xf32>
    %656 = arith.mulf %655, %653 : vector<2x384xf32>
    %657 = arith.addf %632, %656 : vector<2x384xf32>
    %c43 = arith.constant 43 : index
    %658 = memref.load %arg2[%c43] : memref<141xf32, #tpu.memory_space<smem>>
    %659 = vector.broadcast %658 : f32 to vector<2x384xf32>
    %660 = arith.mulf %659, %653 : vector<2x384xf32>
    %661 = arith.addf %636, %660 : vector<2x384xf32>
    %c59 = arith.constant 59 : index
    %662 = memref.load %arg2[%c59] : memref<141xf32, #tpu.memory_space<smem>>
    %663 = vector.broadcast %662 : f32 to vector<2x384xf32>
    %664 = arith.mulf %663, %653 : vector<2x384xf32>
    %665 = arith.addf %640, %664 : vector<2x384xf32>
    %c75 = arith.constant 75 : index
    %666 = memref.load %arg2[%c75] : memref<141xf32, #tpu.memory_space<smem>>
    %667 = vector.broadcast %666 : f32 to vector<2x384xf32>
    %668 = arith.mulf %667, %653 : vector<2x384xf32>
    %669 = arith.addf %644, %668 : vector<2x384xf32>
    %c91 = arith.constant 91 : index
    %670 = memref.load %arg2[%c91] : memref<141xf32, #tpu.memory_space<smem>>
    %671 = vector.broadcast %670 : f32 to vector<2x384xf32>
    %672 = arith.mulf %671, %653 : vector<2x384xf32>
    %673 = arith.addf %648, %672 : vector<2x384xf32>
    %c107 = arith.constant 107 : index
    %674 = memref.load %arg2[%c107] : memref<141xf32, #tpu.memory_space<smem>>
    %675 = vector.broadcast %674 : f32 to vector<2x384xf32>
    %676 = arith.mulf %675, %653 : vector<2x384xf32>
    %677 = arith.addf %652, %676 : vector<2x384xf32>
    %c0_324 = arith.constant 0 : index
    %c1536_325 = arith.constant 1536 : index
    %678 = vector.load %arg6[%c0_324, %c1536_325] : memref<2x6144xf32, #tpu.memory_space<vmem>>, vector<2x384xf32>
    %c28 = arith.constant 28 : index
    %679 = memref.load %arg2[%c28] : memref<141xf32, #tpu.memory_space<smem>>
    %680 = vector.broadcast %679 : f32 to vector<2x384xf32>
    %681 = arith.mulf %680, %678 : vector<2x384xf32>
    %682 = arith.addf %657, %681 : vector<2x384xf32>
    %c44 = arith.constant 44 : index
    %683 = memref.load %arg2[%c44] : memref<141xf32, #tpu.memory_space<smem>>
    %684 = vector.broadcast %683 : f32 to vector<2x384xf32>
    %685 = arith.mulf %684, %678 : vector<2x384xf32>
    %686 = arith.addf %661, %685 : vector<2x384xf32>
    %c60 = arith.constant 60 : index
    %687 = memref.load %arg2[%c60] : memref<141xf32, #tpu.memory_space<smem>>
    %688 = vector.broadcast %687 : f32 to vector<2x384xf32>
    %689 = arith.mulf %688, %678 : vector<2x384xf32>
    %690 = arith.addf %665, %689 : vector<2x384xf32>
    %c76 = arith.constant 76 : index
    %691 = memref.load %arg2[%c76] : memref<141xf32, #tpu.memory_space<smem>>
    %692 = vector.broadcast %691 : f32 to vector<2x384xf32>
    %693 = arith.mulf %692, %678 : vector<2x384xf32>
    %694 = arith.addf %669, %693 : vector<2x384xf32>
    %c92 = arith.constant 92 : index
    %695 = memref.load %arg2[%c92] : memref<141xf32, #tpu.memory_space<smem>>
    %696 = vector.broadcast %695 : f32 to vector<2x384xf32>
    %697 = arith.mulf %696, %678 : vector<2x384xf32>
    %698 = arith.addf %673, %697 : vector<2x384xf32>
    %c108 = arith.constant 108 : index
    %699 = memref.load %arg2[%c108] : memref<141xf32, #tpu.memory_space<smem>>
    %700 = vector.broadcast %699 : f32 to vector<2x384xf32>
    %701 = arith.mulf %700, %678 : vector<2x384xf32>
    %702 = arith.addf %677, %701 : vector<2x384xf32>
    %c0_326 = arith.constant 0 : index
    %c1920_327 = arith.constant 1920 : index
    %703 = vector.load %arg6[%c0_326, %c1920_327] : memref<2x6144xf32, #tpu.memory_space<vmem>>, vector<2x384xf32>
    %c29 = arith.constant 29 : index
    %704 = memref.load %arg2[%c29] : memref<141xf32, #tpu.memory_space<smem>>
    %705 = vector.broadcast %704 : f32 to vector<2x384xf32>
    %706 = arith.mulf %705, %703 : vector<2x384xf32>
    %707 = arith.addf %682, %706 : vector<2x384xf32>
    %c45 = arith.constant 45 : index
    %708 = memref.load %arg2[%c45] : memref<141xf32, #tpu.memory_space<smem>>
    %709 = vector.broadcast %708 : f32 to vector<2x384xf32>
    %710 = arith.mulf %709, %703 : vector<2x384xf32>
    %711 = arith.addf %686, %710 : vector<2x384xf32>
    %c61 = arith.constant 61 : index
    %712 = memref.load %arg2[%c61] : memref<141xf32, #tpu.memory_space<smem>>
    %713 = vector.broadcast %712 : f32 to vector<2x384xf32>
    %714 = arith.mulf %713, %703 : vector<2x384xf32>
    %715 = arith.addf %690, %714 : vector<2x384xf32>
    %c77 = arith.constant 77 : index
    %716 = memref.load %arg2[%c77] : memref<141xf32, #tpu.memory_space<smem>>
    %717 = vector.broadcast %716 : f32 to vector<2x384xf32>
    %718 = arith.mulf %717, %703 : vector<2x384xf32>
    %719 = arith.addf %694, %718 : vector<2x384xf32>
    %c93 = arith.constant 93 : index
    %720 = memref.load %arg2[%c93] : memref<141xf32, #tpu.memory_space<smem>>
    %721 = vector.broadcast %720 : f32 to vector<2x384xf32>
    %722 = arith.mulf %721, %703 : vector<2x384xf32>
    %723 = arith.addf %698, %722 : vector<2x384xf32>
    %c109 = arith.constant 109 : index
    %724 = memref.load %arg2[%c109] : memref<141xf32, #tpu.memory_space<smem>>
    %725 = vector.broadcast %724 : f32 to vector<2x384xf32>
    %726 = arith.mulf %725, %703 : vector<2x384xf32>
    %727 = arith.addf %702, %726 : vector<2x384xf32>
    %c0_328 = arith.constant 0 : index
    %c2304_329 = arith.constant 2304 : index
    %728 = vector.load %arg6[%c0_328, %c2304_329] : memref<2x6144xf32, #tpu.memory_space<vmem>>, vector<2x384xf32>
    %c30 = arith.constant 30 : index
    %729 = memref.load %arg2[%c30] : memref<141xf32, #tpu.memory_space<smem>>
    %730 = vector.broadcast %729 : f32 to vector<2x384xf32>
    %731 = arith.mulf %730, %728 : vector<2x384xf32>
    %732 = arith.addf %707, %731 : vector<2x384xf32>
    %c46 = arith.constant 46 : index
    %733 = memref.load %arg2[%c46] : memref<141xf32, #tpu.memory_space<smem>>
    %734 = vector.broadcast %733 : f32 to vector<2x384xf32>
    %735 = arith.mulf %734, %728 : vector<2x384xf32>
    %736 = arith.addf %711, %735 : vector<2x384xf32>
    %c62 = arith.constant 62 : index
    %737 = memref.load %arg2[%c62] : memref<141xf32, #tpu.memory_space<smem>>
    %738 = vector.broadcast %737 : f32 to vector<2x384xf32>
    %739 = arith.mulf %738, %728 : vector<2x384xf32>
    %740 = arith.addf %715, %739 : vector<2x384xf32>
    %c78 = arith.constant 78 : index
    %741 = memref.load %arg2[%c78] : memref<141xf32, #tpu.memory_space<smem>>
    %742 = vector.broadcast %741 : f32 to vector<2x384xf32>
    %743 = arith.mulf %742, %728 : vector<2x384xf32>
    %744 = arith.addf %719, %743 : vector<2x384xf32>
    %c94 = arith.constant 94 : index
    %745 = memref.load %arg2[%c94] : memref<141xf32, #tpu.memory_space<smem>>
    %746 = vector.broadcast %745 : f32 to vector<2x384xf32>
    %747 = arith.mulf %746, %728 : vector<2x384xf32>
    %748 = arith.addf %723, %747 : vector<2x384xf32>
    %c110 = arith.constant 110 : index
    %749 = memref.load %arg2[%c110] : memref<141xf32, #tpu.memory_space<smem>>
    %750 = vector.broadcast %749 : f32 to vector<2x384xf32>
    %751 = arith.mulf %750, %728 : vector<2x384xf32>
    %752 = arith.addf %727, %751 : vector<2x384xf32>
    %c0_330 = arith.constant 0 : index
    %c2688_331 = arith.constant 2688 : index
    %753 = vector.load %arg6[%c0_330, %c2688_331] : memref<2x6144xf32, #tpu.memory_space<vmem>>, vector<2x384xf32>
    %c31 = arith.constant 31 : index
    %754 = memref.load %arg2[%c31] : memref<141xf32, #tpu.memory_space<smem>>
    %755 = vector.broadcast %754 : f32 to vector<2x384xf32>
    %756 = arith.mulf %755, %753 : vector<2x384xf32>
    %757 = arith.addf %732, %756 : vector<2x384xf32>
    %c47 = arith.constant 47 : index
    %758 = memref.load %arg2[%c47] : memref<141xf32, #tpu.memory_space<smem>>
    %759 = vector.broadcast %758 : f32 to vector<2x384xf32>
    %760 = arith.mulf %759, %753 : vector<2x384xf32>
    %761 = arith.addf %736, %760 : vector<2x384xf32>
    %c63 = arith.constant 63 : index
    %762 = memref.load %arg2[%c63] : memref<141xf32, #tpu.memory_space<smem>>
    %763 = vector.broadcast %762 : f32 to vector<2x384xf32>
    %764 = arith.mulf %763, %753 : vector<2x384xf32>
    %765 = arith.addf %740, %764 : vector<2x384xf32>
    %c79 = arith.constant 79 : index
    %766 = memref.load %arg2[%c79] : memref<141xf32, #tpu.memory_space<smem>>
    %767 = vector.broadcast %766 : f32 to vector<2x384xf32>
    %768 = arith.mulf %767, %753 : vector<2x384xf32>
    %769 = arith.addf %744, %768 : vector<2x384xf32>
    %c95 = arith.constant 95 : index
    %770 = memref.load %arg2[%c95] : memref<141xf32, #tpu.memory_space<smem>>
    %771 = vector.broadcast %770 : f32 to vector<2x384xf32>
    %772 = arith.mulf %771, %753 : vector<2x384xf32>
    %773 = arith.addf %748, %772 : vector<2x384xf32>
    %c111 = arith.constant 111 : index
    %774 = memref.load %arg2[%c111] : memref<141xf32, #tpu.memory_space<smem>>
    %775 = vector.broadcast %774 : f32 to vector<2x384xf32>
    %776 = arith.mulf %775, %753 : vector<2x384xf32>
    %777 = arith.addf %752, %776 : vector<2x384xf32>
    %c0_332 = arith.constant 0 : index
    %c3072_333 = arith.constant 3072 : index
    %778 = vector.load %arg6[%c0_332, %c3072_333] : memref<2x6144xf32, #tpu.memory_space<vmem>>, vector<2x384xf32>
    %c32 = arith.constant 32 : index
    %779 = memref.load %arg2[%c32] : memref<141xf32, #tpu.memory_space<smem>>
    %780 = vector.broadcast %779 : f32 to vector<2x384xf32>
    %781 = arith.mulf %780, %778 : vector<2x384xf32>
    %782 = arith.addf %757, %781 : vector<2x384xf32>
    %c48 = arith.constant 48 : index
    %783 = memref.load %arg2[%c48] : memref<141xf32, #tpu.memory_space<smem>>
    %784 = vector.broadcast %783 : f32 to vector<2x384xf32>
    %785 = arith.mulf %784, %778 : vector<2x384xf32>
    %786 = arith.addf %761, %785 : vector<2x384xf32>
    %c64 = arith.constant 64 : index
    %787 = memref.load %arg2[%c64] : memref<141xf32, #tpu.memory_space<smem>>
    %788 = vector.broadcast %787 : f32 to vector<2x384xf32>
    %789 = arith.mulf %788, %778 : vector<2x384xf32>
    %790 = arith.addf %765, %789 : vector<2x384xf32>
    %c80 = arith.constant 80 : index
    %791 = memref.load %arg2[%c80] : memref<141xf32, #tpu.memory_space<smem>>
    %792 = vector.broadcast %791 : f32 to vector<2x384xf32>
    %793 = arith.mulf %792, %778 : vector<2x384xf32>
    %794 = arith.addf %769, %793 : vector<2x384xf32>
    %c96 = arith.constant 96 : index
    %795 = memref.load %arg2[%c96] : memref<141xf32, #tpu.memory_space<smem>>
    %796 = vector.broadcast %795 : f32 to vector<2x384xf32>
    %797 = arith.mulf %796, %778 : vector<2x384xf32>
    %798 = arith.addf %773, %797 : vector<2x384xf32>
    %c112 = arith.constant 112 : index
    %799 = memref.load %arg2[%c112] : memref<141xf32, #tpu.memory_space<smem>>
    %800 = vector.broadcast %799 : f32 to vector<2x384xf32>
    %801 = arith.mulf %800, %778 : vector<2x384xf32>
    %802 = arith.addf %777, %801 : vector<2x384xf32>
    %c0_334 = arith.constant 0 : index
    %c3456_335 = arith.constant 3456 : index
    %803 = vector.load %arg6[%c0_334, %c3456_335] : memref<2x6144xf32, #tpu.memory_space<vmem>>, vector<2x384xf32>
    %c33 = arith.constant 33 : index
    %804 = memref.load %arg2[%c33] : memref<141xf32, #tpu.memory_space<smem>>
    %805 = vector.broadcast %804 : f32 to vector<2x384xf32>
    %806 = arith.mulf %805, %803 : vector<2x384xf32>
    %807 = arith.addf %782, %806 : vector<2x384xf32>
    %c49 = arith.constant 49 : index
    %808 = memref.load %arg2[%c49] : memref<141xf32, #tpu.memory_space<smem>>
    %809 = vector.broadcast %808 : f32 to vector<2x384xf32>
    %810 = arith.mulf %809, %803 : vector<2x384xf32>
    %811 = arith.addf %786, %810 : vector<2x384xf32>
    %c65 = arith.constant 65 : index
    %812 = memref.load %arg2[%c65] : memref<141xf32, #tpu.memory_space<smem>>
    %813 = vector.broadcast %812 : f32 to vector<2x384xf32>
    %814 = arith.mulf %813, %803 : vector<2x384xf32>
    %815 = arith.addf %790, %814 : vector<2x384xf32>
    %c81 = arith.constant 81 : index
    %816 = memref.load %arg2[%c81] : memref<141xf32, #tpu.memory_space<smem>>
    %817 = vector.broadcast %816 : f32 to vector<2x384xf32>
    %818 = arith.mulf %817, %803 : vector<2x384xf32>
    %819 = arith.addf %794, %818 : vector<2x384xf32>
    %c97 = arith.constant 97 : index
    %820 = memref.load %arg2[%c97] : memref<141xf32, #tpu.memory_space<smem>>
    %821 = vector.broadcast %820 : f32 to vector<2x384xf32>
    %822 = arith.mulf %821, %803 : vector<2x384xf32>
    %823 = arith.addf %798, %822 : vector<2x384xf32>
    %c113 = arith.constant 113 : index
    %824 = memref.load %arg2[%c113] : memref<141xf32, #tpu.memory_space<smem>>
    %825 = vector.broadcast %824 : f32 to vector<2x384xf32>
    %826 = arith.mulf %825, %803 : vector<2x384xf32>
    %827 = arith.addf %802, %826 : vector<2x384xf32>
    %c0_336 = arith.constant 0 : index
    %c3840_337 = arith.constant 3840 : index
    %828 = vector.load %arg6[%c0_336, %c3840_337] : memref<2x6144xf32, #tpu.memory_space<vmem>>, vector<2x384xf32>
    %c34 = arith.constant 34 : index
    %829 = memref.load %arg2[%c34] : memref<141xf32, #tpu.memory_space<smem>>
    %830 = vector.broadcast %829 : f32 to vector<2x384xf32>
    %831 = arith.mulf %830, %828 : vector<2x384xf32>
    %832 = arith.addf %807, %831 : vector<2x384xf32>
    %c50 = arith.constant 50 : index
    %833 = memref.load %arg2[%c50] : memref<141xf32, #tpu.memory_space<smem>>
    %834 = vector.broadcast %833 : f32 to vector<2x384xf32>
    %835 = arith.mulf %834, %828 : vector<2x384xf32>
    %836 = arith.addf %811, %835 : vector<2x384xf32>
    %c66 = arith.constant 66 : index
    %837 = memref.load %arg2[%c66] : memref<141xf32, #tpu.memory_space<smem>>
    %838 = vector.broadcast %837 : f32 to vector<2x384xf32>
    %839 = arith.mulf %838, %828 : vector<2x384xf32>
    %840 = arith.addf %815, %839 : vector<2x384xf32>
    %c82 = arith.constant 82 : index
    %841 = memref.load %arg2[%c82] : memref<141xf32, #tpu.memory_space<smem>>
    %842 = vector.broadcast %841 : f32 to vector<2x384xf32>
    %843 = arith.mulf %842, %828 : vector<2x384xf32>
    %844 = arith.addf %819, %843 : vector<2x384xf32>
    %c98 = arith.constant 98 : index
    %845 = memref.load %arg2[%c98] : memref<141xf32, #tpu.memory_space<smem>>
    %846 = vector.broadcast %845 : f32 to vector<2x384xf32>
    %847 = arith.mulf %846, %828 : vector<2x384xf32>
    %848 = arith.addf %823, %847 : vector<2x384xf32>
    %c114 = arith.constant 114 : index
    %849 = memref.load %arg2[%c114] : memref<141xf32, #tpu.memory_space<smem>>
    %850 = vector.broadcast %849 : f32 to vector<2x384xf32>
    %851 = arith.mulf %850, %828 : vector<2x384xf32>
    %852 = arith.addf %827, %851 : vector<2x384xf32>
    %c0_338 = arith.constant 0 : index
    %c4224_339 = arith.constant 4224 : index
    %853 = vector.load %arg6[%c0_338, %c4224_339] : memref<2x6144xf32, #tpu.memory_space<vmem>>, vector<2x384xf32>
    %c35 = arith.constant 35 : index
    %854 = memref.load %arg2[%c35] : memref<141xf32, #tpu.memory_space<smem>>
    %855 = vector.broadcast %854 : f32 to vector<2x384xf32>
    %856 = arith.mulf %855, %853 : vector<2x384xf32>
    %857 = arith.addf %832, %856 : vector<2x384xf32>
    %c51 = arith.constant 51 : index
    %858 = memref.load %arg2[%c51] : memref<141xf32, #tpu.memory_space<smem>>
    %859 = vector.broadcast %858 : f32 to vector<2x384xf32>
    %860 = arith.mulf %859, %853 : vector<2x384xf32>
    %861 = arith.addf %836, %860 : vector<2x384xf32>
    %c67 = arith.constant 67 : index
    %862 = memref.load %arg2[%c67] : memref<141xf32, #tpu.memory_space<smem>>
    %863 = vector.broadcast %862 : f32 to vector<2x384xf32>
    %864 = arith.mulf %863, %853 : vector<2x384xf32>
    %865 = arith.addf %840, %864 : vector<2x384xf32>
    %c83 = arith.constant 83 : index
    %866 = memref.load %arg2[%c83] : memref<141xf32, #tpu.memory_space<smem>>
    %867 = vector.broadcast %866 : f32 to vector<2x384xf32>
    %868 = arith.mulf %867, %853 : vector<2x384xf32>
    %869 = arith.addf %844, %868 : vector<2x384xf32>
    %c99 = arith.constant 99 : index
    %870 = memref.load %arg2[%c99] : memref<141xf32, #tpu.memory_space<smem>>
    %871 = vector.broadcast %870 : f32 to vector<2x384xf32>
    %872 = arith.mulf %871, %853 : vector<2x384xf32>
    %873 = arith.addf %848, %872 : vector<2x384xf32>
    %c115 = arith.constant 115 : index
    %874 = memref.load %arg2[%c115] : memref<141xf32, #tpu.memory_space<smem>>
    %875 = vector.broadcast %874 : f32 to vector<2x384xf32>
    %876 = arith.mulf %875, %853 : vector<2x384xf32>
    %877 = arith.addf %852, %876 : vector<2x384xf32>
    %c0_340 = arith.constant 0 : index
    %c4608_341 = arith.constant 4608 : index
    %878 = vector.load %arg6[%c0_340, %c4608_341] : memref<2x6144xf32, #tpu.memory_space<vmem>>, vector<2x384xf32>
    %c36 = arith.constant 36 : index
    %879 = memref.load %arg2[%c36] : memref<141xf32, #tpu.memory_space<smem>>
    %880 = vector.broadcast %879 : f32 to vector<2x384xf32>
    %881 = arith.mulf %880, %878 : vector<2x384xf32>
    %882 = arith.addf %857, %881 : vector<2x384xf32>
    %c52 = arith.constant 52 : index
    %883 = memref.load %arg2[%c52] : memref<141xf32, #tpu.memory_space<smem>>
    %884 = vector.broadcast %883 : f32 to vector<2x384xf32>
    %885 = arith.mulf %884, %878 : vector<2x384xf32>
    %886 = arith.addf %861, %885 : vector<2x384xf32>
    %c68 = arith.constant 68 : index
    %887 = memref.load %arg2[%c68] : memref<141xf32, #tpu.memory_space<smem>>
    %888 = vector.broadcast %887 : f32 to vector<2x384xf32>
    %889 = arith.mulf %888, %878 : vector<2x384xf32>
    %890 = arith.addf %865, %889 : vector<2x384xf32>
    %c84 = arith.constant 84 : index
    %891 = memref.load %arg2[%c84] : memref<141xf32, #tpu.memory_space<smem>>
    %892 = vector.broadcast %891 : f32 to vector<2x384xf32>
    %893 = arith.mulf %892, %878 : vector<2x384xf32>
    %894 = arith.addf %869, %893 : vector<2x384xf32>
    %c100 = arith.constant 100 : index
    %895 = memref.load %arg2[%c100] : memref<141xf32, #tpu.memory_space<smem>>
    %896 = vector.broadcast %895 : f32 to vector<2x384xf32>
    %897 = arith.mulf %896, %878 : vector<2x384xf32>
    %898 = arith.addf %873, %897 : vector<2x384xf32>
    %c116 = arith.constant 116 : index
    %899 = memref.load %arg2[%c116] : memref<141xf32, #tpu.memory_space<smem>>
    %900 = vector.broadcast %899 : f32 to vector<2x384xf32>
    %901 = arith.mulf %900, %878 : vector<2x384xf32>
    %902 = arith.addf %877, %901 : vector<2x384xf32>
    %c0_342 = arith.constant 0 : index
    %c4992_343 = arith.constant 4992 : index
    %903 = vector.load %arg6[%c0_342, %c4992_343] : memref<2x6144xf32, #tpu.memory_space<vmem>>, vector<2x384xf32>
    %c37 = arith.constant 37 : index
    %904 = memref.load %arg2[%c37] : memref<141xf32, #tpu.memory_space<smem>>
    %905 = vector.broadcast %904 : f32 to vector<2x384xf32>
    %906 = arith.mulf %905, %903 : vector<2x384xf32>
    %907 = arith.addf %882, %906 : vector<2x384xf32>
    %c53 = arith.constant 53 : index
    %908 = memref.load %arg2[%c53] : memref<141xf32, #tpu.memory_space<smem>>
    %909 = vector.broadcast %908 : f32 to vector<2x384xf32>
    %910 = arith.mulf %909, %903 : vector<2x384xf32>
    %911 = arith.addf %886, %910 : vector<2x384xf32>
    %c69 = arith.constant 69 : index
    %912 = memref.load %arg2[%c69] : memref<141xf32, #tpu.memory_space<smem>>
    %913 = vector.broadcast %912 : f32 to vector<2x384xf32>
    %914 = arith.mulf %913, %903 : vector<2x384xf32>
    %915 = arith.addf %890, %914 : vector<2x384xf32>
    %c85 = arith.constant 85 : index
    %916 = memref.load %arg2[%c85] : memref<141xf32, #tpu.memory_space<smem>>
    %917 = vector.broadcast %916 : f32 to vector<2x384xf32>
    %918 = arith.mulf %917, %903 : vector<2x384xf32>
    %919 = arith.addf %894, %918 : vector<2x384xf32>
    %c101 = arith.constant 101 : index
    %920 = memref.load %arg2[%c101] : memref<141xf32, #tpu.memory_space<smem>>
    %921 = vector.broadcast %920 : f32 to vector<2x384xf32>
    %922 = arith.mulf %921, %903 : vector<2x384xf32>
    %923 = arith.addf %898, %922 : vector<2x384xf32>
    %c117 = arith.constant 117 : index
    %924 = memref.load %arg2[%c117] : memref<141xf32, #tpu.memory_space<smem>>
    %925 = vector.broadcast %924 : f32 to vector<2x384xf32>
    %926 = arith.mulf %925, %903 : vector<2x384xf32>
    %927 = arith.addf %902, %926 : vector<2x384xf32>
    %c0_344 = arith.constant 0 : index
    %c5376_345 = arith.constant 5376 : index
    %928 = vector.load %arg6[%c0_344, %c5376_345] : memref<2x6144xf32, #tpu.memory_space<vmem>>, vector<2x384xf32>
    %c38 = arith.constant 38 : index
    %929 = memref.load %arg2[%c38] : memref<141xf32, #tpu.memory_space<smem>>
    %930 = vector.broadcast %929 : f32 to vector<2x384xf32>
    %931 = arith.mulf %930, %928 : vector<2x384xf32>
    %932 = arith.addf %907, %931 : vector<2x384xf32>
    %c54 = arith.constant 54 : index
    %933 = memref.load %arg2[%c54] : memref<141xf32, #tpu.memory_space<smem>>
    %934 = vector.broadcast %933 : f32 to vector<2x384xf32>
    %935 = arith.mulf %934, %928 : vector<2x384xf32>
    %936 = arith.addf %911, %935 : vector<2x384xf32>
    %c70 = arith.constant 70 : index
    %937 = memref.load %arg2[%c70] : memref<141xf32, #tpu.memory_space<smem>>
    %938 = vector.broadcast %937 : f32 to vector<2x384xf32>
    %939 = arith.mulf %938, %928 : vector<2x384xf32>
    %940 = arith.addf %915, %939 : vector<2x384xf32>
    %c86 = arith.constant 86 : index
    %941 = memref.load %arg2[%c86] : memref<141xf32, #tpu.memory_space<smem>>
    %942 = vector.broadcast %941 : f32 to vector<2x384xf32>
    %943 = arith.mulf %942, %928 : vector<2x384xf32>
    %944 = arith.addf %919, %943 : vector<2x384xf32>
    %c102 = arith.constant 102 : index
    %945 = memref.load %arg2[%c102] : memref<141xf32, #tpu.memory_space<smem>>
    %946 = vector.broadcast %945 : f32 to vector<2x384xf32>
    %947 = arith.mulf %946, %928 : vector<2x384xf32>
    %948 = arith.addf %923, %947 : vector<2x384xf32>
    %c118 = arith.constant 118 : index
    %949 = memref.load %arg2[%c118] : memref<141xf32, #tpu.memory_space<smem>>
    %950 = vector.broadcast %949 : f32 to vector<2x384xf32>
    %951 = arith.mulf %950, %928 : vector<2x384xf32>
    %952 = arith.addf %927, %951 : vector<2x384xf32>
    %c0_346 = arith.constant 0 : index
    %c5760_347 = arith.constant 5760 : index
    %953 = vector.load %arg6[%c0_346, %c5760_347] : memref<2x6144xf32, #tpu.memory_space<vmem>>, vector<2x384xf32>
    %c39 = arith.constant 39 : index
    %954 = memref.load %arg2[%c39] : memref<141xf32, #tpu.memory_space<smem>>
    %955 = vector.broadcast %954 : f32 to vector<2x384xf32>
    %956 = arith.mulf %955, %953 : vector<2x384xf32>
    %957 = arith.addf %932, %956 : vector<2x384xf32>
    %c55 = arith.constant 55 : index
    %958 = memref.load %arg2[%c55] : memref<141xf32, #tpu.memory_space<smem>>
    %959 = vector.broadcast %958 : f32 to vector<2x384xf32>
    %960 = arith.mulf %959, %953 : vector<2x384xf32>
    %961 = arith.addf %936, %960 : vector<2x384xf32>
    %c71 = arith.constant 71 : index
    %962 = memref.load %arg2[%c71] : memref<141xf32, #tpu.memory_space<smem>>
    %963 = vector.broadcast %962 : f32 to vector<2x384xf32>
    %964 = arith.mulf %963, %953 : vector<2x384xf32>
    %965 = arith.addf %940, %964 : vector<2x384xf32>
    %c87 = arith.constant 87 : index
    %966 = memref.load %arg2[%c87] : memref<141xf32, #tpu.memory_space<smem>>
    %967 = vector.broadcast %966 : f32 to vector<2x384xf32>
    %968 = arith.mulf %967, %953 : vector<2x384xf32>
    %969 = arith.addf %944, %968 : vector<2x384xf32>
    %c103 = arith.constant 103 : index
    %970 = memref.load %arg2[%c103] : memref<141xf32, #tpu.memory_space<smem>>
    %971 = vector.broadcast %970 : f32 to vector<2x384xf32>
    %972 = arith.mulf %971, %953 : vector<2x384xf32>
    %973 = arith.addf %948, %972 : vector<2x384xf32>
    %c119 = arith.constant 119 : index
    %974 = memref.load %arg2[%c119] : memref<141xf32, #tpu.memory_space<smem>>
    %975 = vector.broadcast %974 : f32 to vector<2x384xf32>
    %976 = arith.mulf %975, %953 : vector<2x384xf32>
    %977 = arith.addf %952, %976 : vector<2x384xf32>
    %978 = vector.shape_cast %957 : vector<2x384xf32> to vector<1x2x384xf32>
    %cst_348 = arith.constant dense<0.000000e+00> : vector<1xf32>
    %979 = vector.multi_reduction <add>, %978, %cst_348 [1, 2] : vector<1x2x384xf32> to vector<1xf32>
    %980 = vector.shape_cast %979 : vector<1xf32> to vector<1x1x1xf32>
    %981 = vector.extract %980[0, 0, 0] : f32 from vector<1x1x1xf32>
    %cst_349 = arith.constant 0.00130208337 : f32
    %982 = arith.mulf %981, %cst_349 : f32
    %983 = vector.broadcast %982 : f32 to vector<2x384xf32>
    %984 = arith.subf %957, %983 : vector<2x384xf32>
    %985 = arith.mulf %984, %984 : vector<2x384xf32>
    %986 = vector.shape_cast %985 : vector<2x384xf32> to vector<1x2x384xf32>
    %cst_350 = arith.constant dense<0.000000e+00> : vector<1xf32>
    %987 = vector.multi_reduction <add>, %986, %cst_350 [1, 2] : vector<1x2x384xf32> to vector<1xf32>
    %988 = vector.shape_cast %987 : vector<1xf32> to vector<1x1x1xf32>
    %989 = vector.extract %988[0, 0, 0] : f32 from vector<1x1x1xf32>
    %cst_351 = arith.constant 0.00130208337 : f32
    %990 = arith.mulf %989, %cst_351 : f32
    %c128 = arith.constant 128 : index
    %991 = memref.load %arg2[%c128] : memref<141xf32, #tpu.memory_space<smem>>
    %cst_352 = arith.constant 9.99999974E-6 : f32
    %992 = arith.addf %990, %cst_352 : f32
    %993 = math.rsqrt %992 : f32
    %994 = arith.mulf %991, %993 : f32
    %995 = vector.broadcast %994 : f32 to vector<2x384xf32>
    %996 = arith.mulf %984, %995 : vector<2x384xf32>
    %c134 = arith.constant 134 : index
    %997 = memref.load %arg2[%c134] : memref<141xf32, #tpu.memory_space<smem>>
    %998 = vector.broadcast %997 : f32 to vector<2x384xf32>
    %999 = arith.addf %996, %998 : vector<2x384xf32>
    %cst_353 = arith.constant 0.000000e+00 : f32
    %1000 = vector.broadcast %cst_353 : f32 to vector<2x384xf32>
    %1001 = arith.maximumf %999, %1000 : vector<2x384xf32>
    %1002 = vector.shape_cast %961 : vector<2x384xf32> to vector<1x2x384xf32>
    %cst_354 = arith.constant dense<0.000000e+00> : vector<1xf32>
    %1003 = vector.multi_reduction <add>, %1002, %cst_354 [1, 2] : vector<1x2x384xf32> to vector<1xf32>
    %1004 = vector.shape_cast %1003 : vector<1xf32> to vector<1x1x1xf32>
    %1005 = vector.extract %1004[0, 0, 0] : f32 from vector<1x1x1xf32>
    %cst_355 = arith.constant 0.00130208337 : f32
    %1006 = arith.mulf %1005, %cst_355 : f32
    %1007 = vector.broadcast %1006 : f32 to vector<2x384xf32>
    %1008 = arith.subf %961, %1007 : vector<2x384xf32>
    %1009 = arith.mulf %1008, %1008 : vector<2x384xf32>
    %1010 = vector.shape_cast %1009 : vector<2x384xf32> to vector<1x2x384xf32>
    %cst_356 = arith.constant dense<0.000000e+00> : vector<1xf32>
    %1011 = vector.multi_reduction <add>, %1010, %cst_356 [1, 2] : vector<1x2x384xf32> to vector<1xf32>
    %1012 = vector.shape_cast %1011 : vector<1xf32> to vector<1x1x1xf32>
    %1013 = vector.extract %1012[0, 0, 0] : f32 from vector<1x1x1xf32>
    %cst_357 = arith.constant 0.00130208337 : f32
    %1014 = arith.mulf %1013, %cst_357 : f32
    %c129 = arith.constant 129 : index
    %1015 = memref.load %arg2[%c129] : memref<141xf32, #tpu.memory_space<smem>>
    %cst_358 = arith.constant 9.99999974E-6 : f32
    %1016 = arith.addf %1014, %cst_358 : f32
    %1017 = math.rsqrt %1016 : f32
    %1018 = arith.mulf %1015, %1017 : f32
    %1019 = vector.broadcast %1018 : f32 to vector<2x384xf32>
    %1020 = arith.mulf %1008, %1019 : vector<2x384xf32>
    %c135 = arith.constant 135 : index
    %1021 = memref.load %arg2[%c135] : memref<141xf32, #tpu.memory_space<smem>>
    %1022 = vector.broadcast %1021 : f32 to vector<2x384xf32>
    %1023 = arith.addf %1020, %1022 : vector<2x384xf32>
    %cst_359 = arith.constant 0.000000e+00 : f32
    %1024 = vector.broadcast %cst_359 : f32 to vector<2x384xf32>
    %1025 = arith.maximumf %1023, %1024 : vector<2x384xf32>
    %1026 = vector.shape_cast %965 : vector<2x384xf32> to vector<1x2x384xf32>
    %cst_360 = arith.constant dense<0.000000e+00> : vector<1xf32>
    %1027 = vector.multi_reduction <add>, %1026, %cst_360 [1, 2] : vector<1x2x384xf32> to vector<1xf32>
    %1028 = vector.shape_cast %1027 : vector<1xf32> to vector<1x1x1xf32>
    %1029 = vector.extract %1028[0, 0, 0] : f32 from vector<1x1x1xf32>
    %cst_361 = arith.constant 0.00130208337 : f32
    %1030 = arith.mulf %1029, %cst_361 : f32
    %1031 = vector.broadcast %1030 : f32 to vector<2x384xf32>
    %1032 = arith.subf %965, %1031 : vector<2x384xf32>
    %1033 = arith.mulf %1032, %1032 : vector<2x384xf32>
    %1034 = vector.shape_cast %1033 : vector<2x384xf32> to vector<1x2x384xf32>
    %cst_362 = arith.constant dense<0.000000e+00> : vector<1xf32>
    %1035 = vector.multi_reduction <add>, %1034, %cst_362 [1, 2] : vector<1x2x384xf32> to vector<1xf32>
    %1036 = vector.shape_cast %1035 : vector<1xf32> to vector<1x1x1xf32>
    %1037 = vector.extract %1036[0, 0, 0] : f32 from vector<1x1x1xf32>
    %cst_363 = arith.constant 0.00130208337 : f32
    %1038 = arith.mulf %1037, %cst_363 : f32
    %c130 = arith.constant 130 : index
    %1039 = memref.load %arg2[%c130] : memref<141xf32, #tpu.memory_space<smem>>
    %cst_364 = arith.constant 9.99999974E-6 : f32
    %1040 = arith.addf %1038, %cst_364 : f32
    %1041 = math.rsqrt %1040 : f32
    %1042 = arith.mulf %1039, %1041 : f32
    %1043 = vector.broadcast %1042 : f32 to vector<2x384xf32>
    %1044 = arith.mulf %1032, %1043 : vector<2x384xf32>
    %c136 = arith.constant 136 : index
    %1045 = memref.load %arg2[%c136] : memref<141xf32, #tpu.memory_space<smem>>
    %1046 = vector.broadcast %1045 : f32 to vector<2x384xf32>
    %1047 = arith.addf %1044, %1046 : vector<2x384xf32>
    %cst_365 = arith.constant 0.000000e+00 : f32
    %1048 = vector.broadcast %cst_365 : f32 to vector<2x384xf32>
    %1049 = arith.maximumf %1047, %1048 : vector<2x384xf32>
    %1050 = vector.shape_cast %969 : vector<2x384xf32> to vector<1x2x384xf32>
    %cst_366 = arith.constant dense<0.000000e+00> : vector<1xf32>
    %1051 = vector.multi_reduction <add>, %1050, %cst_366 [1, 2] : vector<1x2x384xf32> to vector<1xf32>
    %1052 = vector.shape_cast %1051 : vector<1xf32> to vector<1x1x1xf32>
    %1053 = vector.extract %1052[0, 0, 0] : f32 from vector<1x1x1xf32>
    %cst_367 = arith.constant 0.00130208337 : f32
    %1054 = arith.mulf %1053, %cst_367 : f32
    %1055 = vector.broadcast %1054 : f32 to vector<2x384xf32>
    %1056 = arith.subf %969, %1055 : vector<2x384xf32>
    %1057 = arith.mulf %1056, %1056 : vector<2x384xf32>
    %1058 = vector.shape_cast %1057 : vector<2x384xf32> to vector<1x2x384xf32>
    %cst_368 = arith.constant dense<0.000000e+00> : vector<1xf32>
    %1059 = vector.multi_reduction <add>, %1058, %cst_368 [1, 2] : vector<1x2x384xf32> to vector<1xf32>
    %1060 = vector.shape_cast %1059 : vector<1xf32> to vector<1x1x1xf32>
    %1061 = vector.extract %1060[0, 0, 0] : f32 from vector<1x1x1xf32>
    %cst_369 = arith.constant 0.00130208337 : f32
    %1062 = arith.mulf %1061, %cst_369 : f32
    %c131 = arith.constant 131 : index
    %1063 = memref.load %arg2[%c131] : memref<141xf32, #tpu.memory_space<smem>>
    %cst_370 = arith.constant 9.99999974E-6 : f32
    %1064 = arith.addf %1062, %cst_370 : f32
    %1065 = math.rsqrt %1064 : f32
    %1066 = arith.mulf %1063, %1065 : f32
    %1067 = vector.broadcast %1066 : f32 to vector<2x384xf32>
    %1068 = arith.mulf %1056, %1067 : vector<2x384xf32>
    %c137 = arith.constant 137 : index
    %1069 = memref.load %arg2[%c137] : memref<141xf32, #tpu.memory_space<smem>>
    %1070 = vector.broadcast %1069 : f32 to vector<2x384xf32>
    %1071 = arith.addf %1068, %1070 : vector<2x384xf32>
    %cst_371 = arith.constant 0.000000e+00 : f32
    %1072 = vector.broadcast %cst_371 : f32 to vector<2x384xf32>
    %1073 = arith.maximumf %1071, %1072 : vector<2x384xf32>
    %1074 = vector.shape_cast %973 : vector<2x384xf32> to vector<1x2x384xf32>
    %cst_372 = arith.constant dense<0.000000e+00> : vector<1xf32>
    %1075 = vector.multi_reduction <add>, %1074, %cst_372 [1, 2] : vector<1x2x384xf32> to vector<1xf32>
    %1076 = vector.shape_cast %1075 : vector<1xf32> to vector<1x1x1xf32>
    %1077 = vector.extract %1076[0, 0, 0] : f32 from vector<1x1x1xf32>
    %cst_373 = arith.constant 0.00130208337 : f32
    %1078 = arith.mulf %1077, %cst_373 : f32
    %1079 = vector.broadcast %1078 : f32 to vector<2x384xf32>
    %1080 = arith.subf %973, %1079 : vector<2x384xf32>
    %1081 = arith.mulf %1080, %1080 : vector<2x384xf32>
    %1082 = vector.shape_cast %1081 : vector<2x384xf32> to vector<1x2x384xf32>
    %cst_374 = arith.constant dense<0.000000e+00> : vector<1xf32>
    %1083 = vector.multi_reduction <add>, %1082, %cst_374 [1, 2] : vector<1x2x384xf32> to vector<1xf32>
    %1084 = vector.shape_cast %1083 : vector<1xf32> to vector<1x1x1xf32>
    %1085 = vector.extract %1084[0, 0, 0] : f32 from vector<1x1x1xf32>
    %cst_375 = arith.constant 0.00130208337 : f32
    %1086 = arith.mulf %1085, %cst_375 : f32
    %c132 = arith.constant 132 : index
    %1087 = memref.load %arg2[%c132] : memref<141xf32, #tpu.memory_space<smem>>
    %cst_376 = arith.constant 9.99999974E-6 : f32
    %1088 = arith.addf %1086, %cst_376 : f32
    %1089 = math.rsqrt %1088 : f32
    %1090 = arith.mulf %1087, %1089 : f32
    %1091 = vector.broadcast %1090 : f32 to vector<2x384xf32>
    %1092 = arith.mulf %1080, %1091 : vector<2x384xf32>
    %c138 = arith.constant 138 : index
    %1093 = memref.load %arg2[%c138] : memref<141xf32, #tpu.memory_space<smem>>
    %1094 = vector.broadcast %1093 : f32 to vector<2x384xf32>
    %1095 = arith.addf %1092, %1094 : vector<2x384xf32>
    %cst_377 = arith.constant 0.000000e+00 : f32
    %1096 = vector.broadcast %cst_377 : f32 to vector<2x384xf32>
    %1097 = arith.maximumf %1095, %1096 : vector<2x384xf32>
    %1098 = vector.shape_cast %977 : vector<2x384xf32> to vector<1x2x384xf32>
    %cst_378 = arith.constant dense<0.000000e+00> : vector<1xf32>
    %1099 = vector.multi_reduction <add>, %1098, %cst_378 [1, 2] : vector<1x2x384xf32> to vector<1xf32>
    %1100 = vector.shape_cast %1099 : vector<1xf32> to vector<1x1x1xf32>
    %1101 = vector.extract %1100[0, 0, 0] : f32 from vector<1x1x1xf32>
    %cst_379 = arith.constant 0.00130208337 : f32
    %1102 = arith.mulf %1101, %cst_379 : f32
    %1103 = vector.broadcast %1102 : f32 to vector<2x384xf32>
    %1104 = arith.subf %977, %1103 : vector<2x384xf32>
    %1105 = arith.mulf %1104, %1104 : vector<2x384xf32>
    %1106 = vector.shape_cast %1105 : vector<2x384xf32> to vector<1x2x384xf32>
    %cst_380 = arith.constant dense<0.000000e+00> : vector<1xf32>
    %1107 = vector.multi_reduction <add>, %1106, %cst_380 [1, 2] : vector<1x2x384xf32> to vector<1xf32>
    %1108 = vector.shape_cast %1107 : vector<1xf32> to vector<1x1x1xf32>
    %1109 = vector.extract %1108[0, 0, 0] : f32 from vector<1x1x1xf32>
    %cst_381 = arith.constant 0.00130208337 : f32
    %1110 = arith.mulf %1109, %cst_381 : f32
    %c133 = arith.constant 133 : index
    %1111 = memref.load %arg2[%c133] : memref<141xf32, #tpu.memory_space<smem>>
    %cst_382 = arith.constant 9.99999974E-6 : f32
    %1112 = arith.addf %1110, %cst_382 : f32
    %1113 = math.rsqrt %1112 : f32
    %1114 = arith.mulf %1111, %1113 : f32
    %1115 = vector.broadcast %1114 : f32 to vector<2x384xf32>
    %1116 = arith.mulf %1104, %1115 : vector<2x384xf32>
    %c139 = arith.constant 139 : index
    %1117 = memref.load %arg2[%c139] : memref<141xf32, #tpu.memory_space<smem>>
    %1118 = vector.broadcast %1117 : f32 to vector<2x384xf32>
    %1119 = arith.addf %1116, %1118 : vector<2x384xf32>
    %cst_383 = arith.constant 0.000000e+00 : f32
    %1120 = vector.broadcast %cst_383 : f32 to vector<2x384xf32>
    %1121 = arith.maximumf %1119, %1120 : vector<2x384xf32>
    %1122 = tpu.concatenate %1001, %1025, %1049, %1073, %1097, %1121 in 1 : vector<2x384xf32>, vector<2x384xf32>, vector<2x384xf32>, vector<2x384xf32>, vector<2x384xf32>, vector<2x384xf32> -> vector<2x2304xf32>
    %c140 = arith.constant 140 : index
    %1123 = memref.load %arg2[%c140] : memref<141xf32, #tpu.memory_space<smem>>
    tpu.wait_dma2 semaphore(%arg8 : memref<!tpu.dma_semaphore, #tpu.memory_space<semaphore_mem>>) src(%arg4 : memref<2304x128xbf16, #tpu.memory_space<any>>) dst(%arg7 : memref<2304x128xbf16, #tpu.memory_space<vmem>>)
    %1124 = arith.truncf %1122 : vector<2x2304xf32> to vector<2x2304xbf16>
    %c0_384 = arith.constant 0 : index
    %c0_385 = arith.constant 0 : index
    %1125 = vector.load %arg7[%c0_384, %c0_385] : memref<2304x128xbf16, #tpu.memory_space<vmem>>, vector<2304x128xbf16>
    %cst_386 = arith.constant dense<0.000000e+00> : vector<2x128xf32>
    %1126 = tpu.matmul %1124, %1125, %cst_386 {dimension_numbers = #tpu.dot_dimension_numbers<[1], [0], [0], [1], [0, 0, 1, 1], [], []>} : vector<2x2304xbf16>, vector<2304x128xbf16>, vector<2x128xf32> -> vector<2x128xf32>
    %c0_387 = arith.constant 0 : index
    %c0_388 = arith.constant 0 : index
    %1127 = vector.load %arg3[%c0_387, %c0_388] : memref<2x128xf32, #tpu.memory_space<vmem>>, vector<1x128xf32>
    %1128 = vector.broadcast %1127 : vector<1x128xf32> to vector<2x128xf32>
    %1129 = arith.addf %1126, %1128 : vector<2x128xf32>
    %cst_389 = arith.constant 0.000000e+00 : f32
    %1130 = vector.broadcast %cst_389 : f32 to vector<2x128xf32>
    %1131 = arith.maximumf %1129, %1130 : vector<2x128xf32>
    %c1_390 = arith.constant 1 : index
    %c0_391 = arith.constant 0 : index
    %1132 = vector.load %arg3[%c1_390, %c0_391] : memref<2x128xf32, #tpu.memory_space<vmem>>, vector<1x128xf32>
    %1133 = vector.broadcast %1132 : vector<1x128xf32> to vector<2x128xf32>
    %1134 = arith.mulf %1131, %1133 : vector<2x128xf32>
    %cst_392 = arith.constant dense<0.000000e+00> : vector<2xf32>
    %1135 = vector.multi_reduction <add>, %1134, %cst_392 [1] : vector<2x128xf32> to vector<2xf32>
    %1136 = vector.shape_cast %1135 : vector<2xf32> to vector<2x1xf32>
    %1137 = vector.broadcast %1123 : f32 to vector<2x1xf32>
    %1138 = arith.addf %1136, %1137 : vector<2x1xf32>
    %c0_393 = arith.constant 0 : index
    %c0_394 = arith.constant 0 : index
    %1139 = vector.load %arg5[%c0_393, %c0_394] : memref<2x1xf32, #tpu.memory_space<vmem>>, vector<2x1xf32>
    tpu.vector_store %arg5[%c0_393, %c0_394], %1138 {strides = array<i32>} : memref<2x1xf32, #tpu.memory_space<vmem>>, vector<2x1xf32>,
    return
  }
  func.func @transform_0(%arg0: i32) -> (i32, i32) {
    %c0_i32 = arith.constant 0 : i32
    %c0_i32_0 = arith.constant 0 : i32
    %c0_i32_1 = arith.constant 0 : i32
    return %c0_i32, %c0_i32_0 : i32, i32
  }
  func.func @transform_1(%arg0: i32) -> i32 {
    %c0_i32 = arith.constant 0 : i32
    %c0_i32_0 = arith.constant 0 : i32
    return %c0_i32 : i32
  }
  func.func @transform_2(%arg0: i32) -> (i32, i32) {
    %c0_i32 = arith.constant 0 : i32
    %c0_i32_0 = arith.constant 0 : i32
    %c0_i32_1 = arith.constant 0 : i32
    return %c0_i32, %c0_i32_0 : i32, i32
  }
  func.func @transform_4(%arg0: i32) -> (i32, i32) {
    %c0_i32 = arith.constant 0 : i32
    %c0_i32_0 = arith.constant 0 : i32
    %c0_i32_1 = arith.constant 0 : i32
    return %c0_i32, %c0_i32_0 : i32, i32
  }
}

</mosaic_0001>

<bundles_post_ra>
// kernel: critic_forward.1
= control target key start
LH: loop header
LB: loop body
LE: loop exit
PB: predicated region body
PF: predicated region fallthrough
CT: control target
= control target key end

     0   :  { %s6716_s0 = inlined_call_operand.vmem [shape: f32[2,7680], index: 0, kind: input, shape index: {}]   ;;  %s6717_s1 = inlined_call_operand.vmem [shape: f32[141], index: 1, kind: input, shape index: {}]   ;;  %s6718_s2 = inlined_call_operand.vmem [shape: f32[2,128], index: 2, kind: input, shape index: {}]   ;;  %s6719_s3 = inlined_call_operand.vmem [shape: bf16[2304,128], index: 3, kind: input, shape index: {}]   ;;  %s6720_s4 = inlined_call_operand.vmem [shape: f32[2,1], index: 4, kind: output, shape index: {}]  }
   0x1   :  { %6722 = sst [smem:[#allocation22_spill]] %s6718_s2 }
   0x2   :  { %6723 = sst [smem:[#allocation23_spill]] %s6720_s4 }
   0x3   :  { %9 = vsyncpa [#allocation6], 0  ;;  %s18_s17 = sshll.u32 %s6717_s1, 4  ;;  %s19_s17 = int_to_ptr.vmem [resolvable:$true] %s18_s17 }
   0x4   :  { %s5144_s18 = scalar_lea.vmem %s19_s17, 32  ;;  %p5149_p1 = scmp.lt.s32.totalorder %s19_s17, %s19_s17 }
   0x5   :  { %p5145_p0 = scmp.ne.s32.totalorder %s19_s17, %s5144_s18  ;;  %p5150_p2 = scmp.lt.s32.totalorder %s5144_s18, %s5144_s18 }
   0x7   :  { %p5151_p3 = por %p5150_p2, %p5149_p1 }
   0x9   :  { %p5152_p4 = pnand %p5151_p3, %p5145_p0 }
   0xb   :  { %5155 = shalt.err (!%p5152_p4)
}
   0xc   :  { %s5160_s19 = smov [#allocation5]  }
   0xd   :  { %21 = dma.vmem_to_smem %s19_s17, 32, %s5160_s19, [#allocation6]  }
   0xe   :  { %5156 = dma.done.wait [#allocation6], 32  }
   0xf   :  { %5157 = vsyncadd [#allocation6], 4294967264 }
  0x10   :  { %27 = sfence }
  0x11   :  { %v62_v0 = vld [vmem:[%s6719_s3] sm:$0xff]  ;;  %v64_v1 = vld [vmem:[%s6719_s3 + $0x8] sm:$0xff]  ;;  %v66_v2 = vld [vmem:[%s6719_s3 + $0x10] sm:$0xff]  ;;  %s358_s11 = sld [smem:[#allocation5]] }
  0x12   :  { %63 = vst [vmem:[#allocation3] sm:$0xff] %v62_v0  ;;  %65 = vst [vmem:[#allocation3 + $0x8] sm:$0xff] %v64_v1  ;;  %v68_v3 = vld [vmem:[%s6719_s3 + $0x18] sm:$0xff]  ;;  %v70_v4 = vld [vmem:[%s6719_s3 + $0x20] sm:$0xff]  ;;  %s4352_s12 = sld [smem:[#allocation5 + $0x1]] }
  0x13   :  { %67 = vst [vmem:[#allocation3 + $0x10] sm:$0xff] %v66_v2  ;;  %v72_v5 = vld [vmem:[%s6719_s3 + $0x28] sm:$0xff]  ;;  %69 = vst [vmem:[#allocation3 + $0x18] sm:$0xff] %v68_v3  ;;  %v74_v6 = vld [vmem:[%s6719_s3 + $0x30] sm:$0xff]  ;;  %s4353_s13 = sld [smem:[#allocation5 + $0x2]] }
  0x14   :  { %71 = vst [vmem:[#allocation3 + $0x20] sm:$0xff] %v70_v4  ;;  %73 = vst [vmem:[#allocation3 + $0x28] sm:$0xff] %v72_v5  ;;  %v76_v7 = vld [vmem:[%s6719_s3 + $0x38] sm:$0xff]  ;;  %v78_v8 = vld [vmem:[%s6719_s3 + $0x40] sm:$0xff]  ;;  %s4354_s16 = sld [smem:[#allocation5 + $0x3]] }
  0x15   :  { %75 = vst [vmem:[#allocation3 + $0x30] sm:$0xff] %v74_v6  ;;  %77 = vst [vmem:[#allocation3 + $0x38] sm:$0xff] %v76_v7  ;;  %v80_v9 = vld [vmem:[%s6719_s3 + $0x48] sm:$0xff]  ;;  %v82_v10 = vld [vmem:[%s6719_s3 + $0x50] sm:$0xff]  ;;  %s4355_s19 = sld [smem:[#allocation5 + $0x4]] }
  0x16   :  { %79 = vst [vmem:[#allocation3 + $0x40] sm:$0xff] %v78_v8  ;;  %v84_v11 = vld [vmem:[%s6719_s3 + $0x58] sm:$0xff]  ;;  %81 = vst [vmem:[#allocation3 + $0x48] sm:$0xff] %v80_v9  ;;  %v86_v12 = vld [vmem:[%s6719_s3 + $0x60] sm:$0xff]  ;;  %s4356_s23 = sld [smem:[#allocation5 + $0x5]] }
  0x17   :  { %83 = vst [vmem:[#allocation3 + $0x50] sm:$0xff] %v82_v10  ;;  %85 = vst [vmem:[#allocation3 + $0x58] sm:$0xff] %v84_v11  ;;  %v88_v13 = vld [vmem:[%s6719_s3 + $0x68] sm:$0xff]  ;;  %v90_v14 = vld [vmem:[%s6719_s3 + $0x70] sm:$0xff] }
  0x18   :  { %87 = vst [vmem:[#allocation3 + $0x60] sm:$0xff] %v86_v12  ;;  %89 = vst [vmem:[#allocation3 + $0x68] sm:$0xff] %v88_v13  ;;  %v92_v15 = vld [vmem:[%s6719_s3 + $0x78] sm:$0xff]  ;;  %v94_v16 = vld [vmem:[%s6719_s3 + $0x80] sm:$0xff] }
  0x19   :  { %91 = vst [vmem:[#allocation3 + $0x70] sm:$0xff] %v90_v14  ;;  %v96_v17 = vld [vmem:[%s6719_s3 + $0x88] sm:$0xff]  ;;  %93 = vst [vmem:[#allocation3 + $0x78] sm:$0xff] %v92_v15  ;;  %v98_v18 = vld [vmem:[%s6719_s3 + $0x90] sm:$0xff] }
  0x1a   :  { %95 = vst [vmem:[#allocation3 + $0x80] sm:$0xff] %v94_v16  ;;  %97 = vst [vmem:[#allocation3 + $0x88] sm:$0xff] %v96_v17  ;;  %v100_v19 = vld [vmem:[%s6719_s3 + $0x98] sm:$0xff]  ;;  %v102_v20 = vld [vmem:[%s6719_s3 + $0xa0] sm:$0xff] }
  0x1b   :  { %99 = vst [vmem:[#allocation3 + $0x90] sm:$0xff] %v98_v18  ;;  %101 = vst [vmem:[#allocation3 + $0x98] sm:$0xff] %v100_v19  ;;  %v104_v21 = vld [vmem:[%s6719_s3 + $0xa8] sm:$0xff]  ;;  %v106_v22 = vld [vmem:[%s6719_s3 + $0xb0] sm:$0xff] }
  0x1c   :  { %103 = vst [vmem:[#allocation3 + $0xa0] sm:$0xff] %v102_v20  ;;  %v108_v23 = vld [vmem:[%s6719_s3 + $0xb8] sm:$0xff]  ;;  %105 = vst [vmem:[#allocation3 + $0xa8] sm:$0xff] %v104_v21  ;;  %v110_v24 = vld [vmem:[%s6719_s3 + $0xc0] sm:$0xff] }
  0x1d   :  { %107 = vst [vmem:[#allocation3 + $0xb0] sm:$0xff] %v106_v22  ;;  %109 = vst [vmem:[#allocation3 + $0xb8] sm:$0xff] %v108_v23  ;;  %v112_v25 = vld [vmem:[%s6719_s3 + $0xc8] sm:$0xff]  ;;  %v114_v26 = vld [vmem:[%s6719_s3 + $0xd0] sm:$0xff] }
  0x1e   :  { %111 = vst [vmem:[#allocation3 + $0xc0] sm:$0xff] %v110_v24  ;;  %113 = vst [vmem:[#allocation3 + $0xc8] sm:$0xff] %v112_v25  ;;  %v116_v27 = vld [vmem:[%s6719_s3 + $0xd8] sm:$0xff]  ;;  %v118_v28 = vld [vmem:[%s6719_s3 + $0xe0] sm:$0xff] }
  0x1f   :  { %115 = vst [vmem:[#allocation3 + $0xd0] sm:$0xff] %v114_v26  ;;  %v120_v29 = vld [vmem:[%s6719_s3 + $0xe8] sm:$0xff]  ;;  %117 = vst [vmem:[#allocation3 + $0xd8] sm:$0xff] %v116_v27  ;;  %v122_v30 = vld [vmem:[%s6719_s3 + $0xf0] sm:$0xff] }
  0x20   :  { %119 = vst [vmem:[#allocation3 + $0xe0] sm:$0xff] %v118_v28  ;;  %121 = vst [vmem:[#allocation3 + $0xe8] sm:$0xff] %v120_v29  ;;  %v124_v31 = vld [vmem:[%s6719_s3 + $0xf8] sm:$0xff]  ;;  %v126_v32 = vld [vmem:[%s6719_s3 + $0x100] sm:$0xff] }
  0x21   :  { %123 = vst [vmem:[#allocation3 + $0xf0] sm:$0xff] %v122_v30  ;;  %125 = vst [vmem:[#allocation3 + $0xf8] sm:$0xff] %v124_v31  ;;  %v128_v33 = vld [vmem:[%s6719_s3 + $0x108] sm:$0xff]  ;;  %v130_v34 = vld [vmem:[%s6719_s3 + $0x110] sm:$0xff] }
  0x22   :  { %127 = vst [vmem:[#allocation3 + $0x100] sm:$0xff] %v126_v32  ;;  %v132_v35 = vld [vmem:[%s6719_s3 + $0x118] sm:$0xff]  ;;  %129 = vst [vmem:[#allocation3 + $0x108] sm:$0xff] %v128_v33  ;;  %v134_v36 = vld [vmem:[%s6719_s3 + $0x120] sm:$0xff] }
  0x23   :  { %131 = vst [vmem:[#allocation3 + $0x110] sm:$0xff] %v130_v34  ;;  %133 = vst [vmem:[#allocation3 + $0x118] sm:$0xff] %v132_v35  ;;  %v136_v37 = vld [vmem:[%s6719_s3 + $0x128] sm:$0xff]  ;;  %v138_v38 = vld [vmem:[%s6719_s3 + $0x130] sm:$0xff] }
  0x24   :  { %135 = vst [vmem:[#allocation3 + $0x120] sm:$0xff] %v134_v36  ;;  %137 = vst [vmem:[#allocation3 + $0x128] sm:$0xff] %v136_v37  ;;  %v140_v39 = vld [vmem:[%s6719_s3 + $0x138] sm:$0xff]  ;;  %v142_v40 = vld [vmem:[%s6719_s3 + $0x140] sm:$0xff] }
  0x25   :  { %139 = vst [vmem:[#allocation3 + $0x130] sm:$0xff] %v138_v38  ;;  %v144_v41 = vld [vmem:[%s6719_s3 + $0x148] sm:$0xff]  ;;  %141 = vst [vmem:[#allocation3 + $0x138] sm:$0xff] %v140_v39  ;;  %v146_v42 = vld [vmem:[%s6719_s3 + $0x150] sm:$0xff] }
  0x26   :  { %143 = vst [vmem:[#allocation3 + $0x140] sm:$0xff] %v142_v40  ;;  %145 = vst [vmem:[#allocation3 + $0x148] sm:$0xff] %v144_v41  ;;  %v148_v43 = vld [vmem:[%s6719_s3 + $0x158] sm:$0xff]  ;;  %v150_v44 = vld [vmem:[%s6719_s3 + $0x160] sm:$0xff] }
  0x27   :  { %147 = vst [vmem:[#allocation3 + $0x150] sm:$0xff] %v146_v42  ;;  %149 = vst [vmem:[#allocation3 + $0x158] sm:$0xff] %v148_v43  ;;  %v152_v45 = vld [vmem:[%s6719_s3 + $0x168] sm:$0xff]  ;;  %v154_v46 = vld [vmem:[%s6719_s3 + $0x170] sm:$0xff] }
  0x28   :  { %151 = vst [vmem:[#allocation3 + $0x160] sm:$0xff] %v150_v44  ;;  %v156_v47 = vld [vmem:[%s6719_s3 + $0x178] sm:$0xff]  ;;  %153 = vst [vmem:[#allocation3 + $0x168] sm:$0xff] %v152_v45  ;;  %v158_v48 = vld [vmem:[%s6719_s3 + $0x180] sm:$0xff] }
  0x29   :  { %155 = vst [vmem:[#allocation3 + $0x170] sm:$0xff] %v154_v46  ;;  %157 = vst [vmem:[#allocation3 + $0x178] sm:$0xff] %v156_v47  ;;  %v160_v49 = vld [vmem:[%s6719_s3 + $0x188] sm:$0xff]  ;;  %v162_v50 = vld [vmem:[%s6719_s3 + $0x190] sm:$0xff] }
  0x2a   :  { %159 = vst [vmem:[#allocation3 + $0x180] sm:$0xff] %v158_v48  ;;  %161 = vst [vmem:[#allocation3 + $0x188] sm:$0xff] %v160_v49  ;;  %v164_v51 = vld [vmem:[%s6719_s3 + $0x198] sm:$0xff]  ;;  %v166_v52 = vld [vmem:[%s6719_s3 + $0x1a0] sm:$0xff] }
  0x2b   :  { %163 = vst [vmem:[#allocation3 + $0x190] sm:$0xff] %v162_v50  ;;  %v168_v53 = vld [vmem:[%s6719_s3 + $0x1a8] sm:$0xff]  ;;  %165 = vst [vmem:[#allocation3 + $0x198] sm:$0xff] %v164_v51  ;;  %v170_v54 = vld [vmem:[%s6719_s3 + $0x1b0] sm:$0xff] }
  0x2c   :  { %167 = vst [vmem:[#allocation3 + $0x1a0] sm:$0xff] %v166_v52  ;;  %169 = vst [vmem:[#allocation3 + $0x1a8] sm:$0xff] %v168_v53  ;;  %v172_v55 = vld [vmem:[%s6719_s3 + $0x1b8] sm:$0xff]  ;;  %v174_v56 = vld [vmem:[%s6719_s3 + $0x1c0] sm:$0xff] }
  0x2d   :  { %171 = vst [vmem:[#allocation3 + $0x1b0] sm:$0xff] %v170_v54  ;;  %173 = vst [vmem:[#allocation3 + $0x1b8] sm:$0xff] %v172_v55  ;;  %v176_v57 = vld [vmem:[%s6719_s3 + $0x1c8] sm:$0xff]  ;;  %v178_v58 = vld [vmem:[%s6719_s3 + $0x1d0] sm:$0xff] }
  0x2e   :  { %175 = vst [vmem:[#allocation3 + $0x1c0] sm:$0xff] %v174_v56  ;;  %v180_v59 = vld [vmem:[%s6719_s3 + $0x1d8] sm:$0xff]  ;;  %177 = vst [vmem:[#allocation3 + $0x1c8] sm:$0xff] %v176_v57  ;;  %v182_v60 = vld [vmem:[%s6719_s3 + $0x1e0] sm:$0xff] }
  0x2f   :  { %179 = vst [vmem:[#allocation3 + $0x1d0] sm:$0xff] %v178_v58  ;;  %181 = vst [vmem:[#allocation3 + $0x1d8] sm:$0xff] %v180_v59  ;;  %v184_v61 = vld [vmem:[%s6719_s3 + $0x1e8] sm:$0xff]  ;;  %v186_v62 = vld [vmem:[%s6719_s3 + $0x1f0] sm:$0xff] }
  0x30   :  { %183 = vst [vmem:[#allocation3 + $0x1e0] sm:$0xff] %v182_v60  ;;  %185 = vst [vmem:[#allocation3 + $0x1e8] sm:$0xff] %v184_v61  ;;  %v188_v63 = vld [vmem:[%s6719_s3 + $0x1f8] sm:$0xff]  ;;  %v190_v0 = vld [vmem:[%s6719_s3 + $0x200] sm:$0xff] }
  0x31   :  { %187 = vst [vmem:[#allocation3 + $0x1f0] sm:$0xff] %v186_v62  ;;  %v192_v1 = vld [vmem:[%s6719_s3 + $0x208] sm:$0xff]  ;;  %189 = vst [vmem:[#allocation3 + $0x1f8] sm:$0xff] %v188_v63  ;;  %v194_v2 = vld [vmem:[%s6719_s3 + $0x210] sm:$0xff] }
  0x32   :  { %191 = vst [vmem:[#allocation3 + $0x200] sm:$0xff] %v190_v0  ;;  %193 = vst [vmem:[#allocation3 + $0x208] sm:$0xff] %v192_v1  ;;  %v196_v3 = vld [vmem:[%s6719_s3 + $0x218] sm:$0xff]  ;;  %v198_v4 = vld [vmem:[%s6719_s3 + $0x220] sm:$0xff] }
  0x33   :  { %195 = vst [vmem:[#allocation3 + $0x210] sm:$0xff] %v194_v2  ;;  %197 = vst [vmem:[#allocation3 + $0x218] sm:$0xff] %v196_v3  ;;  %v200_v5 = vld [vmem:[%s6719_s3 + $0x228] sm:$0xff]  ;;  %v202_v6 = vld [vmem:[%s6719_s3 + $0x230] sm:$0xff] }
  0x34   :  { %199 = vst [vmem:[#allocation3 + $0x220] sm:$0xff] %v198_v4  ;;  %v204_v7 = vld [vmem:[%s6719_s3 + $0x238] sm:$0xff]  ;;  %201 = vst [vmem:[#allocation3 + $0x228] sm:$0xff] %v200_v5  ;;  %v206_v8 = vld [vmem:[%s6719_s3 + $0x240] sm:$0xff] }
  0x35   :  { %203 = vst [vmem:[#allocation3 + $0x230] sm:$0xff] %v202_v6  ;;  %205 = vst [vmem:[#allocation3 + $0x238] sm:$0xff] %v204_v7  ;;  %v208_v9 = vld [vmem:[%s6719_s3 + $0x248] sm:$0xff]  ;;  %v210_v10 = vld [vmem:[%s6719_s3 + $0x250] sm:$0xff] }
  0x36   :  { %207 = vst [vmem:[#allocation3 + $0x240] sm:$0xff] %v206_v8  ;;  %209 = vst [vmem:[#allocation3 + $0x248] sm:$0xff] %v208_v9  ;;  %v212_v11 = vld [vmem:[%s6719_s3 + $0x258] sm:$0xff]  ;;  %v214_v12 = vld [vmem:[%s6719_s3 + $0x260] sm:$0xff] }
  0x37   :  { %211 = vst [vmem:[#allocation3 + $0x250] sm:$0xff] %v210_v10  ;;  %v216_v13 = vld [vmem:[%s6719_s3 + $0x268] sm:$0xff]  ;;  %213 = vst [vmem:[#allocation3 + $0x258] sm:$0xff] %v212_v11  ;;  %v218_v14 = vld [vmem:[%s6719_s3 + $0x270] sm:$0xff] }
  0x38   :  { %215 = vst [vmem:[#allocation3 + $0x260] sm:$0xff] %v214_v12  ;;  %217 = vst [vmem:[#allocation3 + $0x268] sm:$0xff] %v216_v13  ;;  %v220_v15 = vld [vmem:[%s6719_s3 + $0x278] sm:$0xff]  ;;  %v222_v16 = vld [vmem:[%s6719_s3 + $0x280] sm:$0xff] }
  0x39   :  { %219 = vst [vmem:[#allocation3 + $0x270] sm:$0xff] %v218_v14  ;;  %221 = vst [vmem:[#allocation3 + $0x278] sm:$0xff] %v220_v15  ;;  %v224_v17 = vld [vmem:[%s6719_s3 + $0x288] sm:$0xff]  ;;  %v226_v18 = vld [vmem:[%s6719_s3 + $0x290] sm:$0xff] }
  0x3a   :  { %223 = vst [vmem:[#allocation3 + $0x280] sm:$0xff] %v222_v16  ;;  %v228_v19 = vld [vmem:[%s6719_s3 + $0x298] sm:$0xff]  ;;  %225 = vst [vmem:[#allocation3 + $0x288] sm:$0xff] %v224_v17  ;;  %v230_v20 = vld [vmem:[%s6719_s3 + $0x2a0] sm:$0xff] }
  0x3b   :  { %227 = vst [vmem:[#allocation3 + $0x290] sm:$0xff] %v226_v18  ;;  %229 = vst [vmem:[#allocation3 + $0x298] sm:$0xff] %v228_v19  ;;  %v232_v21 = vld [vmem:[%s6719_s3 + $0x2a8] sm:$0xff]  ;;  %v234_v22 = vld [vmem:[%s6719_s3 + $0x2b0] sm:$0xff] }
  0x3c   :  { %231 = vst [vmem:[#allocation3 + $0x2a0] sm:$0xff] %v230_v20  ;;  %233 = vst [vmem:[#allocation3 + $0x2a8] sm:$0xff] %v232_v21  ;;  %v236_v23 = vld [vmem:[%s6719_s3 + $0x2b8] sm:$0xff]  ;;  %v238_v24 = vld [vmem:[%s6719_s3 + $0x2c0] sm:$0xff]  ;;  %v360_v21 = vstv %s358_s11 }
  0x3d   :  { %235 = vst [vmem:[#allocation3 + $0x2b0] sm:$0xff] %v234_v22  ;;  %v240_v25 = vld [vmem:[%s6719_s3 + $0x2c8] sm:$0xff]  ;;  %237 = vst [vmem:[#allocation3 + $0x2b8] sm:$0xff] %v236_v23  ;;  %v242_v26 = vld [vmem:[%s6719_s3 + $0x2d0] sm:$0xff] }
  0x3e   :  { %239 = vst [vmem:[#allocation3 + $0x2c0] sm:$0xff] %v238_v24  ;;  %241 = vst [vmem:[#allocation3 + $0x2c8] sm:$0xff] %v240_v25  ;;  %v244_v27 = vld [vmem:[%s6719_s3 + $0x2d8] sm:$0xff]  ;;  %v246_v28 = vld [vmem:[%s6719_s3 + $0x2e0] sm:$0xff] }
  0x3f   :  { %243 = vst [vmem:[#allocation3 + $0x2d0] sm:$0xff] %v242_v26  ;;  %245 = vst [vmem:[#allocation3 + $0x2d8] sm:$0xff] %v244_v27  ;;  %v248_v29 = vld [vmem:[%s6719_s3 + $0x2e8] sm:$0xff]  ;;  %v250_v30 = vld [vmem:[%s6719_s3 + $0x2f0] sm:$0xff]  ;;  %v364_v26 = vstv %s4352_s12 }
  0x40   :  { %247 = vst [vmem:[#allocation3 + $0x2e0] sm:$0xff] %v246_v28  ;;  %v252_v31 = vld [vmem:[%s6719_s3 + $0x2f8] sm:$0xff]  ;;  %249 = vst [vmem:[#allocation3 + $0x2e8] sm:$0xff] %v248_v29  ;;  %v254_v32 = vld [vmem:[%s6719_s3 + $0x300] sm:$0xff] }
  0x41   :  { %251 = vst [vmem:[#allocation3 + $0x2f0] sm:$0xff] %v250_v30  ;;  %253 = vst [vmem:[#allocation3 + $0x2f8] sm:$0xff] %v252_v31  ;;  %v256_v33 = vld [vmem:[%s6719_s3 + $0x308] sm:$0xff]  ;;  %v258_v34 = vld [vmem:[%s6719_s3 + $0x310] sm:$0xff]  ;;  %v369_v30 = vstv %s4353_s13 }
  0x42   :  { %255 = vst [vmem:[#allocation3 + $0x300] sm:$0xff] %v254_v32  ;;  %257 = vst [vmem:[#allocation3 + $0x308] sm:$0xff] %v256_v33  ;;  %v260_v35 = vld [vmem:[%s6719_s3 + $0x318] sm:$0xff]  ;;  %v262_v36 = vld [vmem:[%s6719_s3 + $0x320] sm:$0xff] }
  0x43   :  { %259 = vst [vmem:[#allocation3 + $0x310] sm:$0xff] %v258_v34  ;;  %v264_v37 = vld [vmem:[%s6719_s3 + $0x328] sm:$0xff]  ;;  %261 = vst [vmem:[#allocation3 + $0x318] sm:$0xff] %v260_v35  ;;  %v266_v38 = vld [vmem:[%s6719_s3 + $0x330] sm:$0xff] }
  0x44   :  { %263 = vst [vmem:[#allocation3 + $0x320] sm:$0xff] %v262_v36  ;;  %265 = vst [vmem:[#allocation3 + $0x328] sm:$0xff] %v264_v37  ;;  %v268_v39 = vld [vmem:[%s6719_s3 + $0x338] sm:$0xff]  ;;  %v270_v40 = vld [vmem:[%s6719_s3 + $0x340] sm:$0xff]  ;;  %v374_v36 = vstv %s4354_s16 }
  0x45   :  { %267 = vst [vmem:[#allocation3 + $0x330] sm:$0xff] %v266_v38  ;;  %269 = vst [vmem:[#allocation3 + $0x338] sm:$0xff] %v268_v39  ;;  %v272_v41 = vld [vmem:[%s6719_s3 + $0x348] sm:$0xff]  ;;  %v274_v42 = vld [vmem:[%s6719_s3 + $0x350] sm:$0xff] }
  0x46   :  { %271 = vst [vmem:[#allocation3 + $0x340] sm:$0xff] %v270_v40  ;;  %v276_v43 = vld [vmem:[%s6719_s3 + $0x358] sm:$0xff]  ;;  %273 = vst [vmem:[#allocation3 + $0x348] sm:$0xff] %v272_v41  ;;  %v278_v44 = vld [vmem:[%s6719_s3 + $0x360] sm:$0xff] }
  0x47   :  { %275 = vst [vmem:[#allocation3 + $0x350] sm:$0xff] %v274_v42  ;;  %277 = vst [vmem:[#allocation3 + $0x358] sm:$0xff] %v276_v43  ;;  %v280_v45 = vld [vmem:[%s6719_s3 + $0x368] sm:$0xff]  ;;  %v282_v46 = vld [vmem:[%s6719_s3 + $0x370] sm:$0xff] }
  0x48   :  { %279 = vst [vmem:[#allocation3 + $0x360] sm:$0xff] %v278_v44  ;;  %281 = vst [vmem:[#allocation3 + $0x368] sm:$0xff] %v280_v45  ;;  %v284_v47 = vld [vmem:[%s6719_s3 + $0x378] sm:$0xff]  ;;  %v286_v48 = vld [vmem:[%s6719_s3 + $0x380] sm:$0xff]  ;;  %v379_v44 = vstv %s4355_s19 }
  0x49   :  { %283 = vst [vmem:[#allocation3 + $0x370] sm:$0xff] %v282_v46  ;;  %v288_v49 = vld [vmem:[%s6719_s3 + $0x388] sm:$0xff]  ;;  %285 = vst [vmem:[#allocation3 + $0x378] sm:$0xff] %v284_v47  ;;  %v290_v50 = vld [vmem:[%s6719_s3 + $0x390] sm:$0xff] }
  0x4a   :  { %287 = vst [vmem:[#allocation3 + $0x380] sm:$0xff] %v286_v48  ;;  %289 = vst [vmem:[#allocation3 + $0x388] sm:$0xff] %v288_v49  ;;  %v292_v51 = vld [vmem:[%s6719_s3 + $0x398] sm:$0xff]  ;;  %v294_v52 = vld [vmem:[%s6719_s3 + $0x3a0] sm:$0xff] }
  0x4b   :  { %291 = vst [vmem:[#allocation3 + $0x390] sm:$0xff] %v290_v50  ;;  %293 = vst [vmem:[#allocation3 + $0x398] sm:$0xff] %v292_v51  ;;  %v296_v53 = vld [vmem:[%s6719_s3 + $0x3a8] sm:$0xff]  ;;  %v298_v54 = vld [vmem:[%s6719_s3 + $0x3b0] sm:$0xff] }
  0x4c   :  { %295 = vst [vmem:[#allocation3 + $0x3a0] sm:$0xff] %v294_v52  ;;  %v300_v55 = vld [vmem:[%s6719_s3 + $0x3b8] sm:$0xff]  ;;  %297 = vst [vmem:[#allocation3 + $0x3a8] sm:$0xff] %v296_v53  ;;  %v302_v56 = vld [vmem:[%s6719_s3 + $0x3c0] sm:$0xff] }
  0x4d   :  { %299 = vst [vmem:[#allocation3 + $0x3b0] sm:$0xff] %v298_v54  ;;  %301 = vst [vmem:[#allocation3 + $0x3b8] sm:$0xff] %v300_v55  ;;  %v304_v57 = vld [vmem:[%s6719_s3 + $0x3c8] sm:$0xff]  ;;  %v306_v58 = vld [vmem:[%s6719_s3 + $0x3d0] sm:$0xff] }
  0x4e   :  { %303 = vst [vmem:[#allocation3 + $0x3c0] sm:$0xff] %v302_v56  ;;  %305 = vst [vmem:[#allocation3 + $0x3c8] sm:$0xff] %v304_v57  ;;  %v308_v59 = vld [vmem:[%s6719_s3 + $0x3d8] sm:$0xff]  ;;  %v310_v60 = vld [vmem:[%s6719_s3 + $0x3e0] sm:$0xff] }
  0x4f   :  { %307 = vst [vmem:[#allocation3 + $0x3d0] sm:$0xff] %v306_v58  ;;  %v312_v61 = vld [vmem:[%s6719_s3 + $0x3e8] sm:$0xff]  ;;  %309 = vst [vmem:[#allocation3 + $0x3d8] sm:$0xff] %v308_v59  ;;  %v314_v62 = vld [vmem:[%s6719_s3 + $0x3f0] sm:$0xff] }
  0x50   :  { %311 = vst [vmem:[#allocation3 + $0x3e0] sm:$0xff] %v310_v60  ;;  %313 = vst [vmem:[#allocation3 + $0x3e8] sm:$0xff] %v312_v61  ;;  %v316_v63 = vld [vmem:[%s6719_s3 + $0x3f8] sm:$0xff]  ;;  %v318_v0 = vld [vmem:[%s6719_s3 + $0x400] sm:$0xff] }
  0x51   :  { %315 = vst [vmem:[#allocation3 + $0x3f0] sm:$0xff] %v314_v62  ;;  %317 = vst [vmem:[#allocation3 + $0x3f8] sm:$0xff] %v316_v63  ;;  %v320_v1 = vld [vmem:[%s6719_s3 + $0x408] sm:$0xff]  ;;  %v322_v2 = vld [vmem:[%s6719_s3 + $0x410] sm:$0xff] }
  0x52   :  { %319 = vst [vmem:[#allocation3 + $0x400] sm:$0xff] %v318_v0  ;;  %v324_v3 = vld [vmem:[%s6719_s3 + $0x418] sm:$0xff]  ;;  %321 = vst [vmem:[#allocation3 + $0x408] sm:$0xff] %v320_v1  ;;  %v326_v4 = vld [vmem:[%s6719_s3 + $0x420] sm:$0xff] }
  0x53   :  { %323 = vst [vmem:[#allocation3 + $0x410] sm:$0xff] %v322_v2  ;;  %325 = vst [vmem:[#allocation3 + $0x418] sm:$0xff] %v324_v3  ;;  %v328_v5 = vld [vmem:[%s6719_s3 + $0x428] sm:$0xff]  ;;  %v330_v6 = vld [vmem:[%s6719_s3 + $0x430] sm:$0xff] }
  0x54   :  { %327 = vst [vmem:[#allocation3 + $0x420] sm:$0xff] %v326_v4  ;;  %329 = vst [vmem:[#allocation3 + $0x428] sm:$0xff] %v328_v5  ;;  %v332_v7 = vld [vmem:[%s6719_s3 + $0x438] sm:$0xff]  ;;  %v334_v8 = vld [vmem:[%s6719_s3 + $0x440] sm:$0xff] }
  0x55   :  { %331 = vst [vmem:[#allocation3 + $0x430] sm:$0xff] %v330_v6  ;;  %v336_v9 = vld [vmem:[%s6719_s3 + $0x448] sm:$0xff]  ;;  %333 = vst [vmem:[#allocation3 + $0x438] sm:$0xff] %v332_v7  ;;  %v338_v10 = vld [vmem:[%s6719_s3 + $0x450] sm:$0xff] }
  0x56   :  { %335 = vst [vmem:[#allocation3 + $0x440] sm:$0xff] %v334_v8  ;;  %337 = vst [vmem:[#allocation3 + $0x448] sm:$0xff] %v336_v9  ;;  %v340_v11 = vld [vmem:[%s6719_s3 + $0x458] sm:$0xff]  ;;  %v342_v12 = vld [vmem:[%s6719_s3 + $0x460] sm:$0xff] }
  0x57   :  { %339 = vst [vmem:[#allocation3 + $0x450] sm:$0xff] %v338_v10  ;;  %341 = vst [vmem:[#allocation3 + $0x458] sm:$0xff] %v340_v11  ;;  %v344_v13 = vld [vmem:[%s6719_s3 + $0x468] sm:$0xff]  ;;  %v346_v14 = vld [vmem:[%s6719_s3 + $0x470] sm:$0xff] }
  0x58   :  { %343 = vst [vmem:[#allocation3 + $0x460] sm:$0xff] %v342_v12  ;;  %v348_v15 = vld [vmem:[%s6719_s3 + $0x478] sm:$0xff]  ;;  %345 = vst [vmem:[#allocation3 + $0x468] sm:$0xff] %v344_v13  ;;  %v359_v16 = vld [vmem:[%s6716_s0] sm:$0x3f] }
  0x59   :  { %347 = vst [vmem:[#allocation3 + $0x470] sm:$0xff] %v346_v14  ;;  %349 = vst [vmem:[#allocation3 + $0x478] sm:$0xff] %v348_v15  ;;  %v363_v17 = vld [vmem:[%s6716_s0 + $0x6] sm:$0x3f]  ;;  %v389_v18 = vld [vmem:[%s6716_s0 + $0xc] sm:$0x3f]  ;;  %v361_v25 = vmul.f32 %v360_v21, %v359_v16 }
  0x5a   :  { %v368_v19 = vld [vmem:[%s6716_s0 + $0xc] sm:$0x3f]  ;;  %v393_v20 = vld [vmem:[%s6716_s0 + $0x12] sm:$0x3f]  ;;  %v398_v22 = vld [vmem:[%s6716_s0 + $0x18] sm:$0x3f]  ;;  %v391_v28 = vmul.f32 %v389_v18, %v360_v21  ;;  %v365_v29 = vmul.f32 %v364_v26, %v363_v17 }
  0x5b   :  { %v419_v23 = vld [vmem:[%s6716_s0 + $0x1e] sm:$0x3f]  ;;  %v423_v24 = vld [vmem:[%s6716_s0 + $0x24] sm:$0x3f]  ;;  %v395_v31 = vmul.f32 %v393_v20, %v364_v26  ;;  %v428_v34 = vld [vmem:[%s6716_s0 + $0x2a] sm:$0x3f]  ;;  %v370_v35 = vmul.f32 %v369_v30, %v368_v19  ;;  %v400_v39 = vmul.f32 %v398_v22, %v369_v30 }
  0x5c   :  { %v373_v27 = vld [vmem:[%s6716_s0 + $0x3c] sm:$0x3f]  ;;  %v403_v32 = vld [vmem:[%s6716_s0 + $0x48] sm:$0x3f]  ;;  %v421_v33 = vmul.f32 %v419_v23, %v360_v21  ;;  %v378_v37 = vld [vmem:[%s6716_s0 + $0x42] sm:$0x3f]  ;;  %v425_v41 = vmul.f32 %v423_v24, %v364_v26  ;;  %v366_v42 = vadd.f32 %v365_v29, %v361_v25 }
  0x5d   :  { %v383_v38 = vld [vmem:[%s6716_s0 + $0x48] sm:$0x3f]  ;;  %v408_v40 = vld [vmem:[%s6716_s0 + $0x4e] sm:$0x3f]  ;;  %v375_v43 = vmul.f32 %v374_v36, %v373_v27  ;;  %v396_v45 = vadd.f32 %v395_v31, %v391_v28  ;;  %v413_v46 = vld [vmem:[%s6716_s0 + $0x54] sm:$0x3f] }
  0x5e   :  { %v433_v47 = vld [vmem:[%s6716_s0 + $0x5a] sm:$0x3f] }
  0x5f   :  { %357 = vsyncadd [#allocation4], 18432  ;;  %v384_v48 = vstv %s4356_s23  ;;  %v405_v49 = vmul.f32 %v403_v32, %v374_v36  ;;  %v430_v50 = vmul.f32 %v428_v34, %v369_v30  ;;  %v449_v51 = vld [vmem:[%s6716_s0 + $0x2a] sm:$0x3f]  ;;  %v453_v52 = vld [vmem:[%s6716_s0 + $0x30] sm:$0x3f]  ;;  %v371_v53 = vadd.f32 %v370_v35, %v366_v42 }
  0x60   :  { %v380_v54 = vmul.f32 %v379_v44, %v378_v37  ;;  %v401_v55 = vadd.f32 %v400_v39, %v396_v45  ;;  %v410_v56 = vmul.f32 %v408_v40, %v379_v44  ;;  %v438_v57 = vld [vmem:[%s6716_s0 + $0x60] sm:$0x3f]  ;;  %v458_v58 = vld [vmem:[%s6716_s0 + $0x36] sm:$0x3f]  ;;  %v385_v59 = vmul.f32 %v384_v48, %v383_v38  ;;  %v463_v63 = vld [vmem:[%s6716_s0 + $0x66] sm:$0x3f] }
  0x61   :  { %v415_v60 = vmul.f32 %v413_v46, %v384_v48  ;;  %v426_v61 = vadd.f32 %v425_v41, %v421_v33  ;;  %v435_v62 = vmul.f32 %v433_v47, %v374_v36  ;;  %v376_v0 = vadd.f32 %v375_v43, %v371_v53  ;;  %v443_v2 = vld [vmem:[%s6716_s0 + $0x66] sm:$0x3f]  ;;  %v468_v5 = vld [vmem:[%s6716_s0 + $0x6c] sm:$0x3f]  ;;  %v473_v17 = vld [vmem:[%s6716_s0 + $0x72] sm:$0x3f] }
  0x62   :  { %v406_v1 = vadd.f32 %v405_v49, %v401_v55  ;;  %v451_v3 = vmul.f32 %v449_v51, %v360_v21  ;;  %v455_v4 = vmul.f32 %v453_v52, %v364_v26  ;;  %v440_v7 = vmul.f32 %v438_v57, %v379_v44  ;;  %s4372_s9 = sld [smem:[#allocation5 + $0x6]] }
  0x63   :  { %v431_v6 = vadd.f32 %v430_v50, %v426_v61  ;;  %v460_v8 = vmul.f32 %v458_v58, %v369_v30  ;;  %v848_v9 = vlaneseq  ;;  %v381_v10 = vadd.f32 %v380_v54, %v376_v0  ;;  %s4373_s10 = sld [smem:[#allocation5 + $0x7]] }
  0x64   :  { %v411_v11 = vadd.f32 %v410_v56, %v406_v1  ;;  %v456_v12 = vadd.f32 %v455_v4, %v451_v3  ;;  %v465_v13 = vmul.f32 %v463_v63, %v374_v36  ;;  %v445_v15 = vmul.f32 %v443_v2, %v384_v48  ;;  %s4374_s11 = sld [smem:[#allocation5 + $0x8]] }
  0x65   :  { %v436_v14 = vadd.f32 %v435_v62, %v431_v6  ;;  %v470_v16 = vmul.f32 %v468_v5, %v379_v44  ;;  %v386_v18 = vadd.f32 %v385_v59, %v381_v10  ;;  %v5161_v21 = vmov 1983009808   ;;  %s4375_s15 = sld [smem:[#allocation5 + $0x9]]  ;;  %v483_v10 = vld [vmem:[%s6716_s0 + $0x6] sm:$0x3f] }
  0x66   :  { %v416_v19 = vadd.f32 %v415_v60, %v411_v11  ;;  %v461_v20 = vadd.f32 %v460_v8, %v456_v12  ;;  %v846_v22 = vunpack.c.l.s4 %v5161_v21  ;;  %v475_v25 = vmul.f32 %v473_v17, %v384_v48  ;;  %s4376_s18 = sld [smem:[#allocation5 + $0xa]]  ;;  %v509_v11 = vld [vmem:[%s6716_s0 + $0xc] sm:$0x3f]  ;;  %v543_v17 = vld [vmem:[%s6716_s0 + $0x24] sm:$0x3f] }
  0x67   :  { %v441_v23 = vadd.f32 %v440_v7, %v436_v14  ;;  %387 = vst [vmem:[#allocation2] sm:$0x3f] %v386_v18  ;;  %v849_v27 = vshrl.u32 %v848_v9, 7  ;;  %vm907_vm0 = vcmask 1041408   ;;  %v479_v9 = vld [vmem:[%s6716_s0] sm:$0x3f] }
  0x68   :  { %417 = vst [vmem:[#allocation2 + $0x6] sm:$0x3f] %v416_v19  ;;  %v466_v24 = vadd.f32 %v465_v13, %v461_v20  ;;  %v847_v26 = vunpack.c.0.s8 %v846_v22  ;;  %v488_v12 = vld [vmem:[%s6716_s0 + $0xc] sm:$0x3f]  ;;  %s4377_s22 = sld [smem:[#allocation5 + $0xb]]  ;;  %v480_v14 = vstv %s4372_s9 }
  0x69   :  { %v446_v28 = vadd.f32 %v445_v15, %v441_v23  ;;  %v513_v13 = vld [vmem:[%s6716_s0 + $0x12] sm:$0x3f]  ;;  %v518_v15 = vld [vmem:[%s6716_s0 + $0x18] sm:$0x3f]  ;;  %v481_v18 = vmul.f32 %v480_v14, %v479_v9  ;;  %v484_v19 = vstv %s4373_s10  ;;  %v511_v21 = vmul.f32 %v509_v11, %v480_v14  ;;  %s4396_s9 = sld [smem:[#allocation5 + $0xc]] }
  0x6a   :  { %v471_v29 = vadd.f32 %v470_v16, %v466_v24  ;;  %v5694_v31 = vsub.s32 %v847_v26, %v849_v27  ;;  %v539_v16 = vld [vmem:[%s6716_s0 + $0x1e] sm:$0x3f]  ;;  %v485_v22 = vmul.f32 %v484_v19, %v483_v10  ;;  %v489_v23 = vstv %s4374_s11  ;;  %v548_v27 = vld [vmem:[%s6716_s0 + $0x2a] sm:$0x3f]  ;;  %s4397_s10 = sld [smem:[#allocation5 + $0xd]] }
  0x6b   :  { %447 = vst [vmem:[#allocation2 + $0xc] sm:$0x3f] %v446_v28  ;;  %v493_v20 = vld [vmem:[%s6716_s0 + $0x3c] sm:$0x3f]  ;;  %v515_v24 = vmul.f32 %v513_v13, %v484_v19  ;;  %v541_v26 = vmul.f32 %v539_v16, %v480_v14  ;;  %v490_v28 = vmul.f32 %v489_v23, %v488_v12  ;;  %v593_v12 = vld [vmem:[%s6716_s0 + $0x72] sm:$0x3f] }
  0x6c   :  { %v476_v30 = vadd.f32 %v475_v25, %v471_v29  ;;  %v523_v25 = vld [vmem:[%s6716_s0 + $0x48] sm:$0x3f]  ;;  %v494_v29 = vstv %s4375_s15  ;;  %s4398_s12 = sld [smem:[#allocation5 + $0xe]] }
  0x6d   :  { %s4399_s13 = sld [smem:[#allocation5 + $0xf]] }
  0x6e   :  { %477 = vst [vmem:[#allocation2 + $0x12] sm:$0x3f] %v476_v30  ;;  %v498_v30 = vld [vmem:[%s6716_s0 + $0x42] sm:$0x3f]  ;;  %s4400_s16 = sld [smem:[#allocation5 + $0x10]] }
  0x6f   :  { %v5696_v32 = vld [vmem:[#allocation2] sm:$0xff]  ;;  %s4401_s1 = sld [smem:[#allocation5 + $0x11]] }
  0x70   :  { %v844_v33 = vcombine.high %v5696_v32, %v5696_v32  ;;  %v851_v34 = vrot.slane %v5696_v32, %v5694_v31  ;;  %s4445_s14 = sld [smem:[#allocation5 + $0x7c]] }
  0x71   :  { %s4421_s20 = sld [smem:[#allocation5 + $0x13]] }
  0x72   :  { %v5702_v35 = vld [vmem:[#allocation2 + $0x8] sm:$0xff]  ;;  %v858_v36 = vrot.slane %v844_v33, %v5694_v31  ;;  %v859_v37 = vcombine.high %v851_v34, %v851_v34  ;;  %v908_v38 = vsel %vm907_vm0, %v851_v34, 0.0  ;;  %v520_v33 = vmul.f32 %v518_v15, %v489_v23  ;;  %s4422_s21 = sld [smem:[#allocation5 + $0x14]] }
  0x73   :  { %v861_v39 = vcombine.high %v5702_v35, %v5702_v35  ;;  %v868_v40 = vrot.slane %v5702_v35, %v5694_v31  ;;  %v528_v34 = vld [vmem:[%s6716_s0 + $0x4e] sm:$0x3f]  ;;  %s4424_s25 = sld [smem:[#allocation5 + $0x16]] }
  0x74   :  { %v860_v41 = vcombine.high %v858_v36, %v858_v36  ;;  %v909_v42 = vsel %vm907_vm0, %v859_v37, 0.0  ;;  %v911_v43 = vsel %vm907_vm0, %v858_v36, 0.0  ;;  %v545_v36 = vmul.f32 %v543_v17, %v484_v19  ;;  %s4425_s27 = sld [smem:[#allocation5 + $0x17]] }
  0x75   :  { %v910_v44 = vadd.f32 %v909_v42, %v908_v38  ;;  %v875_v45 = vrot.slane %v861_v39, %v5694_v31  ;;  %v876_v46 = vcombine.high %v868_v40, %v868_v40  ;;  %v5714_v48 = vld [vmem:[#allocation2 + $0x10] sm:$0xff]  ;;  %v915_v50 = vsel %vm907_vm0, %v868_v40, 0.0  ;;  %v503_v40 = vld [vmem:[%s6716_s0 + $0x48] sm:$0x3f]  ;;  %s4449_s26 = sld [smem:[#allocation5 + $0x7e]] }
  0x76   :  { %v913_v47 = vsel %vm907_vm0, %v860_v41, 0.0  ;;  %v878_v53 = vcombine.high %v5714_v48, %v5714_v48  ;;  %v885_v54 = vrot.slane %v5714_v48, %v5694_v31  ;;  %v486_v37 = vadd.f32 %v485_v22, %v481_v18  ;;  %v533_v42 = vld [vmem:[%s6716_s0 + $0x54] sm:$0x3f]  ;;  %s6185_s30 = sld [smem:[#allocation5 + $0x18]] }
  0x77   :  { %v912_v49 = vadd.f32 %v911_v43, %v910_v44  ;;  %v877_v52 = vcombine.high %v875_v45, %v875_v45  ;;  %v917_v55 = vsel %vm907_vm0, %v876_v46, 0.0  ;;  %v919_v57 = vsel %vm907_vm0, %v875_v45, 0.0  ;;  %v553_v43 = vld [vmem:[%s6716_s0 + $0x5a] sm:$0x3f]  ;;  %s6187_s5 = sld [smem:[#allocation5 + $0x19]] }
  0x78   :  { %v892_v59 = vrot.slane %v878_v53, %v5694_v31  ;;  %v893_v60 = vcombine.high %v885_v54, %v885_v54  ;;  %v923_v63 = vsel %vm907_vm0, %v885_v54, 0.0  ;;  %v495_v38 = vmul.f32 %v494_v29, %v493_v20  ;;  %v558_v54 = vld [vmem:[%s6716_s0 + $0x60] sm:$0x3f]  ;;  %s6191_s6 = sld [smem:[#allocation5 + $0x1b]] }
  0x79   :  { %v914_v51 = vadd.f32 %v913_v47, %v912_v49  ;;  %v921_v61 = vsel %vm907_vm0, %v877_v52, 0.0  ;;  %v499_v39 = vstv %s4376_s18  ;;  %v516_v41 = vadd.f32 %v515_v24, %v511_v21  ;;  %v569_v47 = vld [vmem:[%s6716_s0 + $0x2a] sm:$0x3f]  ;;  %v573_v49 = vld [vmem:[%s6716_s0 + $0x30] sm:$0x3f]  ;;  %s6243_s4 = sld [smem:[#allocation5 + $0x2d]] }
  0x7a   :  { %v894_v1 = vcombine.high %v892_v59, %v892_v59  ;;  %v925_v2 = vsel %vm907_vm0, %v893_v60, 0.0  ;;  %v927_v4 = vsel %vm907_vm0, %v892_v59, 0.0  ;;  %v504_v44 = vstv %s4377_s22  ;;  %v583_v60 = vld [vmem:[%s6716_s0 + $0x66] sm:$0x3f]  ;;  %s6245_s2 = sld [smem:[#allocation5 + $0x2e]] }
  0x7b   :  { %v916_v56 = vadd.f32 %v915_v50, %v914_v51  ;;  %v525_v45 = vmul.f32 %v523_v25, %v494_v29  ;;  %v550_v46 = vmul.f32 %v548_v27, %v489_v23  ;;  %v491_v50 = vadd.f32 %v490_v28, %v486_v37 }
  0x7c   :  { %v929_v6 = vsel %vm907_vm0, %v894_v1, 0.0  ;;  %v500_v51 = vmul.f32 %v499_v39, %v498_v30  ;;  %v521_v52 = vadd.f32 %v520_v33, %v516_v41  ;;  %v530_v53 = vmul.f32 %v528_v34, %v499_v39 }
  0x7d   :  { %v918_v58 = vadd.f32 %v917_v55, %v916_v56  ;;  %v578_v55 = vld [vmem:[%s6716_s0 + $0x36] sm:$0x3f]  ;;  %v505_v56 = vmul.f32 %v504_v44, %v503_v40  ;;  %v555_v59 = vmul.f32 %v553_v43, %v494_v29  ;;  %v575_v1 = vmul.f32 %v573_v49, %v484_v19 }
  0x7e   :  { %v585_v9 = vmul.f32 %v583_v60, %v494_v29  ;;  %v595_v19 = vmul.f32 %v593_v12, %v504_v44 }
  0x7f   :  { %v920_v62 = vadd.f32 %v919_v57, %v918_v58  ;;  %v535_v57 = vmul.f32 %v533_v42, %v504_v44  ;;  %v546_v58 = vadd.f32 %v545_v36, %v541_v26  ;;  %6729 = sst [smem:[#allocation15_spill]] %s6243_s4 }
  0x80   :  { %6730 = sst [smem:[#allocation16_spill]] %s6245_s2 }
  0x81   :  { %v922_v0 = vadd.f32 %v921_v61, %v920_v62  ;;  %v496_v61 = vadd.f32 %v495_v38, %v491_v50  ;;  %v526_v62 = vadd.f32 %v525_v45, %v521_v52  ;;  %s6255_s4 = sld [smem:[#allocation5 + $0x3f]] }
  0x82   :  { %s6259_s2 = sld [smem:[#allocation5 + $0x4d]] }
  0x83   :  { %v924_v3 = vadd.f32 %v923_v63, %v922_v0  ;;  %v563_v63 = vld [vmem:[%s6716_s0 + $0x66] sm:$0x3f]  ;;  %v571_v0 = vmul.f32 %v569_v47, %v480_v14 }
  0x84   :  { %v565_v11 = vmul.f32 %v563_v63, %v504_v44 }
  0x85   :  { %v926_v5 = vadd.f32 %v925_v2, %v924_v3  ;;  %v551_v2 = vadd.f32 %v550_v46, %v546_v58  ;;  %v560_v3 = vmul.f32 %v558_v54, %v499_v39 }
  0x87   :  { %v928_v7 = vadd.f32 %v927_v4, %v926_v5  ;;  %v580_v4 = vmul.f32 %v578_v55, %v489_v23  ;;  %v588_v5 = vld [vmem:[%s6716_s0 + $0x6c] sm:$0x3f]  ;;  %v556_v10 = vadd.f32 %v555_v59, %v551_v2  ;;  %6734 = sst [smem:[#allocation20_spill]] %s6255_s4 }
  0x88   :  { %v590_v16 = vmul.f32 %v588_v5, %v499_v39  ;;  %s6275_s4 = sld [smem:[#allocation5 + $0x5d]] }
  0x89   :  { %v930_v8 = vadd.f32 %v929_v6, %v928_v7  ;;  %v501_v6 = vadd.f32 %v500_v51, %v496_v61  ;;  %v531_v7 = vadd.f32 %v530_v53, %v526_v62  ;;  %v561_v17 = vadd.f32 %v560_v3, %v556_v10 }
  0x8b   :  { %931 = vadd.xlane.f32.xlu0 %v930_v8  ;;  %v576_v8 = vadd.f32 %v575_v1, %v571_v0  ;;  %v506_v13 = vadd.f32 %v505_v56, %v501_v6  ;;  %v536_v14 = vadd.f32 %v535_v57, %v531_v7  ;;  %v566_v20 = vadd.f32 %v565_v11, %v561_v17 }
  0x8d   :  { %v581_v15 = vadd.f32 %v580_v4, %v576_v8  ;;  %507 = vst [vmem:[#allocation2 + $0x18] sm:$0x3f] %v506_v13  ;;  %537 = vst [vmem:[#allocation2 + $0x1e] sm:$0x3f] %v536_v14 }
  0x8e   :  { %567 = vst [vmem:[#allocation2 + $0x24] sm:$0x3f] %v566_v20 }
  0x8f   :  { %v586_v18 = vadd.f32 %v585_v9, %v581_v15 }
  0x91   :  { %v591_v21 = vadd.f32 %v590_v16, %v586_v18 }
  0x93   :  { %v596_v22 = vadd.f32 %v595_v19, %v591_v21 }
  0x94   :  { %v5801_v23 = vld [vmem:[#allocation2 + $0x18] sm:$0xff] }
  0x95   :  { %597 = vst [vmem:[#allocation2 + $0x2a] sm:$0x3f] %v596_v22  ;;  %v1074_v24 = vcombine.high %v5801_v23, %v5801_v23  ;;  %v1081_v25 = vrot.slane %v5801_v23, %v5694_v31  ;;  %v5807_v26 = vld [vmem:[#allocation2 + $0x20] sm:$0xff] }
  0x96   :  { %v1091_v33 = vcombine.high %v5807_v26, %v5807_v26  ;;  %v1098_v34 = vrot.slane %v5807_v26, %v5694_v31 }
  0x97   :  { %v1088_v27 = vrot.slane %v1074_v24, %v5694_v31  ;;  %v1089_v28 = vcombine.high %v1081_v25, %v1081_v25  ;;  %v1137_v29 = vsel %vm907_vm0, %v1081_v25, 0.0 }
  0x98   :  { %v1105_v42 = vrot.slane %v1091_v33, %v5694_v31  ;;  %v1106_v43 = vcombine.high %v1098_v34, %v1098_v34  ;;  %v1144_v49 = vsel %vm907_vm0, %v1098_v34, 0.0 }
  0x99   :  { %v1090_v37 = vcombine.high %v1088_v27, %v1088_v27  ;;  %v1138_v38 = vsel %vm907_vm0, %v1089_v28, 0.0  ;;  %v1140_v39 = vsel %vm907_vm0, %v1088_v27, 0.0 }
  0x9a   :  { %v1139_v40 = vadd.f32 %v1138_v38, %v1137_v29  ;;  %v1107_v53 = vcombine.high %v1105_v42, %v1105_v42  ;;  %v1146_v55 = vsel %vm907_vm0, %v1106_v43, 0.0  ;;  %v1148_v58 = vsel %vm907_vm0, %v1105_v42, 0.0 }
  0x9b   :  { %v1142_v44 = vsel %vm907_vm0, %v1090_v37, 0.0 }
  0x9c   :  { %v5819_v45 = vld [vmem:[#allocation2 + $0x28] sm:$0xff]  ;;  %v1141_v46 = vadd.f32 %v1140_v39, %v1139_v40  ;;  %v1150_v63 = vsel %vm907_vm0, %v1107_v53, 0.0 }
  0x9d   :  { %v1108_v50 = vcombine.high %v5819_v45, %v5819_v45  ;;  %v1115_v54 = vrot.slane %v5819_v45, %v5694_v31 }
  0x9e   :  { %v1143_v51 = vadd.f32 %v1142_v44, %v1141_v46 }
  0x9f   :  { %v1122_v61 = vrot.slane %v1108_v50, %v5694_v31  ;;  %v1123_v62 = vcombine.high %v1115_v54, %v1115_v54  ;;  %v1152_v1 = vsel %vm907_vm0, %v1115_v54, 0.0 }
  0xa0   :  { %v1145_v56 = vadd.f32 %v1144_v49, %v1143_v51 }
  0xa1   :  { %v1124_v3 = vcombine.high %v1122_v61, %v1122_v61  ;;  %v1154_v4 = vsel %vm907_vm0, %v1123_v62, 0.0  ;;  %v1156_v6 = vsel %vm907_vm0, %v1122_v61, 0.0 }
  0xa2   :  { %v1147_v59 = vadd.f32 %v1146_v55, %v1145_v56 }
  0xa3   :  { %v1158_v8 = vsel %vm907_vm0, %v1124_v3, 0.0  ;;  %v599_v3 = vld [vmem:[%s6716_s0] sm:$0x3f] }
  0xa4   :  { %v1149_v0 = vadd.f32 %v1148_v58, %v1147_v59 }
  0xa6   :  { %v1151_v2 = vadd.f32 %v1150_v63, %v1149_v0 }
  0xa8   :  { %v1153_v5 = vadd.f32 %v1152_v1, %v1151_v2 }
  0xaa   :  { %v1155_v7 = vadd.f32 %v1154_v4, %v1153_v5  ;;  %v603_v4 = vld [vmem:[%s6716_s0 + $0x6] sm:$0x3f]  ;;  %v629_v5 = vld [vmem:[%s6716_s0 + $0xc] sm:$0x3f] }
  0xac   :  { %v1157_v9 = vadd.f32 %v1156_v6, %v1155_v7  ;;  %v608_v6 = vld [vmem:[%s6716_s0 + $0xc] sm:$0x3f]  ;;  %v633_v7 = vld [vmem:[%s6716_s0 + $0x12] sm:$0x3f] }
  0xae   :  { %v1159_v10 = vadd.f32 %v1158_v8, %v1157_v9  ;;  %v600_v8 = vstv %s4396_s9  ;;  %v638_v9 = vld [vmem:[%s6716_s0 + $0x18] sm:$0x3f] }
  0xb0   :  { %1160 = vadd.xlane.f32.xlu1 %v1159_v10  ;;  %v659_v10 = vld [vmem:[%s6716_s0 + $0x1e] sm:$0x3f] }
 0x114   :  { %v932_v30 = vpop.xlane.xlu0 %931 }
 0x115   :  { %v933_v36 = vrot.slane %v932_v30, 4 }
 0x117   :  { %v934_v41 = vadd.f32 %v933_v36, %v932_v30 }
 0x119   :  { %v935_v47 = vrot.slane %v934_v41, 2 }
 0x11b   :  { %v936_v52 = vadd.f32 %v935_v47, %v934_v41 }
 0x11d   :  { %v937_v57 = vrot.slane %v936_v52, 1 }
 0x11f   :  { %v938_v60 = vadd.f32 %v937_v57, %v936_v52 }
 0x121   :  { %4906 = vpush %v938_v60 }
 0x152   :  { %s4907_s7 = spop %4906 }
 0x153   :  { %s940_s8 = smul.f32 0.00032552084, %s4907_s7 }
 0x155   :  { %v941_v11 = vstv %s940_s8 }
 0x156   :  { %v5835_v12 = vsub.f32 %v5696_v32, %v941_v11  ;;  %v5838_v13 = vsub.f32 %v5702_v35, %v941_v11  ;;  %v5847_v20 = vsub.f32 %v5714_v48, %v941_v11  ;;  %v663_v11 = vld [vmem:[%s6716_s0 + $0x24] sm:$0x3f] }
 0x158   :  { %v945_v14 = vmul.f32 %v5835_v12, %v5835_v12  ;;  %v946_v15 = vmul.f32 %v5838_v13, %v5838_v13  ;;  %v947_v29 = vmul.f32 %v5847_v20, %v5847_v20 }
 0x15a   :  { %v951_v16 = vcombine.high %v945_v14, %v945_v14  ;;  %v958_v17 = vrot.slane %v945_v14, %v5694_v31  ;;  %v968_v32 = vcombine.high %v946_v15, %v946_v15  ;;  %v975_v35 = vrot.slane %v946_v15, %v5694_v31 }
 0x15b   :  { %v985_v39 = vcombine.high %v947_v29, %v947_v29  ;;  %v992_v40 = vrot.slane %v947_v29, %v5694_v31  ;;  %v601_v14 = vmul.f32 %v600_v8, %v599_v3  ;;  %v604_v15 = vstv %s4397_s10  ;;  %v648_v29 = vld [vmem:[%s6716_s0 + $0x4e] sm:$0x3f]  ;;  %s4444_s10 = sld [smem:[#allocation5 + $0x78]] }
 0x15c   :  { %v965_v18 = vrot.slane %v951_v16, %v5694_v31  ;;  %v966_v19 = vcombine.high %v958_v17, %v958_v17  ;;  %v1014_v22 = vsel %vm907_vm0, %v958_v17, 0.0  ;;  %v982_v30 = vrot.slane %v968_v32, %v5694_v31  ;;  %v613_v16 = vld [vmem:[%s6716_s0 + $0x3c] sm:$0x3f] }
 0x15d   :  { %v983_v33 = vcombine.high %v975_v35, %v975_v35  ;;  %v1021_v36 = vsel %vm907_vm0, %v975_v35, 0.0  ;;  %v999_v46 = vrot.slane %v985_v39, %v5694_v31  ;;  %v1000_v47 = vcombine.high %v992_v40, %v992_v40  ;;  %v673_v39 = vld [vmem:[%s6716_s0 + $0x5a] sm:$0x3f] }
 0x15e   :  { %v967_v21 = vcombine.high %v965_v18, %v965_v18  ;;  %v1015_v24 = vsel %vm907_vm0, %v966_v19, 0.0  ;;  %v1017_v27 = vsel %vm907_vm0, %v965_v18, 0.0  ;;  %v984_v38 = vcombine.high %v982_v30, %v982_v30 }
 0x15f   :  { %v1016_v25 = vadd.f32 %v1015_v24, %v1014_v22  ;;  %v1023_v41 = vsel %vm907_vm0, %v983_v33, 0.0  ;;  %v1025_v43 = vsel %vm907_vm0, %v982_v30, 0.0  ;;  %v1029_v51 = vsel %vm907_vm0, %v992_v40, 0.0  ;;  %v668_v22 = vld [vmem:[%s6716_s0 + $0x2a] sm:$0x3f] }
 0x160   :  { %v1019_v48 = vsel %vm907_vm0, %v967_v21, 0.0  ;;  %v1027_v49 = vsel %vm907_vm0, %v984_v38, 0.0  ;;  %v1001_v53 = vcombine.high %v999_v46, %v999_v46  ;;  %v1031_v54 = vsel %vm907_vm0, %v1000_v47, 0.0  ;;  %v643_v21 = vld [vmem:[%s6716_s0 + $0x48] sm:$0x3f] }
 0x161   :  { %v1018_v28 = vadd.f32 %v1017_v27, %v1016_v25  ;;  %v1033_v56 = vsel %vm907_vm0, %v999_v46, 0.0  ;;  %v631_v17 = vmul.f32 %v629_v5, %v600_v8  ;;  %v605_v18 = vmul.f32 %v604_v15, %v603_v4  ;;  %v618_v27 = vld [vmem:[%s6716_s0 + $0x42] sm:$0x3f]  ;;  %v653_v38 = vld [vmem:[%s6716_s0 + $0x54] sm:$0x3f] }
 0x162   :  { %v1035_v58 = vsel %vm907_vm0, %v1001_v53, 0.0  ;;  %v609_v19 = vstv %s4398_s12  ;;  %v635_v32 = vmul.f32 %v633_v7, %v604_v15  ;;  %v661_v35 = vmul.f32 %v659_v10, %v600_v8  ;;  %v713_v10 = vld [vmem:[%s6716_s0 + $0x72] sm:$0x3f] }
 0x163   :  { %v1020_v34 = vadd.f32 %v1019_v48, %v1018_v28  ;;  %v610_v24 = vmul.f32 %v609_v19, %v608_v6  ;;  %v614_v25 = vstv %s4399_s13  ;;  %v640_v28 = vmul.f32 %v638_v9, %v609_v19  ;;  %s4420_s13 = sld [smem:[#allocation5 + $0x12]] }
 0x164   :  { %v665_v30 = vmul.f32 %v663_v11, %v604_v15  ;;  %v606_v33 = vadd.f32 %v605_v18, %v601_v14  ;;  %v615_v48 = vmul.f32 %v614_v25, %v613_v16  ;;  %v624_v40 = vstv %s4401_s1  ;;  %v1161_v11 = vpop.xlane.xlu1 %1160  ;;  %s4448_s1 = sld [smem:[#allocation5 + $0x7a]] }
 0x165   :  { %v1022_v37 = vadd.f32 %v1021_v36, %v1020_v34  ;;  %v619_v34 = vstv %s4400_s16  ;;  %v623_v36 = vld [vmem:[%s6716_s0 + $0x48] sm:$0x3f]  ;;  %s4423_s16 = sld [smem:[#allocation5 + $0x15]] }
 0x166   :  { %v611_v46 = vadd.f32 %v610_v24, %v606_v33  ;;  %v620_v47 = vmul.f32 %v619_v34, %v618_v27  ;;  %v625_v53 = vmul.f32 %v624_v40, %v623_v36 }
 0x167   :  { %v1024_v42 = vadd.f32 %v1023_v41, %v1022_v37  ;;  %v636_v37 = vadd.f32 %v635_v32, %v631_v17  ;;  %v645_v41 = vmul.f32 %v643_v21, %v614_v25  ;;  %v1162_v32 = vrot.slane %v1161_v11, 4 }
 0x169   :  { %v1026_v44 = vadd.f32 %v1025_v43, %v1024_v42  ;;  %v670_v42 = vmul.f32 %v668_v22, %v609_v19  ;;  %v689_v43 = vld [vmem:[%s6716_s0 + $0x2a] sm:$0x3f]  ;;  %v1163_v24 = vadd.f32 %v1162_v32, %v1161_v11 }
 0x16b   :  { %v1028_v50 = vadd.f32 %v1027_v49, %v1026_v44  ;;  %v693_v44 = vld [vmem:[%s6716_s0 + $0x30] sm:$0x3f]  ;;  %v641_v49 = vadd.f32 %v640_v28, %v636_v37 }
 0x16d   :  { %v1030_v52 = vadd.f32 %v1029_v51, %v1028_v50  ;;  %v650_v50 = vmul.f32 %v648_v29, %v619_v34  ;;  %v678_v51 = vld [vmem:[%s6716_s0 + $0x60] sm:$0x3f] }
 0x16f   :  { %v1032_v55 = vadd.f32 %v1031_v54, %v1030_v52  ;;  %v698_v52 = vld [vmem:[%s6716_s0 + $0x36] sm:$0x3f]  ;;  %v655_v54 = vmul.f32 %v653_v38, %v624_v40 }
 0x171   :  { %v1034_v57 = vadd.f32 %v1033_v56, %v1032_v55  ;;  %v666_v55 = vadd.f32 %v665_v30, %v661_v35  ;;  %v675_v56 = vmul.f32 %v673_v39, %v614_v25  ;;  %v1164_v30 = vrot.slane %v1163_v24, 2 }
 0x173   :  { %v1036_v59 = vadd.f32 %v1035_v58, %v1034_v57  ;;  %v703_v57 = vld [vmem:[%s6716_s0 + $0x66] sm:$0x3f]  ;;  %v616_v58 = vadd.f32 %v615_v48, %v611_v46 }
 0x174   :  { %v705_v6 = vmul.f32 %v703_v57, %v614_v25 }
 0x175   :  { %1037 = vadd.xlane.f32.xlu0 %v1036_v59  ;;  %v646_v59 = vadd.f32 %v645_v41, %v641_v49  ;;  %v621_v3 = vadd.f32 %v620_v47, %v616_v58 }
 0x177   :  { %v651_v4 = vadd.f32 %v650_v50, %v646_v59 }
 0x179   :  { %v656_v14 = vadd.f32 %v655_v54, %v651_v4 }
 0x17b   :  { %657 = vst [vmem:[#allocation2 + $0x36] sm:$0x3f] %v656_v14 }
 0x1fe   :  { %v1038_v60 = vpop.xlane.xlu0 %1037 }
 0x1ff   :  { %v1039_v61 = vrot.slane %v1038_v60, 4 }
 0x201   :  { %v1040_v62 = vadd.f32 %v1039_v61, %v1038_v60  ;;  %v683_v60 = vld [vmem:[%s6716_s0 + $0x66] sm:$0x3f]  ;;  %v691_v61 = vmul.f32 %v689_v43, %v600_v8  ;;  %v626_v8 = vadd.f32 %v625_v53, %v621_v3 }
 0x202   :  { %v685_v9 = vmul.f32 %v683_v60, %v624_v40 }
 0x203   :  { %v1041_v63 = vrot.slane %v1040_v62, 2  ;;  %627 = vst [vmem:[#allocation2 + $0x30] sm:$0x3f] %v626_v8 }
 0x205   :  { %v1042_v0 = vadd.f32 %v1041_v63, %v1040_v62  ;;  %v695_v62 = vmul.f32 %v693_v44, %v604_v15  ;;  %v671_v63 = vadd.f32 %v670_v42, %v666_v55  ;;  %v1165_v42 = vadd.f32 %v1164_v30, %v1163_v24 }
 0x207   :  { %v1043_v1 = vrot.slane %v1042_v0, 1  ;;  %v696_v5 = vadd.f32 %v695_v62, %v691_v61  ;;  %v676_v7 = vadd.f32 %v675_v56, %v671_v63 }
 0x209   :  { %v1044_v2 = vadd.f32 %v1043_v1, %v1042_v0  ;;  %v680_v0 = vmul.f32 %v678_v51, %v619_v34  ;;  %v700_v1 = vmul.f32 %v698_v52, %v609_v19  ;;  %v715_v19 = vmul.f32 %v713_v10, %v624_v40 }
 0x20a   :  { %v5939_v25 = vld [vmem:[#allocation2 + $0x30] sm:$0xff]  ;;  %v1166_v52 = vrot.slane %v1165_v42, 1 }
 0x20b   :  { %4908 = vpush %v1044_v2  ;;  %v708_v2 = vld [vmem:[%s6716_s0 + $0x6c] sm:$0x3f]  ;;  %v701_v15 = vadd.f32 %v700_v1, %v696_v5  ;;  %v681_v17 = vadd.f32 %v680_v0, %v676_v7  ;;  %v1303_v28 = vcombine.high %v5939_v25, %v5939_v25  ;;  %v1310_v29 = vrot.slane %v5939_v25, %v5694_v31 }
 0x20c   :  { %v710_v16 = vmul.f32 %v708_v2, %v619_v34  ;;  %v1167_v62 = vadd.f32 %v1166_v52, %v1165_v42 }
 0x20d   :  { %v706_v18 = vadd.f32 %v705_v6, %v701_v15  ;;  %v686_v21 = vadd.f32 %v685_v9, %v681_v17  ;;  %v1317_v48 = vrot.slane %v1303_v28, %v5694_v31  ;;  %v1318_v34 = vcombine.high %v1310_v29, %v1310_v29 }
 0x20e   :  { %v1366_v36 = vsel %vm907_vm0, %v1310_v29, 0.0 }
 0x20f   :  { %v711_v35 = vadd.f32 %v710_v16, %v706_v18  ;;  %687 = vst [vmem:[#allocation2 + $0x3c] sm:$0x3f] %v686_v21  ;;  %v1319_v39 = vcombine.high %v1317_v48, %v1317_v48  ;;  %v1367_v40 = vsel %vm907_vm0, %v1318_v34, 0.0  ;;  %v1369_v41 = vsel %vm907_vm0, %v1317_v48, 0.0 }
 0x210   :  { %v1368_v43 = vadd.f32 %v1367_v40, %v1366_v36  ;;  %v1058_v16 = vstv %s4445_s14  ;;  %s6201_s14 = sld [smem:[#allocation5 + $0x38]] }
 0x211   :  { %v716_v22 = vadd.f32 %v715_v19, %v711_v35  ;;  %v1371_v47 = vsel %vm907_vm0, %v1319_v39, 0.0 }
 0x212   :  { %v1370_v50 = vadd.f32 %v1369_v41, %v1368_v43 }
 0x213   :  { %717 = vst [vmem:[#allocation2 + $0x42] sm:$0x3f] %v716_v22 }
 0x214   :  { %v1372_v53 = vadd.f32 %v1371_v47, %v1370_v50 }
 0x216   :  { %v5945_v33 = vld [vmem:[#allocation2 + $0x38] sm:$0xff] }
 0x217   :  { %v1320_v37 = vcombine.high %v5945_v33, %v5945_v33  ;;  %v1327_v38 = vrot.slane %v5945_v33, %v5694_v31 }
 0x219   :  { %v1334_v44 = vrot.slane %v1320_v37, %v5694_v31  ;;  %v1335_v46 = vcombine.high %v1327_v38, %v1327_v38  ;;  %v1373_v51 = vsel %vm907_vm0, %v1327_v38, 0.0 }
 0x21a   :  { %v5957_v49 = vld [vmem:[#allocation2 + $0x40] sm:$0xff]  ;;  %v1374_v58 = vadd.f32 %v1373_v51, %v1372_v53 }
 0x21b   :  { %v1336_v54 = vcombine.high %v1334_v44, %v1334_v44  ;;  %v1337_v55 = vcombine.high %v5957_v49, %v5957_v49  ;;  %v1344_v56 = vrot.slane %v5957_v49, %v5694_v31  ;;  %v1375_v57 = vsel %vm907_vm0, %v1335_v46, 0.0 }
 0x21c   :  { %v1377_v59 = vsel %vm907_vm0, %v1334_v44, 0.0  ;;  %v1376_v60 = vadd.f32 %v1375_v57, %v1374_v58 }
 0x21d   :  { %v1351_v63 = vrot.slane %v1337_v55, %v5694_v31  ;;  %v1352_v0 = vcombine.high %v1344_v56, %v1344_v56  ;;  %v1379_v1 = vsel %vm907_vm0, %v1336_v54, 0.0  ;;  %v1381_v3 = vsel %vm907_vm0, %v1344_v56, 0.0 }
 0x21e   :  { %v1378_v2 = vadd.f32 %v1377_v59, %v1376_v60 }
 0x21f   :  { %v1353_v5 = vcombine.high %v1351_v63, %v1351_v63  ;;  %v1383_v6 = vsel %vm907_vm0, %v1352_v0, 0.0  ;;  %v1385_v9 = vsel %vm907_vm0, %v1351_v63, 0.0 }
 0x220   :  { %v1380_v4 = vadd.f32 %v1379_v1, %v1378_v2 }
 0x221   :  { %v1387_v11 = vsel %vm907_vm0, %v1353_v5, 0.0 }
 0x222   :  { %v1382_v7 = vadd.f32 %v1381_v3, %v1380_v4 }
 0x224   :  { %v1384_v10 = vadd.f32 %v1383_v6, %v1382_v7 }
 0x226   :  { %v1386_v8 = vadd.f32 %v1385_v9, %v1384_v10 }
 0x228   :  { %v1388_v14 = vadd.f32 %v1387_v11, %v1386_v8 }
 0x22a   :  { %1389 = vadd.xlane.f32.xlu0 %v1388_v14 }
 0x23c   :  { %s4909_s7 = spop %4908 }
 0x23d   :  { %s1046_s8 = smul.f32 0.00032552084, %s4909_s7  ;;  %s6193_s7 = sld [smem:[#allocation5 + $0x28]] }
 0x23f   :  { %s1048_s9 = sadd.f32 1e-05, %s1046_s8 }
 0x240   :  { %s6195_s8 = sld [smem:[#allocation5 + $0x29]] }
 0x241   :  { %v1049_v27 = vstv %s1048_s9  ;;  %s6197_s9 = sld [smem:[#allocation5 + $0x2a]] }
 0x242   :  { %4980 = vrsqrt.f32 %v1049_v27 }
 0x24f   :  { %v4981_v61 = vpop.eup %4980 }
 0x250   :  { %4910 = vpush %v4981_v61 }
 0x251   :  { %4912 = vpush %v1167_v62 }
 0x281   :  { %s4911_s11 = spop %4910 }
 0x282   :  { %s1052_s12 = smul.f32 %s4911_s11, %s4444_s10  ;;  %s4913_s17 = spop %4912 }
 0x283   :  { %s1169_s15 = smul.f32 0.00032552084, %s4913_s17  ;;  %s6199_s10 = sld [smem:[#allocation5 + $0x2b]] }
 0x284   :  { %v1053_v15 = vstv %s1052_s12  ;;  %s6203_s11 = sld [smem:[#allocation5 + $0x39]] }
 0x285   :  { %v1054_v17 = vmul.f32 %v1053_v15, %v5835_v12  ;;  %v1055_v18 = vmul.f32 %v1053_v15, %v5838_v13  ;;  %v1056_v19 = vmul.f32 %v1053_v15, %v5847_v20  ;;  %v1170_v32 = vstv %s1169_s15  ;;  %s6205_s12 = sld [smem:[#allocation5 + $0x3a]] }
 0x286   :  { %v5976_v21 = vsub.f32 %v5801_v23, %v1170_v32  ;;  %v5979_v35 = vsub.f32 %v5807_v26, %v1170_v32  ;;  %v5988_v34 = vsub.f32 %v5819_v45, %v1170_v32  ;;  %v749_v32 = vld [vmem:[%s6716_s0 + $0xc] sm:$0x3f] }
 0x287   :  { %v1059_v22 = vadd.f32 %v1058_v16, %v1054_v17  ;;  %v1060_v24 = vadd.f32 %v1058_v16, %v1055_v18  ;;  %v1061_v27 = vadd.f32 %v1058_v16, %v1056_v19  ;;  %v719_v18 = vld [vmem:[%s6716_s0] sm:$0x3f]  ;;  %v723_v19 = vld [vmem:[%s6716_s0 + $0x6] sm:$0x3f] }
 0x288   :  { %v1174_v28 = vmul.f32 %v5976_v21, %v5976_v21  ;;  %v1175_v13 = vmul.f32 %v5979_v35, %v5979_v35  ;;  %v1176_v44 = vmul.f32 %v5988_v34, %v5988_v34 }
 0x289   :  { %v1062_v29 = vmax.f32 %v1059_v22, 0.0  ;;  %v1063_v30 = vmax.f32 %v1060_v24, 0.0  ;;  %v1064_v12 = vmax.f32 %v1061_v27, 0.0  ;;  %v728_v22 = vld [vmem:[%s6716_s0 + $0xc] sm:$0x3f]  ;;  %v720_v27 = vstv %s4420_s13 }
 0x28a   :  { %v1180_v20 = vcombine.high %v1174_v28, %v1174_v28  ;;  %v1187_v48 = vrot.slane %v1174_v28, %v5694_v31  ;;  %v1197_v36 = vcombine.high %v1175_v13, %v1175_v13  ;;  %v1204_v38 = vrot.slane %v1175_v13, %v5694_v31  ;;  %v753_v24 = vld [vmem:[%s6716_s0 + $0x12] sm:$0x3f]  ;;  %v758_v28 = vld [vmem:[%s6716_s0 + $0x18] sm:$0x3f] }
 0x28b   :  { %1065 = vst [vmem:[#allocation2] sm:$0xff] %v1062_v29  ;;  %1066 = vst [vmem:[#allocation2 + $0x8] sm:$0xff] %v1063_v30  ;;  %v1214_v54 = vcombine.high %v1176_v44, %v1176_v44  ;;  %v1221_v55 = vrot.slane %v1176_v44, %v5694_v31  ;;  %v779_v29 = vld [vmem:[%s6716_s0 + $0x1e] sm:$0x3f]  ;;  %v783_v30 = vld [vmem:[%s6716_s0 + $0x24] sm:$0x3f]  ;;  %v724_v13 = vstv %s4421_s20 }
 0x28c   :  { %1067 = vst [vmem:[#allocation2 + $0x10] sm:$0xff] %v1064_v12  ;;  %v1194_v23 = vrot.slane %v1180_v20, %v5694_v31  ;;  %v1195_v26 = vcombine.high %v1187_v48, %v1187_v48  ;;  %v1243_v39 = vsel %vm907_vm0, %v1187_v48, 0.0  ;;  %v1211_v46 = vrot.slane %v1197_v36, %v5694_v31  ;;  %v733_v20 = vld [vmem:[%s6716_s0 + $0x3c] sm:$0x3f]  ;;  %v768_v44 = vld [vmem:[%s6716_s0 + $0x4e] sm:$0x3f] }
 0x28d   :  { %v1212_v47 = vcombine.high %v1204_v38, %v1204_v38  ;;  %v1250_v51 = vsel %vm907_vm0, %v1204_v38, 0.0  ;;  %v1228_v60 = vrot.slane %v1214_v54, %v5694_v31  ;;  %v1229_v61 = vcombine.high %v1221_v55, %v1221_v55  ;;  %v793_v54 = vld [vmem:[%s6716_s0 + $0x5a] sm:$0x3f]  ;;  %s4447_s20 = sld [smem:[#allocation5 + $0x7d]] }
 0x28e   :  { %v1196_v37 = vcombine.high %v1194_v23, %v1194_v23  ;;  %v1244_v40 = vsel %vm907_vm0, %v1195_v26, 0.0  ;;  %v1246_v42 = vsel %vm907_vm0, %v1194_v23, 0.0  ;;  %v1213_v53 = vcombine.high %v1211_v46, %v1211_v46 }
 0x28f   :  { %v1245_v41 = vadd.f32 %v1244_v40, %v1243_v39  ;;  %v1252_v56 = vsel %vm907_vm0, %v1212_v47, 0.0  ;;  %v1254_v58 = vsel %vm907_vm0, %v1211_v46, 0.0  ;;  %v1258_v0 = vsel %vm907_vm0, %v1221_v55, 0.0  ;;  %v788_v39 = vld [vmem:[%s6716_s0 + $0x2a] sm:$0x3f] }
 0x290   :  { %v1248_v45 = vsel %vm907_vm0, %v1196_v37, 0.0  ;;  %v1256_v62 = vsel %vm907_vm0, %v1213_v53, 0.0  ;;  %v1230_v2 = vcombine.high %v1228_v60, %v1228_v60  ;;  %v1260_v3 = vsel %vm907_vm0, %v1229_v61, 0.0  ;;  %v763_v37 = vld [vmem:[%s6716_s0 + $0x48] sm:$0x3f] }
 0x291   :  { %v1247_v43 = vadd.f32 %v1246_v42, %v1245_v41  ;;  %v1262_v5 = vsel %vm907_vm0, %v1228_v60, 0.0  ;;  %v721_v12 = vmul.f32 %v720_v27, %v719_v18  ;;  %v751_v48 = vmul.f32 %v749_v32, %v720_v27  ;;  %v738_v42 = vld [vmem:[%s6716_s0 + $0x42] sm:$0x3f]  ;;  %v773_v53 = vld [vmem:[%s6716_s0 + $0x54] sm:$0x3f] }
 0x292   :  { %v1264_v7 = vsel %vm907_vm0, %v1230_v2, 0.0  ;;  %v725_v23 = vmul.f32 %v724_v13, %v723_v19  ;;  %v729_v26 = vstv %s4422_s21  ;;  %v755_v36 = vmul.f32 %v753_v24, %v724_v13 }
 0x293   :  { %v1249_v50 = vadd.f32 %v1248_v45, %v1247_v43  ;;  %v781_v38 = vmul.f32 %v779_v29, %v720_v27  ;;  %v730_v40 = vmul.f32 %v729_v26, %v728_v22  ;;  %v734_v41 = vstv %s4423_s16  ;;  %v833_v29 = vld [vmem:[%s6716_s0 + $0x72] sm:$0x3f] }
 0x294   :  { %v760_v43 = vmul.f32 %v758_v28, %v729_v26  ;;  %v785_v46 = vmul.f32 %v783_v30, %v724_v13  ;;  %v726_v47 = vadd.f32 %v725_v23, %v721_v12  ;;  %v735_v45 = vmul.f32 %v734_v41, %v733_v20 }
 0x295   :  { %v1251_v52 = vadd.f32 %v1250_v51, %v1249_v50  ;;  %v739_v50 = vstv %s4424_s25  ;;  %v743_v51 = vld [vmem:[%s6716_s0 + $0x48] sm:$0x3f]  ;;  %v744_v55 = vstv %s4425_s27  ;;  %s6189_s27 = sld [smem:[#allocation5 + $0x1a]] }
 0x296   :  { %v731_v60 = vadd.f32 %v730_v40, %v726_v47  ;;  %v740_v61 = vmul.f32 %v739_v50, %v738_v42  ;;  %v745_v2 = vmul.f32 %v744_v55, %v743_v51 }
 0x297   :  { %v1253_v57 = vadd.f32 %v1252_v56, %v1251_v52  ;;  %v756_v52 = vadd.f32 %v755_v36, %v751_v48  ;;  %v765_v56 = vmul.f32 %v763_v37, %v734_v41 }
 0x299   :  { %v1255_v59 = vadd.f32 %v1254_v58, %v1253_v57  ;;  %v790_v57 = vmul.f32 %v788_v39, %v729_v26  ;;  %v809_v58 = vld [vmem:[%s6716_s0 + $0x2a] sm:$0x3f] }
 0x29b   :  { %v1257_v63 = vadd.f32 %v1256_v62, %v1255_v59  ;;  %v813_v59 = vld [vmem:[%s6716_s0 + $0x30] sm:$0x3f]  ;;  %v761_v62 = vadd.f32 %v760_v43, %v756_v52 }
 0x29d   :  { %v1259_v1 = vadd.f32 %v1258_v0, %v1257_v63  ;;  %v770_v63 = vmul.f32 %v768_v44, %v739_v50  ;;  %v798_v0 = vld [vmem:[%s6716_s0 + $0x60] sm:$0x3f] }
 0x29f   :  { %v1261_v4 = vadd.f32 %v1260_v3, %v1259_v1  ;;  %v818_v1 = vld [vmem:[%s6716_s0 + $0x36] sm:$0x3f]  ;;  %v775_v3 = vmul.f32 %v773_v53, %v744_v55 }
 0x2a1   :  { %v1263_v6 = vadd.f32 %v1262_v5, %v1261_v4  ;;  %v786_v4 = vadd.f32 %v785_v46, %v781_v38  ;;  %v795_v5 = vmul.f32 %v793_v54, %v734_v41 }
 0x2a3   :  { %v1265_v9 = vadd.f32 %v1264_v7, %v1263_v6  ;;  %v823_v6 = vld [vmem:[%s6716_s0 + $0x66] sm:$0x3f]  ;;  %v736_v7 = vadd.f32 %v735_v45, %v731_v60 }
 0x2a4   :  { %v825_v22 = vmul.f32 %v823_v6, %v734_v41 }
 0x2a5   :  { %1266 = vadd.xlane.f32.xlu1 %v1265_v9  ;;  %v766_v9 = vadd.f32 %v765_v56, %v761_v62  ;;  %v741_v18 = vadd.f32 %v740_v61, %v736_v7 }
 0x2a7   :  { %v771_v19 = vadd.f32 %v770_v63, %v766_v9 }
 0x2a9   :  { %v776_v12 = vadd.f32 %v775_v3, %v771_v19 }
 0x2ab   :  { %777 = vst [vmem:[#allocation2 + $0x4e] sm:$0x3f] %v776_v12 }
 0x2b3   :  { %v1390_v30 = vpop.xlane.xlu0 %1389 }
 0x2b4   :  { %v1391_v36 = vrot.slane %v1390_v30, 4 }
 0x2b6   :  { %v1392_v40 = vadd.f32 %v1391_v36, %v1390_v30 }
 0x2b8   :  { %v1393_v46 = vrot.slane %v1392_v40, 2 }
 0x32e   :  { %v1267_v10 = vpop.xlane.xlu1 %1266 }
 0x32f   :  { %v1268_v11 = vrot.slane %v1267_v10, 4 }
 0x331   :  { %v1269_v8 = vadd.f32 %v1268_v11, %v1267_v10  ;;  %v803_v10 = vld [vmem:[%s6716_s0 + $0x66] sm:$0x3f]  ;;  %v811_v11 = vmul.f32 %v809_v58, %v720_v27  ;;  %v746_v27 = vadd.f32 %v745_v2, %v741_v18 }
 0x332   :  { %v805_v28 = vmul.f32 %v803_v10, %v744_v55 }
 0x333   :  { %v1270_v14 = vrot.slane %v1269_v8, 2  ;;  %747 = vst [vmem:[#allocation2 + $0x48] sm:$0x3f] %v746_v27 }
 0x335   :  { %v1271_v15 = vadd.f32 %v1270_v14, %v1269_v8  ;;  %v815_v8 = vmul.f32 %v813_v59, %v724_v13  ;;  %v791_v14 = vadd.f32 %v790_v57, %v786_v4  ;;  %v1394_v57 = vadd.f32 %v1393_v46, %v1392_v40 }
 0x337   :  { %v1272_v16 = vrot.slane %v1271_v15, 1  ;;  %v816_v32 = vadd.f32 %v815_v8, %v811_v11  ;;  %v796_v24 = vadd.f32 %v795_v5, %v791_v14 }
 0x339   :  { %v1273_v17 = vadd.f32 %v1272_v16, %v1271_v15  ;;  %v800_v15 = vmul.f32 %v798_v0, %v739_v50  ;;  %v820_v16 = vmul.f32 %v818_v1, %v729_v26  ;;  %v835_v26 = vmul.f32 %v833_v29, %v744_v55 }
 0x33a   :  { %v6080_v41 = vld [vmem:[#allocation2 + $0x48] sm:$0xff]  ;;  %v1395_v1 = vrot.slane %v1394_v57, 1 }
 0x33b   :  { %4914 = vpush %v1273_v17  ;;  %v828_v17 = vld [vmem:[%s6716_s0 + $0x6c] sm:$0x3f]  ;;  %v821_v13 = vadd.f32 %v820_v16, %v816_v32  ;;  %v801_v48 = vadd.f32 %v800_v15, %v796_v24  ;;  %v1532_v43 = vcombine.high %v6080_v41, %v6080_v41  ;;  %v1539_v44 = vrot.slane %v6080_v41, %v5694_v31  ;;  %s4446_s0 = sld [smem:[#allocation5 + $0x79]] }
 0x33c   :  { %v830_v20 = vmul.f32 %v828_v17, %v739_v50  ;;  %v1396_v8 = vadd.f32 %v1395_v1, %v1394_v57 }
 0x33d   :  { %v826_v23 = vadd.f32 %v825_v22, %v821_v13  ;;  %v806_v37 = vadd.f32 %v805_v28, %v801_v48  ;;  %v1546_v45 = vrot.slane %v1532_v43, %v5694_v31  ;;  %v1547_v50 = vcombine.high %v1539_v44, %v1539_v44 }
 0x33e   :  { %v1595_v51 = vsel %vm907_vm0, %v1539_v44, 0.0 }
 0x33f   :  { %v831_v38 = vadd.f32 %v830_v20, %v826_v23  ;;  %807 = vst [vmem:[#allocation2 + $0x54] sm:$0x3f] %v806_v37  ;;  %v1548_v54 = vcombine.high %v1546_v45, %v1546_v45  ;;  %v1596_v55 = vsel %vm907_vm0, %v1547_v50, 0.0  ;;  %v1598_v56 = vsel %vm907_vm0, %v1546_v45, 0.0 }
 0x340   :  { %v1597_v58 = vadd.f32 %v1596_v55, %v1595_v51  ;;  %v1287_v20 = vstv %s4447_s20 }
 0x341   :  { %v836_v39 = vadd.f32 %v835_v26, %v831_v38  ;;  %v1600_v61 = vsel %vm907_vm0, %v1548_v54, 0.0 }
 0x342   :  { %v1599_v63 = vadd.f32 %v1598_v56, %v1597_v58 }
 0x343   :  { %837 = vst [vmem:[#allocation2 + $0x5a] sm:$0x3f] %v836_v39 }
 0x344   :  { %v1601_v2 = vadd.f32 %v1600_v61, %v1599_v63 }
 0x346   :  { %v6086_v47 = vld [vmem:[#allocation2 + $0x50] sm:$0xff] }
 0x347   :  { %v1549_v52 = vcombine.high %v6086_v47, %v6086_v47  ;;  %v1556_v53 = vrot.slane %v6086_v47, %v5694_v31 }
 0x349   :  { %v1563_v59 = vrot.slane %v1549_v52, %v5694_v31  ;;  %v1564_v60 = vcombine.high %v1556_v53, %v1556_v53  ;;  %v1602_v0 = vsel %vm907_vm0, %v1556_v53, 0.0 }
 0x34a   :  { %v6098_v62 = vld [vmem:[#allocation2 + $0x58] sm:$0xff]  ;;  %v1603_v7 = vadd.f32 %v1602_v0, %v1601_v2 }
 0x34b   :  { %v1565_v3 = vcombine.high %v1563_v59, %v1563_v59  ;;  %v1566_v4 = vcombine.high %v6098_v62, %v6098_v62  ;;  %v1573_v5 = vrot.slane %v6098_v62, %v5694_v31  ;;  %v1604_v6 = vsel %vm907_vm0, %v1564_v60, 0.0 }
 0x34c   :  { %v1606_v9 = vsel %vm907_vm0, %v1563_v59, 0.0  ;;  %v1605_v10 = vadd.f32 %v1604_v6, %v1603_v7 }
 0x34d   :  { %v1580_v14 = vrot.slane %v1566_v4, %v5694_v31  ;;  %v1581_v15 = vcombine.high %v1573_v5, %v1573_v5  ;;  %v1608_v16 = vsel %vm907_vm0, %v1565_v3, 0.0  ;;  %v1610_v18 = vsel %vm907_vm0, %v1573_v5, 0.0 }
 0x34e   :  { %v1607_v17 = vadd.f32 %v1606_v9, %v1605_v10 }
 0x34f   :  { %v1582_v32 = vcombine.high %v1580_v14, %v1580_v14  ;;  %v1612_v22 = vsel %vm907_vm0, %v1581_v15, 0.0  ;;  %v1614_v28 = vsel %vm907_vm0, %v1580_v14, 0.0 }
 0x350   :  { %v1609_v19 = vadd.f32 %v1608_v16, %v1607_v17 }
 0x351   :  { %v1616_v30 = vsel %vm907_vm0, %v1582_v32, 0.0 }
 0x352   :  { %v1611_v24 = vadd.f32 %v1610_v18, %v1609_v19 }
 0x354   :  { %v1613_v29 = vadd.f32 %v1612_v22, %v1611_v24 }
 0x356   :  { %v1615_v27 = vadd.f32 %v1614_v28, %v1613_v29 }
 0x358   :  { %v1617_v12 = vadd.f32 %v1616_v30, %v1615_v27 }
 0x35a   :  { %1618 = vadd.xlane.f32.xlu0 %v1617_v12 }
 0x36c   :  { %s4915_s17 = spop %4914 }
 0x36d   :  { %s1275_s15 = smul.f32 0.00032552084, %s4915_s17  ;;  %s6207_s17 = sld [smem:[#allocation5 + $0x3b]] }
 0x36f   :  { %s1277_s13 = sadd.f32 1e-05, %s1275_s15 }
 0x370   :  { %s6209_s15 = sld [smem:[#allocation5 + $0x48]] }
 0x371   :  { %v1278_v42 = vstv %s1277_s13  ;;  %s6211_s13 = sld [smem:[#allocation5 + $0x49]] }
 0x372   :  { %4982 = vrsqrt.f32 %v1278_v42 }
 0x37f   :  { %v4983_v11 = vpop.eup %4982 }
 0x380   :  { %4916 = vpush %v4983_v11 }
 0x381   :  { %4918 = vpush %v1396_v8 }
 0x3b1   :  { %s4917_s3 = spop %4916 }
 0x3b2   :  { %s1281_s18 = smul.f32 %s4917_s3, %s4446_s0  ;;  %s4919_s21 = spop %4918 }
 0x3b3   :  { %s1398_s24 = smul.f32 0.00032552084, %s4919_s21  ;;  %s6213_s0 = sld [smem:[#allocation5 + $0x4a]] }
 0x3b4   :  { %v1282_v13 = vstv %s1281_s18  ;;  %s6215_s3 = sld [smem:[#allocation5 + $0x4b]] }
 0x3b5   :  { %v1283_v48 = vmul.f32 %v1282_v13, %v5976_v21  ;;  %v1284_v23 = vmul.f32 %v1282_v13, %v5979_v35  ;;  %v1285_v26 = vmul.f32 %v1282_v13, %v5988_v34  ;;  %v1399_v36 = vstv %s1398_s24  ;;  %s6217_s21 = sld [smem:[#allocation5 + $0x58]] }
 0x3b6   :  { %v6117_v37 = vsub.f32 %v5939_v25, %v1399_v36  ;;  %v6120_v38 = vsub.f32 %v5945_v33, %v1399_v36  ;;  %v6129_v50 = vsub.f32 %v5957_v49, %v1399_v36  ;;  %s6219_s24 = sld [smem:[#allocation5 + $0x59]] }
 0x3b7   :  { %v1288_v39 = vadd.f32 %v1287_v20, %v1283_v48  ;;  %v1289_v40 = vadd.f32 %v1287_v20, %v1284_v23  ;;  %v1290_v42 = vadd.f32 %v1287_v20, %v1285_v26 }
 0x3b8   :  { %v1403_v43 = vmul.f32 %v6117_v37, %v6117_v37  ;;  %v1404_v35 = vmul.f32 %v6120_v38, %v6120_v38  ;;  %v1405_v59 = vmul.f32 %v6129_v50, %v6129_v50 }
 0x3b9   :  { %v1291_v44 = vmax.f32 %v1288_v39, 0.0  ;;  %v1292_v46 = vmax.f32 %v1289_v40, 0.0  ;;  %v1293_v21 = vmax.f32 %v1290_v42, 0.0 }
 0x3ba   :  { %v1409_v34 = vcombine.high %v1403_v43, %v1403_v43  ;;  %v1416_v45 = vrot.slane %v1403_v43, %v5694_v31  ;;  %v1426_v51 = vcombine.high %v1404_v35, %v1404_v35  ;;  %v1433_v53 = vrot.slane %v1404_v35, %v5694_v31 }
 0x3bb   :  { %1294 = vst [vmem:[#allocation2 + $0x18] sm:$0xff] %v1291_v44  ;;  %1295 = vst [vmem:[#allocation2 + $0x20] sm:$0xff] %v1292_v46  ;;  %v1443_v3 = vcombine.high %v1405_v59, %v1405_v59  ;;  %v1450_v4 = vrot.slane %v1405_v59, %v5694_v31  ;;  %v1516_v35 = vstv %s4449_s26  ;;  %s6227_s26 = sld [smem:[#allocation5 + $0x69]] }
 0x3bc   :  { %1296 = vst [vmem:[#allocation2 + $0x28] sm:$0xff] %v1293_v21  ;;  %v1423_v25 = vrot.slane %v1409_v34, %v5694_v31  ;;  %v1424_v33 = vcombine.high %v1416_v45, %v1416_v45  ;;  %v1472_v54 = vsel %vm907_vm0, %v1416_v45, 0.0  ;;  %v1440_v60 = vrot.slane %v1426_v51, %v5694_v31 }
 0x3bd   :  { %v1441_v61 = vcombine.high %v1433_v53, %v1433_v53  ;;  %v1479_v0 = vsel %vm907_vm0, %v1433_v53, 0.0  ;;  %v1457_v10 = vrot.slane %v1443_v3, %v5694_v31  ;;  %v1458_v11 = vcombine.high %v1450_v4, %v1450_v4 }
 0x3be   :  { %v1425_v52 = vcombine.high %v1423_v25, %v1423_v25  ;;  %v1473_v55 = vsel %vm907_vm0, %v1424_v33, 0.0  ;;  %v1475_v57 = vsel %vm907_vm0, %v1423_v25, 0.0  ;;  %v1442_v2 = vcombine.high %v1440_v60, %v1440_v60 }
 0x3bf   :  { %v1474_v56 = vadd.f32 %v1473_v55, %v1472_v54  ;;  %v1481_v5 = vsel %vm907_vm0, %v1441_v61, 0.0  ;;  %v1483_v7 = vsel %vm907_vm0, %v1440_v60, 0.0  ;;  %v1487_v15 = vsel %vm907_vm0, %v1450_v4, 0.0 }
 0x3c0   :  { %v1477_v49 = vsel %vm907_vm0, %v1425_v52, 0.0  ;;  %v1485_v8 = vsel %vm907_vm0, %v1442_v2, 0.0  ;;  %v1459_v17 = vcombine.high %v1457_v10, %v1457_v10  ;;  %v1489_v18 = vsel %vm907_vm0, %v1458_v11, 0.0 }
 0x3c1   :  { %v1476_v58 = vadd.f32 %v1475_v57, %v1474_v56  ;;  %v1491_v32 = vsel %vm907_vm0, %v1457_v10, 0.0 }
 0x3c2   :  { %v1493_v24 = vsel %vm907_vm0, %v1459_v17, 0.0 }
 0x3c3   :  { %v1478_v63 = vadd.f32 %v1477_v49, %v1476_v58 }
 0x3c5   :  { %v1480_v1 = vadd.f32 %v1479_v0, %v1478_v63 }
 0x3c7   :  { %v1482_v6 = vadd.f32 %v1481_v5, %v1480_v1 }
 0x3c9   :  { %v1484_v9 = vadd.f32 %v1483_v7, %v1482_v6 }
 0x3cb   :  { %v1486_v14 = vadd.f32 %v1485_v8, %v1484_v9 }
 0x3cd   :  { %v1488_v16 = vadd.f32 %v1487_v15, %v1486_v14 }
 0x3cf   :  { %v1490_v19 = vadd.f32 %v1489_v18, %v1488_v16 }
 0x3d1   :  { %v1492_v22 = vadd.f32 %v1491_v32, %v1490_v19 }
 0x3d3   :  { %v1494_v28 = vadd.f32 %v1493_v24, %v1492_v22 }
 0x3d5   :  { %1495 = vadd.xlane.f32.xlu1 %v1494_v28 }
 0x3e3   :  { %v1619_v23 = vpop.xlane.xlu0 %1618 }
 0x3e4   :  { %v1620_v26 = vrot.slane %v1619_v23, 4 }
 0x3e6   :  { %v1621_v36 = vadd.f32 %v1620_v26, %v1619_v23 }
 0x3e8   :  { %v1622_v40 = vrot.slane %v1621_v36, 2 }
 0x3ea   :  { %v1623_v42 = vadd.f32 %v1622_v40, %v1621_v36 }
 0x3ec   :  { %v1624_v43 = vrot.slane %v1623_v42, 1 }
 0x3ee   :  { %v1625_v46 = vadd.f32 %v1624_v43, %v1623_v42 }
 0x45e   :  { %v1496_v29 = vpop.xlane.xlu1 %1495 }
 0x45f   :  { %v1497_v30 = vrot.slane %v1496_v29, 4 }
 0x461   :  { %v1498_v27 = vadd.f32 %v1497_v30, %v1496_v29 }
 0x463   :  { %v1499_v12 = vrot.slane %v1498_v27, 2 }
 0x465   :  { %v1500_v13 = vadd.f32 %v1499_v12, %v1498_v27 }
 0x467   :  { %v1501_v20 = vrot.slane %v1500_v13, 1 }
 0x469   :  { %v1502_v48 = vadd.f32 %v1501_v20, %v1500_v13 }
 0x46b   :  { %4920 = vpush %v1502_v48 }
 0x49c   :  { %s4921_s19 = spop %4920 }
 0x49d   :  { %s1504_s16 = smul.f32 0.00032552084, %s4921_s19 }
 0x49f   :  { %s1506_s22 = sadd.f32 1e-05, %s1504_s16 }
 0x4a0   :  { %s6221_s16 = sld [smem:[#allocation5 + $0x5a]] }
 0x4a1   :  { %v1507_v39 = vstv %s1506_s22  ;;  %s6223_s22 = sld [smem:[#allocation5 + $0x5b]] }
 0x4a2   :  { %4984 = vrsqrt.f32 %v1507_v39 }
 0x4a7   :  { %6724 = sst [smem:[#allocation10_spill]] %s6223_s22 }
 0x4a8   :  { %s6247_s22 = sld [smem:[#allocation5 + $0x2f]] }
 0x4ae   :  { %6731 = sst [smem:[#allocation17_spill]] %s6247_s22 }
 0x4af   :  { %v4985_v44 = vpop.eup %4984  ;;  %s6261_s22 = sld [smem:[#allocation5 + $0x4e]] }
 0x4b0   :  { %4922 = vpush %v4985_v44 }
 0x4b1   :  { %4924 = vpush %v1625_v46 }
 0x4e1   :  { %s4923_s23 = spop %4922 }
 0x4e2   :  { %s1510_s25 = smul.f32 %s4923_s23, %s4448_s1  ;;  %s4925_s28 = spop %4924 }
 0x4e3   :  { %s1627_s29 = smul.f32 0.00032552084, %s4925_s28  ;;  %s6225_s1 = sld [smem:[#allocation5 + $0x68]] }
 0x4e4   :  { %v1511_v21 = vstv %s1510_s25  ;;  %s6229_s23 = sld [smem:[#allocation5 + $0x6a]] }
 0x4e5   :  { %v1512_v34 = vmul.f32 %v1511_v21, %v6117_v37  ;;  %v1513_v45 = vmul.f32 %v1511_v21, %v6120_v38  ;;  %v1514_v25 = vmul.f32 %v1511_v21, %v6129_v50  ;;  %v1628_v33 = vstv %s1627_s29  ;;  %s6231_s25 = sld [smem:[#allocation5 + $0x6b]] }
 0x4e6   :  { %v6153_v51 = vsub.f32 %v6080_v41, %v1628_v33  ;;  %v6156_v52 = vsub.f32 %v6086_v47, %v1628_v33  ;;  %v6165_v60 = vsub.f32 %v6098_v62, %v1628_v33  ;;  %s6233_s28 = sld [smem:[#allocation5 + $0x1c]]  ;;  %v1776_v33 = vstv %s6187_s5 }
 0x4e7   :  { %v1517_v53 = vadd.f32 %v1516_v35, %v1512_v34  ;;  %v1518_v54 = vadd.f32 %v1516_v35, %v1513_v45  ;;  %v1519_v55 = vadd.f32 %v1516_v35, %v1514_v25  ;;  %s6235_s29 = sld [smem:[#allocation5 + $0x1d]]  ;;  %v1755_v34 = vld [vmem:[#allocation2] sm:$0x3f]  ;;  %v1774_v45 = vld [vmem:[#allocation2 + $0x6] sm:$0x3f]  ;;  %v1757_v25 = vstv %s6185_s30 }
 0x4e8   :  { %v1632_v56 = vmul.f32 %v6153_v51, %v6153_v51  ;;  %v1633_v38 = vmul.f32 %v6156_v52, %v6156_v52  ;;  %v1634_v5 = vmul.f32 %v6165_v60, %v6165_v60  ;;  %s6283_s30 = sld [smem:[#allocation5 + $0x5f]] }
 0x4e9   :  { %v1520_v57 = vmax.f32 %v1517_v53, 0.0  ;;  %v1521_v58 = vmax.f32 %v1518_v54, 0.0  ;;  %v1522_v37 = vmax.f32 %v1519_v55, 0.0  ;;  %v1760_v53 = vstv %s6193_s7  ;;  %s6289_s5 = sld [smem:[#allocation5 + $0x6c]] }
 0x4ea   :  { %v1638_v50 = vcombine.high %v1632_v56, %v1632_v56  ;;  %v1645_v59 = vrot.slane %v1632_v56, %v5694_v31  ;;  %v1655_v61 = vcombine.high %v1633_v38, %v1633_v38  ;;  %v1662_v63 = vrot.slane %v1633_v38, %v5694_v31  ;;  %s6291_s7 = sld [smem:[#allocation5 + $0x6d]] }
 0x4eb   :  { %1523 = vst [vmem:[#allocation2 + $0x30] sm:$0xff] %v1520_v57  ;;  %1524 = vst [vmem:[#allocation2 + $0x38] sm:$0xff] %v1521_v58  ;;  %v1672_v14 = vcombine.high %v1634_v5, %v1634_v5  ;;  %v1679_v15 = vrot.slane %v1634_v5, %v5694_v31  ;;  %6725 = sst [smem:[#allocation11_spill]] %s6231_s25  ;;  %v1780_v54 = vstv %s6195_s8  ;;  %v1763_v55 = vstv %s6201_s14 }
 0x4ec   :  { %1525 = vst [vmem:[#allocation2 + $0x40] sm:$0xff] %v1522_v37  ;;  %v1652_v41 = vrot.slane %v1638_v50, %v5694_v31  ;;  %v1653_v47 = vcombine.high %v1645_v59, %v1645_v59  ;;  %v1701_v0 = vsel %vm907_vm0, %v1645_v59, 0.0  ;;  %v1669_v6 = vrot.slane %v1655_v61, %v5694_v31  ;;  %s6249_s25 = sld [smem:[#allocation5 + $0x3c]] }
 0x4ed   :  { %v1670_v7 = vcombine.high %v1662_v63, %v1662_v63  ;;  %v1708_v10 = vsel %vm907_vm0, %v1662_v63, 0.0  ;;  %v1686_v32 = vrot.slane %v1672_v14, %v5694_v31  ;;  %v1687_v22 = vcombine.high %v1679_v15, %v1679_v15  ;;  %6726 = sst [smem:[#allocation12_spill]] %s6235_s29 }
 0x4ee   :  { %v1654_v49 = vcombine.high %v1652_v41, %v1652_v41  ;;  %v1702_v1 = vsel %vm907_vm0, %v1653_v47, 0.0  ;;  %v1704_v3 = vsel %vm907_vm0, %v1652_v41, 0.0  ;;  %v1671_v8 = vcombine.high %v1669_v6, %v1669_v6  ;;  %s6251_s29 = sld [smem:[#allocation5 + $0x3d]] }
 0x4ef   :  { %v1703_v2 = vadd.f32 %v1702_v1, %v1701_v0  ;;  %v1710_v16 = vsel %vm907_vm0, %v1670_v7, 0.0  ;;  %v1712_v18 = vsel %vm907_vm0, %v1669_v6, 0.0  ;;  %v1716_v29 = vsel %vm907_vm0, %v1679_v15, 0.0  ;;  %v1799_v7 = vld [vmem:[#allocation2 + $0xc] sm:$0x3f]  ;;  %s6297_s8 = sld [smem:[#allocation5 + $0x6f]] }
 0x4f0   :  { %v1706_v62 = vsel %vm907_vm0, %v1654_v49, 0.0  ;;  %v1714_v24 = vsel %vm907_vm0, %v1671_v8, 0.0  ;;  %v1688_v27 = vcombine.high %v1686_v32, %v1686_v32  ;;  %v1718_v12 = vsel %vm907_vm0, %v1687_v22, 0.0  ;;  %v1824_v22 = vld [vmem:[#allocation2 + $0x12] sm:$0x3f]  ;;  %s6305_s14 = sld [smem:[#allocation5 + $0x21]] }
 0x4f1   :  { %v1705_v4 = vadd.f32 %v1704_v3, %v1703_v2  ;;  %v1720_v20 = vsel %vm907_vm0, %v1686_v32, 0.0  ;;  %v1784_v56 = vstv %s6203_s11  ;;  %v1766_v57 = vstv %s6209_s15  ;;  %s6307_s11 = sld [smem:[#allocation5 + $0x22]] }
 0x4f2   :  { %v1722_v23 = vsel %vm907_vm0, %v1688_v27, 0.0  ;;  %6732 = sst [smem:[#allocation18_spill]] %s6249_s25  ;;  %v1788_v58 = vstv %s6211_s13  ;;  %v1769_v37 = vstv %s6217_s21  ;;  %v1792_v38 = vstv %s6219_s24 }
 0x4f3   :  { %v1707_v9 = vadd.f32 %v1706_v62, %v1705_v4  ;;  %s6263_s25 = sld [smem:[#allocation5 + $0x4f]]  ;;  %v1772_v50 = vstv %s6225_s1  ;;  %v1796_v59 = vstv %s6227_s26  ;;  %v1758_v41 = vmul.f32 %v1757_v25, %v1755_v34 }
 0x4f4   :  { %v1777_v47 = vmul.f32 %v1776_v33, %v1774_v45  ;;  %v1761_v61 = vmul.f32 %v1760_v53, %v1755_v34  ;;  %v1781_v49 = vmul.f32 %v1780_v54, %v1774_v45  ;;  %v1801_v63 = vstv %s6189_s27  ;;  %s6293_s27 = sld [smem:[#allocation5 + $0x6e]] }
 0x4f5   :  { %v1709_v11 = vadd.f32 %v1708_v10, %v1707_v9  ;;  %v1826_v0 = vstv %s6191_s6  ;;  %v1805_v1 = vstv %s6197_s9  ;;  %v1830_v2 = vstv %s6199_s10  ;;  %s6736_s6 = sld [smem:[#allocation10_spill]] }
 0x4f6   :  { %v1764_v3 = vmul.f32 %v1763_v55, %v1755_v34  ;;  %v1785_v4 = vmul.f32 %v1784_v56, %v1774_v45  ;;  %v1767_v5 = vmul.f32 %v1766_v57, %v1755_v34  ;;  %v1789_v6 = vmul.f32 %v1788_v58, %v1774_v45  ;;  %s6737_s9 = sld [smem:[#allocation11_spill]] }
 0x4f7   :  { %v1711_v17 = vadd.f32 %v1710_v16, %v1709_v11  ;;  %v1770_v62 = vmul.f32 %v1769_v37, %v1755_v34  ;;  %v1793_v9 = vmul.f32 %v1792_v38, %v1774_v45  ;;  %v1773_v10 = vmul.f32 %v1772_v50, %v1755_v34  ;;  %s6299_s10 = sld [smem:[#allocation5 + $0x20]]  ;;  %v1849_v34 = vld [vmem:[#allocation2 + $0x18] sm:$0x3f] }
 0x4f8   :  { %v1797_v11 = vmul.f32 %v1796_v59, %v1774_v45  ;;  %v1778_v8 = vadd.f32 %v1777_v47, %v1758_v41  ;;  %v1782_v14 = vadd.f32 %v1781_v49, %v1761_v61  ;;  %v1809_v15 = vstv %s6205_s12  ;;  %s6311_s12 = sld [smem:[#allocation5 + $0x23]] }
 0x4f9   :  { %v1713_v19 = vadd.f32 %v1712_v18, %v1711_v17  ;;  %6735 = sst [smem:[#allocation21_spill]] %s6263_s25  ;;  %v1834_v16 = vstv %s6207_s17  ;;  %v1813_v17 = vstv %s6213_s0  ;;  %v1838_v18 = vstv %s6215_s3 }
 0x4fa   :  { %s6279_s25 = sld [smem:[#allocation5 + $0x5e]]  ;;  %v1821_v32 = vstv %s6229_s23  ;;  %v1794_v27 = vadd.f32 %v1793_v9, %v1770_v62  ;;  %v1851_v45 = vstv %s6233_s28  ;;  %v1871_v50 = vstv %s6289_s5 }
 0x4fb   :  { %v1715_v28 = vadd.f32 %v1714_v24, %v1713_v19  ;;  %v1817_v19 = vstv %s6221_s16  ;;  %v1802_v24 = vmul.f32 %v1801_v63, %v1799_v7  ;;  %s6313_s17 = sld [smem:[#allocation5 + $0x30]]  ;;  %v1852_v59 = vmul.f32 %v1851_v45, %v1849_v34 }
 0x4fc   :  { %s6738_s15 = sld [smem:[#allocation18_spill]] }
 0x4fd   :  { %v1717_v30 = vadd.f32 %v1716_v29, %v1715_v28  ;;  %v1806_v28 = vmul.f32 %v1805_v1, %v1799_v7  ;;  %v1786_v29 = vadd.f32 %v1785_v4, %v1764_v3  ;;  %s6315_s13 = sld [smem:[#allocation5 + $0x31]] }
 0x4fe   :  { %s6319_s0 = sld [smem:[#allocation5 + $0x32]] }
 0x4ff   :  { %v1719_v13 = vadd.f32 %v1718_v12, %v1717_v30  ;;  %v1790_v30 = vadd.f32 %v1789_v6, %v1767_v5  ;;  %v1842_v12 = vstv %s6736_s6  ;;  %s6321_s3 = sld [smem:[#allocation5 + $0x33]]  ;;  %v1872_v5 = vmul.f32 %v1871_v50, %v1849_v34  ;;  %v1874_v6 = vld [vmem:[#allocation2 + $0x1e] sm:$0x3f] }
 0x500   :  { %s6739_s21 = sld [smem:[#allocation12_spill]]  ;;  %v1843_v58 = vmul.f32 %v1842_v12, %v1824_v22 }
 0x501   :  { %v1721_v48 = vadd.f32 %v1720_v20, %v1719_v13  ;;  %v1798_v13 = vadd.f32 %v1797_v11, %v1773_v10  ;;  %v1846_v20 = vstv %s6737_s9  ;;  %s6325_s24 = sld [smem:[#allocation5 + $0x40]] }
 0x502   :  { %v1859_v56 = vstv %s6738_s15  ;;  %v1847_v38 = vmul.f32 %v1846_v20, %v1824_v22  ;;  %s6742_s26 = sld [smem:[#allocation15_spill]] }
 0x503   :  { %v1723_v26 = vadd.f32 %v1722_v23, %v1721_v48  ;;  %v1803_v48 = vadd.f32 %v1802_v24, %v1778_v8  ;;  %v1807_v23 = vadd.f32 %v1806_v28, %v1782_v14  ;;  %s6743_s23 = sld [smem:[#allocation16_spill]]  ;;  %v1860_v49 = vmul.f32 %v1859_v56, %v1849_v34 }
 0x504   :  { %s6329_s28 = sld [smem:[#allocation5 + $0x41]]  ;;  %v1884_v14 = vstv %s6251_s29 }
 0x505   :  { %1724 = vadd.xlane.f32.xlu1 %v1723_v26  ;;  %v1810_v26 = vmul.f32 %v1809_v15, %v1799_v7  ;;  %s6341_s5 = sld [smem:[#allocation5 + $0x50]]  ;;  %v1888_v15 = vstv %s6259_s2 }
 0x506   :  { %s6345_s9 = sld [smem:[#allocation5 + $0x51]]  ;;  %v1889_v12 = vmul.f32 %v1888_v15, %v1874_v6 }
 0x507   :  { %s6347_s15 = sld [smem:[#allocation5 + $0x52]]  ;;  %v1959_v15 = vstv %s6325_s24 }
 0x508   :  { %v1880_v62 = vstv %s6742_s26  ;;  %s6355_s2 = sld [smem:[#allocation5 + $0x60]] }
 0x509   :  { %v1905_v9 = vstv %s6743_s23  ;;  %s6746_s29 = sld [smem:[#allocation20_spill]] }
 0x50a   :  { %s6375_s26 = sld [smem:[#allocation5 + $0x73]] }
 0x50b   :  { %s6377_s23 = sld [smem:[#allocation5 + $0x7b]] }
 0x50f   :  { %v1934_v45 = vstv %s6746_s29  ;;  %s6438_s29 = sld [smem:[#allocation5 + $0x56]] }
 0x58e   :  { %v1725_v36 = vpop.xlane.xlu1 %1724 }
 0x58f   :  { %v1726_v39 = vrot.slane %v1725_v36, 4 }
 0x591   :  { %v1727_v40 = vadd.f32 %v1726_v39, %v1725_v36  ;;  %v1814_v36 = vmul.f32 %v1813_v17, %v1799_v7  ;;  %v1827_v39 = vmul.f32 %v1826_v0, %v1824_v22 }
 0x593   :  { %v1728_v42 = vrot.slane %v1727_v40, 2  ;;  %v1828_v54 = vadd.f32 %v1827_v39, %v1803_v48 }
 0x595   :  { %v1729_v43 = vadd.f32 %v1728_v42, %v1727_v40  ;;  %v1831_v40 = vmul.f32 %v1830_v2, %v1824_v22  ;;  %v1818_v42 = vmul.f32 %v1817_v19, %v1799_v7  ;;  %v1876_v2 = vstv %s6739_s21  ;;  %s6351_s21 = sld [smem:[#allocation5 + $0x53]] }
 0x596   :  { %v1853_v11 = vadd.f32 %v1852_v59, %v1828_v54  ;;  %v1896_v19 = vstv %s6291_s7  ;;  %s6747_s7 = sld [smem:[#allocation21_spill]] }
 0x597   :  { %v1730_v44 = vrot.slane %v1729_v43, 1  ;;  %v1819_v33 = vadd.f32 %v1818_v42, %v1794_v27  ;;  %v1832_v55 = vadd.f32 %v1831_v40, %v1807_v23  ;;  %v1917_v40 = vstv %s6279_s25  ;;  %s6369_s25 = sld [smem:[#allocation5 + $0x71]] }
 0x598   :  { %v1921_v42 = vstv %s6293_s27  ;;  %s6373_s27 = sld [smem:[#allocation5 + $0x72]] }
 0x599   :  { %v1731_v46 = vadd.f32 %v1730_v44, %v1729_v43  ;;  %v1822_v43 = vmul.f32 %v1821_v32, %v1799_v7  ;;  %v1811_v44 = vadd.f32 %v1810_v26, %v1786_v29  ;;  %v1844_v0 = vadd.f32 %v1843_v58, %v1819_v33  ;;  %v1899_v29 = vld [vmem:[#allocation2 + $0x24] sm:$0x3f] }
 0x59a   :  { %v1877_v32 = vmul.f32 %v1876_v2, %v1874_v6  ;;  %v1897_v26 = vmul.f32 %v1896_v19, %v1874_v6  ;;  %v1922_v56 = vmul.f32 %v1921_v42, %v1899_v29  ;;  %v1967_v19 = vstv %s6355_s2  ;;  %s6436_s2 = sld [smem:[#allocation5 + $0x55]] }
 0x59b   :  { %4926 = vpush %v1731_v46  ;;  %v1835_v46 = vmul.f32 %v1834_v16, %v1824_v22  ;;  %v1823_v53 = vadd.f32 %v1822_v43, %v1798_v13  ;;  %v1913_v13 = vstv %s6261_s22  ;;  %s6363_s22 = sld [smem:[#allocation5 + $0x63]] }
 0x59c   :  { %v1878_v20 = vadd.f32 %v1877_v32, %v1853_v11  ;;  %v1938_v33 = vstv %s6747_s7  ;;  %s6442_s7 = sld [smem:[#allocation5 + $0x64]] }
 0x59d   :  { %v1836_v47 = vadd.f32 %v1835_v46, %v1811_v44  ;;  %v1848_v1 = vadd.f32 %v1847_v38, %v1823_v53  ;;  %v1906_v44 = vmul.f32 %v1905_v9, %v1899_v29  ;;  %v1946_v38 = vstv %s6297_s8  ;;  %s6387_s8 = sld [smem:[#allocation5 + $0x25]] }
 0x59e   :  { %v2001_v9 = vstv %s6307_s11  ;;  %s6405_s11 = sld [smem:[#allocation5 + $0x35]] }
 0x59f   :  { %v1861_v16 = vadd.f32 %v1860_v49, %v1836_v47  ;;  %v1873_v28 = vadd.f32 %v1872_v5, %v1848_v1  ;;  %v1955_v5 = vstv %s6313_s17  ;;  %s6410_s17 = sld [smem:[#allocation5 + $0x36]] }
 0x5cc   :  { %s4927_s20 = spop %4926 }
 0x5cd   :  { %s1733_s18 = smul.f32 0.00032552084, %s4927_s20  ;;  %s6237_s20 = sld [smem:[#allocation5 + $0x1e]] }
 0x5cf   :  { %s1735_s19 = sadd.f32 1e-05, %s1733_s18 }
 0x5d0   :  { %s6239_s18 = sld [smem:[#allocation5 + $0x1f]] }
 0x5d1   :  { %v1736_v21 = vstv %s1735_s19  ;;  %s6241_s19 = sld [smem:[#allocation5 + $0x2c]] }
 0x5d2   :  { %4986 = vrsqrt.f32 %v1736_v21  ;;  %v1815_v21 = vadd.f32 %v1814_v36, %v1790_v30  ;;  %v1885_v30 = vmul.f32 %v1884_v14, %v1874_v6  ;;  %v1980_v14 = vstv %s6315_s13  ;;  %s6413_s13 = sld [smem:[#allocation5 + $0x37]] }
 0x5d3   :  { %6727 = sst [smem:[#allocation13_spill]] %s6237_s20 }
 0x5d4   :  { %s6257_s20 = sld [smem:[#allocation5 + $0x4c]]  ;;  %v1886_v36 = vadd.f32 %v1885_v30, %v1861_v16  ;;  %v1963_v16 = vstv %s6341_s5 }
 0x5d5   :  { %s6740_s16 = sld [smem:[#allocation13_spill]] }
 0x5d6   :  { %6728 = sst [smem:[#allocation14_spill]] %s6239_s18 }
 0x5d7   :  { %s6253_s18 = sld [smem:[#allocation5 + $0x3e]]  ;;  %v1855_v25 = vstv %s6241_s19 }
 0x5d8   :  { %s6741_s1 = sld [smem:[#allocation14_spill]]  ;;  %v1856_v41 = vmul.f32 %v1855_v25, %v1849_v34  ;;  %v1914_v25 = vmul.f32 %v1913_v13, %v1899_v29  ;;  %v2013_v13 = vstv %s6347_s15 }
 0x5d9   :  { %s6744_s19 = sld [smem:[#allocation17_spill]] }
 0x5da   :  { %v1863_v57 = vstv %s6257_s20  ;;  %s6331_s20 = sld [smem:[#allocation5 + $0x42]]  ;;  %v1857_v8 = vadd.f32 %v1856_v41, %v1832_v55  ;;  %v1918_v55 = vmul.f32 %v1917_v40, %v1899_v29 }
 0x5db   :  { %v1864_v63 = vmul.f32 %v1863_v57, %v1849_v34  ;;  %v1901_v3 = vstv %s6740_s16  ;;  %s6360_s16 = sld [smem:[#allocation5 + $0x62]] }
 0x5dc   :  { %v1902_v43 = vmul.f32 %v1901_v3, %v1899_v29  ;;  %v1949_v3 = vld [vmem:[#allocation2 + $0x30] sm:$0x3f]  ;;  %s6426_s5 = sld [smem:[#allocation5 + $0x46]] }
 0x5dd   :  { %6733 = sst [smem:[#allocation19_spill]] %s6253_s18  ;;  %v1960_v30 = vmul.f32 %v1959_v15, %v1949_v3 }
 0x5de   :  { %s6269_s18 = sld [smem:[#allocation5 + $0x5c]]  ;;  %v1926_v7 = vstv %s6741_s1  ;;  %v1903_v53 = vadd.f32 %v1902_v43, %v1878_v20  ;;  %v1974_v20 = vld [vmem:[#allocation2 + $0x36] sm:$0x3f] }
 0x5df   :  { %v4987_v35 = vpop.eup %4986  ;;  %v1930_v10 = vstv %s6744_s19  ;;  %s6745_s6 = sld [smem:[#allocation19_spill]] }
 0x5e0   :  { %4928 = vpush %v4987_v35  ;;  %v1839_v35 = vmul.f32 %v1838_v18, %v1824_v22  ;;  %v1892_v18 = vstv %s6275_s4  ;;  %v1881_v22 = vmul.f32 %v1880_v62, %v1874_v6  ;;  %s6357_s4 = sld [smem:[#allocation5 + $0x61]]  ;;  %v1976_v62 = vstv %s6305_s14 }
 0x5e1   :  { %v1893_v23 = vmul.f32 %v1892_v18, %v1874_v6  ;;  %s6367_s1 = sld [smem:[#allocation5 + $0x70]]  ;;  %v1956_v18 = vmul.f32 %v1955_v5, %v1949_v3 }
 0x5e2   :  { %v1840_v61 = vadd.f32 %v1839_v35, %v1815_v21  ;;  %v1882_v48 = vadd.f32 %v1881_v22, %v1857_v8  ;;  %v1898_v21 = vadd.f32 %v1897_v26, %v1873_v28  ;;  %v1924_v35 = vld [vmem:[#allocation2 + $0x2a] sm:$0x3f]  ;;  %s6379_s19 = sld [smem:[#allocation5 + $0x7f]]  ;;  %v2026_v8 = vstv %s6311_s12 }
 0x5e3   :  { %v1927_v50 = vmul.f32 %v1926_v7, %v1924_v35  ;;  %v1931_v59 = vmul.f32 %v1930_v10, %v1924_v35  ;;  %v1939_v49 = vmul.f32 %v1938_v33, %v1924_v35  ;;  %v1947_v2 = vmul.f32 %v1946_v38, %v1924_v35  ;;  %s6401_s14 = sld [smem:[#allocation5 + $0x34]] }
 0x5e4   :  { %v1867_v37 = vstv %s6269_s18  ;;  %s6335_s18 = sld [smem:[#allocation5 + $0x43]]  ;;  %v1865_v17 = vadd.f32 %v1864_v63, %v1840_v61  ;;  %v1907_v54 = vadd.f32 %v1906_v44, %v1882_v48  ;;  %v1923_v47 = vadd.f32 %v1922_v56, %v1898_v21  ;;  %v1999_v48 = vld [vmem:[#allocation2 + $0x3c] sm:$0x3f] }
 0x5e5   :  { %v1868_v4 = vmul.f32 %v1867_v37, %v1849_v34  ;;  %v1909_v27 = vstv %s6745_s6  ;;  %v1942_v37 = vstv %s6283_s30  ;;  %v1935_v61 = vmul.f32 %v1934_v45, %v1924_v35  ;;  %s6382_s30 = sld [smem:[#allocation5 + $0x24]] }
 0x5e6   :  { %v1890_v39 = vadd.f32 %v1889_v12, %v1865_v17  ;;  %v1910_v34 = vmul.f32 %v1909_v27, %v1899_v29  ;;  %v1928_v63 = vadd.f32 %v1927_v50, %v1903_v53  ;;  %v1943_v1 = vmul.f32 %v1942_v37, %v1924_v35  ;;  %s6390_s6 = sld [smem:[#allocation5 + $0x26]] }
 0x5e7   :  { %v1869_v24 = vadd.f32 %v1868_v4, %v1844_v0  ;;  %v1932_v0 = vadd.f32 %v1931_v59, %v1907_v54  ;;  %v1951_v4 = vstv %s6299_s10  ;;  %v1948_v11 = vadd.f32 %v1947_v2, %v1923_v47  ;;  %s6395_s10 = sld [smem:[#allocation5 + $0x27]] }
 0x5e8   :  { %v1911_v57 = vadd.f32 %v1910_v34, %v1886_v36  ;;  %v1915_v58 = vadd.f32 %v1914_v25, %v1890_v39  ;;  %v1952_v17 = vmul.f32 %v1951_v4, %v1949_v3  ;;  %v1971_v32 = vstv %s6367_s1  ;;  %s6431_s15 = sld [smem:[#allocation5 + $0x54]] }
 0x5e9   :  { %v1894_v46 = vadd.f32 %v1893_v23, %v1869_v24  ;;  %v2005_v22 = vstv %s6319_s0  ;;  %v2030_v24 = vstv %s6321_s3  ;;  %v1984_v28 = vstv %s6329_s28  ;;  %s6417_s0 = sld [smem:[#allocation5 + $0x44]] }
 0x5ea   :  { %v1936_v6 = vadd.f32 %v1935_v61, %v1911_v57  ;;  %v1940_v7 = vadd.f32 %v1939_v49, %v1915_v58  ;;  %v2009_v29 = vstv %s6331_s20  ;;  %v2034_v27 = vstv %s6335_s18  ;;  %s6423_s28 = sld [smem:[#allocation5 + $0x45]] }
 0x5eb   :  { %v1919_v41 = vadd.f32 %v1918_v55, %v1894_v46  ;;  %v1988_v12 = vstv %s6345_s9  ;;  %v1964_v23 = vmul.f32 %v1963_v16, %v1949_v3  ;;  %v2038_v26 = vstv %s6351_s21  ;;  %s6428_s9 = sld [smem:[#allocation5 + $0x47]] }
 0x5ec   :  { %v1968_v36 = vmul.f32 %v1967_v19, %v1949_v3  ;;  %v1972_v39 = vmul.f32 %v1971_v32, %v1949_v3  ;;  %v1953_v40 = vadd.f32 %v1952_v17, %v1928_v63  ;;  %v1957_v42 = vadd.f32 %v1956_v18, %v1932_v0  ;;  %s6446_s1 = sld [smem:[#allocation5 + $0x66]] }
 0x5ed   :  { %v1944_v10 = vadd.f32 %v1943_v1, %v1919_v41  ;;  %v1992_v43 = vstv %s6357_s4  ;;  %v2017_v44 = vstv %s6360_s16  ;;  %v2042_v46 = vstv %s6363_s22  ;;  %s6440_s4 = sld [smem:[#allocation5 + $0x57]] }
 0x5ee   :  { %v1996_v21 = vstv %s6369_s25  ;;  %v2021_v35 = vstv %s6373_s27  ;;  %v2046_v34 = vstv %s6375_s26  ;;  %v1977_v45 = vmul.f32 %v1976_v62, %v1974_v20  ;;  %s6444_s16 = sld [smem:[#allocation5 + $0x65]] }
 0x5ef   :  { %v2002_v25 = vmul.f32 %v2001_v9, %v1999_v48  ;;  %v1981_v33 = vmul.f32 %v1980_v14, %v1974_v20  ;;  %v1961_v53 = vadd.f32 %v1960_v30, %v1936_v6  ;;  %v2006_v54 = vmul.f32 %v2005_v22, %v1999_v48  ;;  %s6454_s25 = sld [smem:[#allocation5 + $0x67]] }
 0x5f0   :  { %v1965_v55 = vadd.f32 %v1964_v23, %v1940_v7  ;;  %v1969_v56 = vadd.f32 %v1968_v36, %v1944_v10  ;;  %v1973_v57 = vadd.f32 %v1972_v39, %v1948_v11  ;;  %v1978_v58 = vadd.f32 %v1977_v45, %v1953_v40  ;;  %v2024_v10 = vld [vmem:[#allocation2 + $0x42] sm:$0x3f]  ;;  %s6460_s12 = sld [smem:[#allocation5 + $0x74]] }
 0x5f1   :  { %v1982_v37 = vadd.f32 %v1981_v33, %v1957_v42  ;;  %v1985_v38 = vmul.f32 %v1984_v28, %v1974_v20  ;;  %v1989_v50 = vmul.f32 %v1988_v12, %v1974_v20  ;;  %v1745_v41 = vstv %s6379_s19  ;;  %s6487_s3 = sld [smem:[#allocation5 + $0x75]] }
 0x5f2   :  { %v1993_v47 = vmul.f32 %v1992_v43, %v1974_v20  ;;  %v1997_v61 = vmul.f32 %v1996_v21, %v1974_v20  ;;  %v2010_v2 = vmul.f32 %v2009_v29, %v1999_v48  ;;  %v2014_v9 = vmul.f32 %v2013_v13, %v1999_v48  ;;  %s6495_s18 = sld [smem:[#allocation5 + $0x76]] }
 0x5f3   :  { %v1986_v1 = vadd.f32 %v1985_v38, %v1961_v53  ;;  %v1990_v3 = vadd.f32 %v1989_v50, %v1965_v55  ;;  %v2022_v11 = vmul.f32 %v2021_v35, %v1999_v48  ;;  %v2027_v22 = vmul.f32 %v2026_v8, %v2024_v10  ;;  %s6498_s21 = sld [smem:[#allocation5 + $0x77]] }
 0x5f4   :  { %v1994_v4 = vadd.f32 %v1993_v47, %v1969_v56  ;;  %v1998_v5 = vadd.f32 %v1997_v61, %v1973_v57  ;;  %v2031_v28 = vmul.f32 %v2030_v24, %v2024_v10  ;;  %v2035_v29 = vmul.f32 %v2034_v27, %v2024_v10 }
 0x5f5   :  { %v2011_v17 = vadd.f32 %v2010_v2, %v1986_v1  ;;  %v2015_v18 = vadd.f32 %v2014_v9, %v1990_v3  ;;  %v2039_v30 = vmul.f32 %v2038_v26, %v2024_v10  ;;  %v2043_v12 = vmul.f32 %v2042_v46, %v2024_v10 }
 0x5f6   :  { %v2023_v32 = vadd.f32 %v2022_v11, %v1998_v5  ;;  %v2047_v13 = vmul.f32 %v2046_v34, %v2024_v10  ;;  %v2051_v20 = vstv %s6382_s30  ;;  %v2076_v26 = vstv %s6387_s8  ;;  %s4548_s30 = sld [smem:[#allocation5 + $0x80]] }
 0x5f7   :  { %v2036_v27 = vadd.f32 %v2035_v29, %v2011_v17  ;;  %v2101_v39 = vstv %s6390_s6  ;;  %v2126_v40 = vstv %s6395_s10  ;;  %v2055_v42 = vstv %s6401_s14  ;;  %s4549_s8 = sld [smem:[#allocation5 + $0x86]] }
 0x5f8   :  { %v6463_v36 = vadd.f32 %v2047_v13, %v2023_v32  ;;  %v2080_v43 = vstv %s6405_s11  ;;  %v2130_v46 = vstv %s6413_s13  ;;  %v2059_v21 = vstv %s6417_s0 }
 0x5f9   :  { %v2084_v35 = vstv %s6423_s28  ;;  %v2109_v34 = vstv %s6426_s5  ;;  %v2134_v45 = vstv %s6428_s9  ;;  %v2088_v55 = vstv %s6436_s2  ;;  %s4551_s28 = sld [smem:[#allocation5 + $0x87]] }
 0x5fa   :  { %v2113_v56 = vstv %s6438_s29  ;;  %v2138_v57 = vstv %s6440_s4  ;;  %v2096_v13 = vstv %s6487_s3 }
 0x611   :  { %s4929_s24 = spop %4928 }
 0x612   :  { %s1739_s20 = smul.f32 %s4929_s24, %s6377_s23  ;;  %s4550_s24 = sld [smem:[#allocation5 + $0x81]] }
 0x614   :  { %v1740_v59 = vstv %s1739_s20 }
 0x615   :  { %v1741_v49 = vmul.f32 %v1740_v59, %v6153_v51  ;;  %v1742_v63 = vmul.f32 %v1740_v59, %v6156_v52  ;;  %v1743_v0 = vmul.f32 %v1740_v59, %v6165_v60  ;;  %v2003_v51 = vadd.f32 %v2002_v25, %v1978_v58 }
 0x616   :  { %v2007_v52 = vadd.f32 %v2006_v54, %v1982_v37  ;;  %v2018_v60 = vmul.f32 %v2017_v44, %v1999_v48  ;;  %v2040_v48 = vadd.f32 %v2039_v30, %v2015_v18  ;;  %v2105_v44 = vstv %s6410_s17 }
 0x617   :  { %v1746_v6 = vadd.f32 %v1745_v41, %v1741_v49  ;;  %v1747_v7 = vadd.f32 %v1745_v41, %v1742_v63  ;;  %v1748_v62 = vadd.f32 %v1745_v41, %v1743_v0  ;;  %v2028_v8 = vadd.f32 %v2027_v22, %v2003_v51 }
 0x618   :  { %v2019_v19 = vadd.f32 %v2018_v60, %v1994_v4  ;;  %v2032_v24 = vadd.f32 %v2031_v28, %v2007_v52  ;;  %v2063_v25 = vstv %s6431_s15  ;;  %v2067_v58 = vstv %s6442_s7  ;;  %s4552_s7 = sld [smem:[#allocation5 + $0x82]] }
 0x619   :  { %v1749_v14 = vmax.f32 %v1746_v6, 0.0  ;;  %v1750_v15 = vmax.f32 %v1747_v7, 0.0  ;;  %v1751_v16 = vmax.f32 %v1748_v62, 0.0  ;;  %v2092_v59 = vstv %s6444_s16  ;;  %s4553_s16 = sld [smem:[#allocation5 + $0x88]] }
 0x61a   :  { %v2044_v23 = vadd.f32 %v2043_v12, %v2019_v19  ;;  %v2117_v41 = vstv %s6446_s1  ;;  %v2142_v49 = vstv %s6454_s25  ;;  %v2071_v63 = vstv %s6460_s12 }
 0x61b   :  { %1752 = vst [vmem:[#allocation2 + $0x48] sm:$0xff] %v1749_v14  ;;  %1753 = vst [vmem:[#allocation2 + $0x50] sm:$0xff] %v1750_v15 }
 0x61c   :  { %1754 = vst [vmem:[#allocation2 + $0x58] sm:$0xff] %v1751_v16 }
 0x622   :  { %v2049_v33 = vld [vmem:[#allocation2 + $0x48] sm:$0x3f]  ;;  %v2074_v53 = vld [vmem:[#allocation2 + $0x4e] sm:$0x3f] }
 0x623   :  { %v6477_v54 = vld [vmem:[#allocation2 + $0x54] sm:$0x3f]  ;;  %v2052_v37 = vmul.f32 %v2051_v20, %v2049_v33  ;;  %v6483_v38 = vld [vmem:[#allocation2 + $0x5a] sm:$0x3f]  ;;  %v2056_v50 = vmul.f32 %v2055_v42, %v2049_v33  ;;  %v2077_v47 = vmul.f32 %v2076_v26, %v2074_v53  ;;  %v2081_v2 = vmul.f32 %v2080_v43, %v2074_v53 }
 0x624   :  { %v2102_v61 = vmul.f32 %v2101_v39, %v6477_v54  ;;  %v2060_v3 = vmul.f32 %v2059_v21, %v2049_v33  ;;  %v2127_v4 = vmul.f32 %v2126_v40, %v6483_v38  ;;  %v2106_v5 = vmul.f32 %v2105_v44, %v6477_v54 }
 0x625   :  { %v2053_v0 = vadd.f32 %v2052_v37, %v2028_v8  ;;  %v2057_v1 = vadd.f32 %v2056_v50, %v2032_v24  ;;  %v2131_v6 = vmul.f32 %v2130_v46, %v6483_v38  ;;  %v2064_v7 = vmul.f32 %v2063_v25, %v2049_v33 }
 0x626   :  { %v2061_v51 = vadd.f32 %v2060_v3, %v2036_v27  ;;  %v2085_v10 = vmul.f32 %v2084_v35, %v2074_v53  ;;  %v2110_v52 = vmul.f32 %v2109_v34, %v6477_v54  ;;  %v2089_v11 = vmul.f32 %v2088_v55, %v2074_v53 }
 0x627   :  { %v2078_v62 = vadd.f32 %v2077_v47, %v2053_v0  ;;  %v2082_v9 = vadd.f32 %v2081_v2, %v2057_v1  ;;  %v2065_v60 = vadd.f32 %v2064_v7, %v2040_v48  ;;  %v2068_v14 = vmul.f32 %v2067_v58, %v2049_v33 }
 0x628   :  { %v2086_v17 = vadd.f32 %v2085_v10, %v2061_v51  ;;  %v2114_v18 = vmul.f32 %v2113_v56, %v6477_v54  ;;  %v2093_v22 = vmul.f32 %v2092_v59, %v2074_v53  ;;  %v2072_v28 = vmul.f32 %v2071_v63, %v2049_v33 }
 0x629   :  { %v2103_v15 = vadd.f32 %v2102_v61, %v2078_v62  ;;  %v2107_v16 = vadd.f32 %v2106_v5, %v2082_v9  ;;  %v2090_v19 = vadd.f32 %v2089_v11, %v2065_v60  ;;  %v2069_v32 = vadd.f32 %v2068_v14, %v2044_v23 }
 0x62a   :  { %v2111_v12 = vadd.f32 %v2110_v52, %v2086_v17  ;;  %v2135_v8 = vmul.f32 %v2134_v45, %v6483_v38  ;;  %v2139_v27 = vmul.f32 %v2138_v57, %v6483_v38  ;;  %v2073_v39 = vadd.f32 %v2072_v28, %v6463_v36 }
 0x62b   :  { %v6501_v29 = vadd.f32 %v2127_v4, %v2103_v15  ;;  %v6503_v30 = vadd.f32 %v2131_v6, %v2107_v16  ;;  %v2115_v24 = vadd.f32 %v2114_v18, %v2090_v19  ;;  %v2094_v20 = vadd.f32 %v2093_v22, %v2069_v32 }
 0x62c   :  { %v6517_v42 = vadd.f32 %v2135_v8, %v2111_v12  ;;  %v2118_v43 = vmul.f32 %v2117_v41, %v6477_v54  ;;  %v2121_v44 = vstv %s6495_s18  ;;  %v2097_v34 = vmul.f32 %v2096_v13, %v2074_v53 }
 0x62d   :  { %v2150_v48 = vcombine.high %v6501_v29, %v6501_v29  ;;  %v2157_v23 = vrot.slane %v6501_v29, %v5694_v31  ;;  %v2242_v26 = vrot.slane %v6503_v30, %v5694_v31  ;;  %v2235_v40 = vcombine.high %v6503_v30, %v6503_v30 }
 0x62e   :  { %v6522_v35 = vadd.f32 %v2139_v27, %v2115_v24  ;;  %v2327_v25 = vrot.slane %v6517_v42, %v5694_v31  ;;  %v2119_v33 = vadd.f32 %v2118_v43, %v2094_v20  ;;  %v2146_v36 = vstv %s6498_s21 }
 0x62f   :  { %v2164_v46 = vrot.slane %v2150_v48, %v5694_v31  ;;  %v2165_v21 = vcombine.high %v2157_v23, %v2157_v23  ;;  %v2250_v45 = vcombine.high %v2242_v26, %v2242_v26  ;;  %v2169_v55 = vsel %vm907_vm0, %v2157_v23, 0.0 }
 0x630   :  { %v2143_v57 = vmul.f32 %v2142_v49, %v6483_v38  ;;  %v2098_v58 = vadd.f32 %v2097_v34, %v2073_v39  ;;  %v2249_v50 = vrot.slane %v2235_v40, %v5694_v31  ;;  %v2335_v41 = vcombine.high %v2327_v25, %v2327_v25 }
 0x631   :  { %v2170_v56 = vsel %vm907_vm0, %v2165_v21, 0.0  ;;  %v2255_v59 = vsel %vm907_vm0, %v2250_v45, 0.0  ;;  %v2172_v53 = vsel %vm907_vm0, %v2164_v46, 0.0  ;;  %v2254_v47 = vsel %vm907_vm0, %v2242_v26, 0.0 }
 0x632   :  { %v2171_v37 = vadd.f32 %v2170_v56, %v2169_v55  ;;  %v2320_v61 = vcombine.high %v6517_v42, %v6517_v42  ;;  %v2412_v63 = vrot.slane %v6522_v35, %v5694_v31  ;;  %v2256_v1 = vadd.f32 %v2255_v59, %v2254_v47 }
 0x633   :  { %v6538_v49 = vadd.f32 %v2143_v57, %v2119_v33  ;;  %v2122_v2 = vmul.f32 %v2121_v44, %v6477_v54  ;;  %v2340_v3 = vsel %vm907_vm0, %v2335_v41, 0.0  ;;  %v2405_v5 = vcombine.high %v6522_v35, %v6522_v35 }
 0x634   :  { %v2173_v0 = vadd.f32 %v2172_v53, %v2171_v37  ;;  %v2420_v4 = vcombine.high %v2412_v63, %v2412_v63  ;;  %v2257_v62 = vsel %vm907_vm0, %v2249_v50, 0.0  ;;  %v2334_v9 = vrot.slane %v2320_v61, %v5694_v31 }
 0x635   :  { %v2497_v6 = vrot.slane %v6538_v49, %v5694_v31  ;;  %v2123_v7 = vadd.f32 %v2122_v2, %v2098_v58  ;;  %v2339_v51 = vsel %vm907_vm0, %v2327_v25, 0.0  ;;  %v2147_v10 = vmul.f32 %v2146_v36, %v6483_v38 }
 0x636   :  { %2174 = vadd.xlane.f32.xlu0 %v2173_v0  ;;  %v2258_v54 = vadd.f32 %v2257_v62, %v2256_v1  ;;  %v2341_v52 = vadd.f32 %v2340_v3, %v2339_v51  ;;  %v2425_v60 = vsel %vm907_vm0, %v2420_v4, 0.0  ;;  %v2419_v15 = vrot.slane %v2405_v5, %v5694_v31 }
 0x637   :  { %v2505_v11 = vcombine.high %v2497_v6, %v2497_v6  ;;  %v6551_v14 = vadd.f32 %v2147_v10, %v2123_v7  ;;  %v2342_v16 = vsel %vm907_vm0, %v2334_v9, 0.0  ;;  %v2424_v17 = vsel %vm907_vm0, %v2412_v63, 0.0 }
 0x638   :  { %v2490_v18 = vcombine.high %v6538_v49, %v6538_v49  ;;  %v2343_v19 = vadd.f32 %v2342_v16, %v2341_v52  ;;  %v2426_v32 = vadd.f32 %v2425_v60, %v2424_v17  ;;  %v2427_v12 = vsel %vm907_vm0, %v2419_v15, 0.0 }
 0x639   :  { %v2582_v38 = vrot.slane %v6551_v14, %v5694_v31  ;;  %v2510_v22 = vsel %vm907_vm0, %v2505_v11, 0.0  ;;  %v2509_v8 = vsel %vm907_vm0, %v2497_v6, 0.0  ;;  %v2575_v24 = vcombine.high %v6551_v14, %v6551_v14 }
 0x63a   :  { %2259 = vadd.xlane.f32.xlu0 %v2258_v54  ;;  %v2504_v13 = vrot.slane %v2490_v18, %v5694_v31  ;;  %v2428_v27 = vadd.f32 %v2427_v12, %v2426_v32  ;;  %v2511_v20 = vadd.f32 %v2510_v22, %v2509_v8  ;;  %v2231_v16 = vstv %s4549_s8 }
 0x63b   :  { %v2590_v28 = vcombine.high %v2582_v38, %v2582_v38  ;;  %v2589_v26 = vrot.slane %v2575_v24, %v5694_v31  ;;  %v2594_v39 = vsel %vm907_vm0, %v2582_v38, 0.0 }
 0x63c   :  { %v2512_v23 = vsel %vm907_vm0, %v2504_v13, 0.0 }
 0x63d   :  { %v2595_v48 = vsel %vm907_vm0, %v2590_v28, 0.0  ;;  %v2513_v40 = vadd.f32 %v2512_v23, %v2511_v20  ;;  %v2597_v44 = vsel %vm907_vm0, %v2589_v26, 0.0 }
 0x63e   :  { %2344 = vadd.xlane.f32.xlu0 %v2343_v19  ;;  %v2596_v43 = vadd.f32 %v2595_v48, %v2594_v39 }
 0x640   :  { %v2598_v46 = vadd.f32 %v2597_v44, %v2596_v43 }
 0x642   :  { %2429 = vadd.xlane.f32.xlu0 %v2428_v27 }
 0x646   :  { %2514 = vadd.xlane.f32.xlu0 %v2513_v40 }
 0x64a   :  { %2599 = vadd.xlane.f32.xlu0 %v2598_v46 }
 0x6bf   :  { %v2175_v21 = vpop.xlane.xlu0 %2174 }
 0x6c0   :  { %v2176_v34 = vrot.slane %v2175_v21, 4 }
 0x6c2   :  { %v2177_v45 = vadd.f32 %v2176_v34, %v2175_v21 }
 0x6c3   :  { %v2260_v7 = vpop.xlane.xlu0 %2259 }
 0x6c4   :  { %v2178_v25 = vrot.slane %v2177_v45, 2  ;;  %v2261_v62 = vrot.slane %v2260_v7, 4 }
 0x6c6   :  { %v2179_v33 = vadd.f32 %v2178_v25, %v2177_v45  ;;  %v2262_v9 = vadd.f32 %v2261_v62, %v2260_v7 }
 0x6c8   :  { %v2180_v36 = vrot.slane %v2179_v33, 1  ;;  %v2263_v10 = vrot.slane %v2262_v9, 2 }
 0x6ca   :  { %v2181_v55 = vadd.f32 %v2180_v36, %v2179_v33  ;;  %v2264_v54 = vadd.f32 %v2263_v10, %v2262_v9  ;;  %v2345_v33 = vpop.xlane.xlu0 %2344 }
 0x6cb   :  { %v2346_v36 = vrot.slane %v2345_v33, 4 }
 0x6cc   :  { %4930 = vpush %v2181_v55  ;;  %v2265_v52 = vrot.slane %v2264_v54, 1 }
 0x6cd   :  { %v2347_v55 = vadd.f32 %v2346_v36, %v2345_v33 }
 0x6ce   :  { %v2266_v11 = vadd.f32 %v2265_v52, %v2264_v54 }
 0x6fd   :  { %s4931_s22 = spop %4930 }
 0x6fe   :  { %s2183_s27 = smul.f32 0.0013020834, %s4931_s22 }
 0x700   :  { %v2184_v56 = vstv %s2183_s27  ;;  %s4554_s27 = sld [smem:[#allocation5 + $0x83]] }
 0x701   :  { %v2185_v57 = vsub.f32 %v6501_v29, %v2184_v56 }
 0x703   :  { %v2186_v58 = vmul.f32 %v2185_v57, %v2185_v57 }
 0x705   :  { %v2188_v37 = vcombine.high %v2186_v58, %v2186_v58  ;;  %v2195_v50 = vrot.slane %v2186_v58, %v5694_v31 }
 0x707   :  { %v2202_v59 = vrot.slane %v2188_v37, %v5694_v31  ;;  %v2203_v41 = vcombine.high %v2195_v50, %v2195_v50  ;;  %v2207_v53 = vsel %vm907_vm0, %v2195_v50, 0.0 }
 0x709   :  { %v2208_v47 = vsel %vm907_vm0, %v2203_v41, 0.0  ;;  %v2210_v63 = vsel %vm907_vm0, %v2202_v59, 0.0 }
 0x70a   :  { %v2209_v61 = vadd.f32 %v2208_v47, %v2207_v53  ;;  %v2316_v53 = vstv %s4551_s28 }
 0x70c   :  { %v2211_v0 = vadd.f32 %v2210_v63, %v2209_v61 }
 0x70e   :  { %2212 = vadd.xlane.f32.xlu1 %v2211_v0 }
 0x797   :  { %v2213_v1 = vpop.xlane.xlu1 %2212 }
 0x798   :  { %v2214_v2 = vrot.slane %v2213_v1, 4 }
 0x79a   :  { %v2215_v3 = vadd.f32 %v2214_v2, %v2213_v1 }
 0x79c   :  { %v2216_v29 = vrot.slane %v2215_v3, 2 }
 0x79e   :  { %v2217_v4 = vadd.f32 %v2216_v29, %v2215_v3 }
 0x7a0   :  { %v2218_v5 = vrot.slane %v2217_v4, 1 }
 0x7a2   :  { %v2219_v6 = vadd.f32 %v2218_v5, %v2217_v4 }
 0x7a4   :  { %4932 = vpush %v2219_v6 }
 0x7d5   :  { %s4933_s26 = spop %4932 }
 0x7d6   :  { %s2221_s23 = smul.f32 0.0013020834, %s4933_s26  ;;  %s4555_s26 = sld [smem:[#allocation5 + $0x89]] }
 0x7d8   :  { %s2223_s19 = sadd.f32 1e-05, %s2221_s23 }
 0x7da   :  { %v2224_v51 = vstv %s2223_s19 }
 0x7db   :  { %4988 = vrsqrt.f32 %v2224_v51 }
 0x7e8   :  { %v4989_v60 = vpop.eup %4988 }
 0x7e9   :  { %4934 = vpush %v4989_v60 }
 0x7ea   :  { %4936 = vpush %v2266_v11 }
 0x81a   :  { %s4935_s6 = spop %4934 }
 0x81b   :  { %s2227_s10 = smul.f32 %s4935_s6, %s4548_s30  ;;  %s4937_s14 = spop %4936 }
 0x81c   :  { %s2268_s11 = smul.f32 0.0013020834, %s4937_s14 }
 0x81d   :  { %v2228_v15 = vstv %s2227_s10 }
 0x81e   :  { %v2229_v17 = vmul.f32 %v2228_v15, %v2185_v57  ;;  %v2269_v18 = vstv %s2268_s11  ;;  %v2348_v57 = vrot.slane %v2347_v55, 2  ;;  %s4556_s11 = sld [smem:[#allocation5 + $0x84]] }
 0x81f   :  { %v2270_v38 = vsub.f32 %v6503_v30, %v2269_v18 }
 0x820   :  { %v2232_v19 = vadd.f32 %v2231_v16, %v2229_v17  ;;  %v2349_v58 = vadd.f32 %v2348_v57, %v2347_v55 }
 0x821   :  { %v2271_v32 = vmul.f32 %v2270_v38, %v2270_v38 }
 0x822   :  { %v2233_v22 = vmax.f32 %v2232_v19, 0.0  ;;  %v2350_v37 = vrot.slane %v2349_v58, 1  ;;  %v2430_v19 = vpop.xlane.xlu0 %2429 }
 0x823   :  { %v2273_v28 = vcombine.high %v2271_v32, %v2271_v32  ;;  %v2280_v12 = vrot.slane %v2271_v32, %v5694_v31  ;;  %v2431_v32 = vrot.slane %v2430_v19, 4 }
 0x824   :  { %v2660_v13 = vcombine.high %v2233_v22, %v2233_v22  ;;  %v6580_v8 = vrot.slane %v2233_v22, %v5694_v31  ;;  %v2351_v59 = vadd.f32 %v2350_v37, %v2349_v58 }
 0x825   :  { %v2287_v24 = vrot.slane %v2273_v28, %v5694_v31  ;;  %v2288_v27 = vcombine.high %v2280_v12, %v2280_v12  ;;  %v2292_v30 = vsel %vm907_vm0, %v2280_v12, 0.0  ;;  %v2432_v22 = vadd.f32 %v2431_v32, %v2430_v19 }
 0x826   :  { %v6584_v20 = vrot.slane %v2660_v13, %v5694_v31  ;;  %v6588_v48 = vcombine.high %v6580_v8, %v6580_v8 }
 0x827   :  { %v2293_v23 = vsel %vm907_vm0, %v2288_v27, 0.0  ;;  %v2295_v39 = vsel %vm907_vm0, %v2287_v24, 0.0  ;;  %v2433_v12 = vrot.slane %v2432_v22, 2 }
 0x828   :  { %v2294_v26 = vadd.f32 %v2293_v23, %v2292_v30 }
 0x829   :  { %v2434_v13 = vadd.f32 %v2433_v12, %v2432_v22 }
 0x82a   :  { %v2296_v40 = vadd.f32 %v2295_v39, %v2294_v26  ;;  %v2401_v26 = vstv %s4553_s16 }
 0x82b   :  { %v2435_v24 = vrot.slane %v2434_v13, 1 }
 0x82c   :  { %2297 = vadd.xlane.f32.xlu1 %v2296_v40 }
 0x82d   :  { %v2436_v30 = vadd.f32 %v2435_v24, %v2434_v13 }
 0x8b5   :  { %v2298_v43 = vpop.xlane.xlu1 %2297 }
 0x8b6   :  { %v2299_v44 = vrot.slane %v2298_v43, 4 }
 0x8b8   :  { %v2300_v46 = vadd.f32 %v2299_v44, %v2298_v43 }
 0x8ba   :  { %v2301_v21 = vrot.slane %v2300_v46, 2 }
 0x8bc   :  { %v2302_v34 = vadd.f32 %v2301_v21, %v2300_v46 }
 0x8be   :  { %v2303_v45 = vrot.slane %v2302_v34, 1 }
 0x8c0   :  { %v2304_v25 = vadd.f32 %v2303_v45, %v2302_v34 }
 0x8c2   :  { %4938 = vpush %v2304_v25 }
 0x8f3   :  { %s4939_s17 = spop %4938 }
 0x8f4   :  { %s2306_s13 = smul.f32 0.0013020834, %s4939_s17  ;;  %s4557_s17 = sld [smem:[#allocation5 + $0x8a]] }
 0x8f6   :  { %s2308_s0 = sadd.f32 1e-05, %s2306_s13 }
 0x8f8   :  { %v2309_v56 = vstv %s2308_s0 }
 0x8f9   :  { %4990 = vrsqrt.f32 %v2309_v56 }
 0x906   :  { %v4991_v50 = vpop.eup %4990 }
 0x907   :  { %4940 = vpush %v4991_v50 }
 0x908   :  { %4942 = vpush %v2351_v59 }
 0x938   :  { %s4941_s20 = spop %4940 }
 0x939   :  { %s2312_s5 = smul.f32 %s4941_s20, %s4550_s24  ;;  %s4943_s9 = spop %4942 }
 0x93a   :  { %s2353_s15 = smul.f32 0.0013020834, %s4943_s9  ;;  %s6657_s20 = sld [smem:[#allocation5 + $0x8c]] }
 0x93b   :  { %v2313_v41 = vstv %s2312_s5 }
 0x93c   :  { %v2314_v47 = vmul.f32 %v2313_v41, %v2270_v38  ;;  %v2354_v61 = vstv %s2353_s15 }
 0x93d   :  { %v2355_v63 = vsub.f32 %v6517_v42, %v2354_v61 }
 0x93e   :  { %v2317_v0 = vadd.f32 %v2316_v53, %v2314_v47 }
 0x93f   :  { %v2356_v1 = vmul.f32 %v2355_v63, %v2355_v63 }
 0x940   :  { %v2318_v2 = vmax.f32 %v2317_v0, 0.0 }
 0x941   :  { %v2358_v3 = vcombine.high %v2356_v1, %v2356_v1  ;;  %v2365_v29 = vrot.slane %v2356_v1, %v5694_v31 }
 0x942   :  { %v2680_v4 = vcombine.high %v2318_v2, %v2318_v2  ;;  %v6596_v5 = vrot.slane %v2318_v2, %v5694_v31  ;;  %v2515_v2 = vpop.xlane.xlu0 %2514 }
 0x943   :  { %v2372_v6 = vrot.slane %v2358_v3, %v5694_v31  ;;  %v2373_v7 = vcombine.high %v2365_v29, %v2365_v29  ;;  %v2377_v42 = vsel %vm907_vm0, %v2365_v29, 0.0  ;;  %v2516_v3 = vrot.slane %v2515_v2, 4 }
 0x944   :  { %v6600_v62 = vrot.slane %v2680_v4, %v5694_v31  ;;  %v6604_v9 = vcombine.high %v6596_v5, %v6596_v5 }
 0x945   :  { %v2378_v51 = vsel %vm907_vm0, %v2373_v7, 0.0  ;;  %v2380_v54 = vsel %vm907_vm0, %v2372_v6, 0.0  ;;  %v2517_v29 = vadd.f32 %v2516_v3, %v2515_v2 }
 0x946   :  { %v2379_v10 = vadd.f32 %v2378_v51, %v2377_v42 }
 0x947   :  { %v2518_v6 = vrot.slane %v2517_v29, 2 }
 0x948   :  { %v2381_v52 = vadd.f32 %v2380_v54, %v2379_v10 }
 0x949   :  { %v2519_v7 = vadd.f32 %v2518_v6, %v2517_v29 }
 0x94a   :  { %2382 = vadd.xlane.f32.xlu1 %v2381_v52  ;;  %v2486_v52 = vstv %s4555_s26 }
 0x94b   :  { %v2520_v42 = vrot.slane %v2519_v7, 1 }
 0x94d   :  { %v2521_v10 = vadd.f32 %v2520_v42, %v2519_v7 }
 0x9d3   :  { %v2383_v60 = vpop.xlane.xlu1 %2382 }
 0x9d4   :  { %v2384_v11 = vrot.slane %v2383_v60, 4 }
 0x9d6   :  { %v2385_v15 = vadd.f32 %v2384_v11, %v2383_v60 }
 0x9d8   :  { %v2386_v16 = vrot.slane %v2385_v15, 2 }
 0x9da   :  { %v2387_v17 = vadd.f32 %v2386_v16, %v2385_v15 }
 0x9dc   :  { %v2388_v18 = vrot.slane %v2387_v17, 1 }
 0x9de   :  { %v2389_v38 = vadd.f32 %v2388_v18, %v2387_v17 }
 0x9e0   :  { %4944 = vpush %v2389_v38 }
 0xa11   :  { %s4945_s2 = spop %4944 }
 0xa12   :  { %s2391_s29 = smul.f32 0.0013020834, %s4945_s2  ;;  %s4558_s2 = sld [smem:[#allocation5 + $0x85]] }
 0xa14   :  { %s2393_s4 = sadd.f32 1e-05, %s2391_s29 }
 0xa15   :  { %s4559_s29 = sld [smem:[#allocation5 + $0x8b]] }
 0xa16   :  { %v2394_v28 = vstv %s2393_s4 }
 0xa17   :  { %4992 = vrsqrt.f32 %v2394_v28 }
 0xa24   :  { %v4993_v27 = vpop.eup %4992 }
 0xa25   :  { %4946 = vpush %v4993_v27 }
 0xa26   :  { %4948 = vpush %v2436_v30 }
 0xa56   :  { %s4947_s1 = spop %4946 }
 0xa57   :  { %s2397_s25 = smul.f32 %s4947_s1, %s4552_s7  ;;  %s4949_s12 = spop %4948 }
 0xa58   :  { %s2438_s3 = smul.f32 0.0013020834, %s4949_s12 }
 0xa59   :  { %v2398_v23 = vstv %s2397_s25 }
 0xa5a   :  { %v2399_v39 = vmul.f32 %v2398_v23, %v2355_v63  ;;  %v2439_v40 = vstv %s2438_s3 }
 0xa5b   :  { %v2440_v43 = vsub.f32 %v6522_v35, %v2439_v40 }
 0xa5c   :  { %v2402_v44 = vadd.f32 %v2401_v26, %v2399_v39 }
 0xa5d   :  { %v2441_v46 = vmul.f32 %v2440_v43, %v2440_v43 }
 0xa5e   :  { %v2403_v21 = vmax.f32 %v2402_v44, 0.0 }
 0xa5f   :  { %v2443_v34 = vcombine.high %v2441_v46, %v2441_v46  ;;  %v2450_v45 = vrot.slane %v2441_v46, %v5694_v31 }
 0xa60   :  { %v2700_v25 = vcombine.high %v2403_v21, %v2403_v21  ;;  %v6612_v33 = vrot.slane %v2403_v21, %v5694_v31 }
 0xa61   :  { %v2457_v36 = vrot.slane %v2443_v34, %v5694_v31  ;;  %v2458_v55 = vcombine.high %v2450_v45, %v2450_v45  ;;  %v2462_v35 = vsel %vm907_vm0, %v2450_v45, 0.0  ;;  %v2600_v45 = vpop.xlane.xlu0 %2599 }
 0xa62   :  { %v6616_v56 = vrot.slane %v2700_v25, %v5694_v31  ;;  %v6620_v57 = vcombine.high %v6612_v33, %v6612_v33  ;;  %v2601_v25 = vrot.slane %v2600_v45, 4 }
 0xa63   :  { %v2463_v58 = vsel %vm907_vm0, %v2458_v55, 0.0  ;;  %v2465_v50 = vsel %vm907_vm0, %v2457_v36, 0.0 }
 0xa64   :  { %v2464_v37 = vadd.f32 %v2463_v58, %v2462_v35  ;;  %v2602_v36 = vadd.f32 %v2601_v25, %v2600_v45 }
 0xa66   :  { %v2466_v59 = vadd.f32 %v2465_v50, %v2464_v37  ;;  %v2603_v35 = vrot.slane %v2602_v36, 2 }
 0xa68   :  { %2467 = vadd.xlane.f32.xlu1 %v2466_v59  ;;  %v2604_v58 = vadd.f32 %v2603_v35, %v2602_v36 }
 0xa6a   :  { %v2605_v37 = vrot.slane %v2604_v58, 1 }
 0xa6c   :  { %v2606_v59 = vadd.f32 %v2605_v37, %v2604_v58 }
 0xaf1   :  { %v2468_v41 = vpop.xlane.xlu1 %2467 }
 0xaf2   :  { %v2469_v53 = vrot.slane %v2468_v41, 4 }
 0xaf4   :  { %v2470_v47 = vadd.f32 %v2469_v53, %v2468_v41  ;;  %v2571_v53 = vstv %s4557_s17 }
 0xaf6   :  { %v2471_v61 = vrot.slane %v2470_v47, 2 }
 0xaf8   :  { %v2472_v63 = vadd.f32 %v2471_v61, %v2470_v47 }
 0xafa   :  { %v2473_v0 = vrot.slane %v2472_v63, 1 }
 0xafc   :  { %v2474_v1 = vadd.f32 %v2473_v0, %v2472_v63 }
 0xafe   :  { %4950 = vpush %v2474_v1 }
 0xb2f   :  { %s4951_s18 = spop %4950 }
 0xb30   :  { %s2476_s21 = smul.f32 0.0013020834, %s4951_s18 }
 0xb32   :  { %s2478_s22 = sadd.f32 1e-05, %s2476_s21 }
 0xb34   :  { %v2479_v4 = vstv %s2478_s22 }
 0xb35   :  { %4994 = vrsqrt.f32 %v2479_v4 }
 0xb42   :  { %v4995_v51 = vpop.eup %4994 }
 0xb43   :  { %4952 = vpush %v4995_v51 }
 0xb44   :  { %4954 = vpush %v2521_v10 }
 0xb74   :  { %s4953_s23 = spop %4952 }
 0xb75   :  { %s2482_s19 = smul.f32 %s4953_s23, %s4554_s27  ;;  %s4955_s30 = spop %4954 }
 0xb76   :  { %s2523_s8 = smul.f32 0.0013020834, %s4955_s30 }
 0xb77   :  { %v2483_v54 = vstv %s2482_s19 }
 0xb78   :  { %v2484_v60 = vmul.f32 %v2483_v54, %v2440_v43  ;;  %v2524_v11 = vstv %s2523_s8 }
 0xb79   :  { %v2525_v15 = vsub.f32 %v6538_v49, %v2524_v11 }
 0xb7a   :  { %v2487_v16 = vadd.f32 %v2486_v52, %v2484_v60 }
 0xb7b   :  { %v2526_v17 = vmul.f32 %v2525_v15, %v2525_v15 }
 0xb7c   :  { %v2488_v18 = vmax.f32 %v2487_v16, 0.0 }
 0xb7d   :  { %v2528_v38 = vcombine.high %v2526_v17, %v2526_v17  ;;  %v2535_v19 = vrot.slane %v2526_v17, %v5694_v31 }
 0xb7e   :  { %v2720_v32 = vcombine.high %v2488_v18, %v2488_v18  ;;  %v6628_v22 = vrot.slane %v2488_v18, %v5694_v31 }
 0xb7f   :  { %v2542_v28 = vrot.slane %v2528_v38, %v5694_v31  ;;  %v2543_v12 = vcombine.high %v2535_v19, %v2535_v19  ;;  %v2547_v49 = vsel %vm907_vm0, %v2535_v19, 0.0 }
 0xb80   :  { %v6632_v13 = vrot.slane %v2720_v32, %v5694_v31  ;;  %v6636_v24 = vcombine.high %v6628_v22, %v6628_v22 }
 0xb81   :  { %v2548_v27 = vsel %vm907_vm0, %v2543_v12, 0.0  ;;  %v2550_v23 = vsel %vm907_vm0, %v2542_v28, 0.0 }
 0xb82   :  { %v2549_v30 = vadd.f32 %v2548_v27, %v2547_v49  ;;  %v2656_v27 = vstv %s4559_s29 }
 0xb84   :  { %v2551_v26 = vadd.f32 %v2550_v23, %v2549_v30 }
 0xb86   :  { %2552 = vadd.xlane.f32.xlu1 %v2551_v26 }
 0xc0f   :  { %v2553_v39 = vpop.xlane.xlu1 %2552 }
 0xc10   :  { %v2554_v40 = vrot.slane %v2553_v39, 4 }
 0xc12   :  { %v2555_v43 = vadd.f32 %v2554_v40, %v2553_v39 }
 0xc14   :  { %v2556_v44 = vrot.slane %v2555_v43, 2 }
 0xc16   :  { %v2557_v46 = vadd.f32 %v2556_v44, %v2555_v43 }
 0xc18   :  { %v2558_v21 = vrot.slane %v2557_v46, 1 }
 0xc1a   :  { %v2559_v34 = vadd.f32 %v2558_v21, %v2557_v46 }
 0xc1c   :  { %4956 = vpush %v2559_v34 }
 0xc4d   :  { %s4957_s6 = spop %4956 }
 0xc4e   :  { %s2561_s10 = smul.f32 0.0013020834, %s4957_s6 }
 0xc50   :  { %s2563_s14 = sadd.f32 1e-05, %s2561_s10 }
 0xc52   :  { %v2564_v55 = vstv %s2563_s14 }
 0xc53   :  { %4996 = vrsqrt.f32 %v2564_v55 }
 0xc60   :  { %v4997_v50 = vpop.eup %4996 }
 0xc61   :  { %4958 = vpush %v4997_v50 }
 0xc62   :  { %4960 = vpush %v2606_v59 }
 0xc92   :  { %s4959_s13 = spop %4958 }
 0xc93   :  { %s2567_s0 = smul.f32 %s4959_s13, %s4556_s11  ;;  %s4961_s24 = spop %4960 }
 0xc94   :  { %s2608_s28 = smul.f32 0.0013020834, %s4961_s24 }
 0xc95   :  { %v2568_v41 = vstv %s2567_s0 }
 0xc96   :  { %v2569_v47 = vmul.f32 %v2568_v41, %v2525_v15  ;;  %v2609_v61 = vstv %s2608_s28 }
 0xc97   :  { %v2610_v63 = vsub.f32 %v6551_v14, %v2609_v61 }
 0xc98   :  { %v2572_v0 = vadd.f32 %v2571_v53, %v2569_v47 }
 0xc99   :  { %v2611_v1 = vmul.f32 %v2610_v63, %v2610_v63 }
 0xc9a   :  { %v2573_v2 = vmax.f32 %v2572_v0, 0.0 }
 0xc9b   :  { %v2613_v3 = vcombine.high %v2611_v1, %v2611_v1  ;;  %v2620_v29 = vrot.slane %v2611_v1, %v5694_v31 }
 0xc9c   :  { %v2740_v4 = vcombine.high %v2573_v2, %v2573_v2  ;;  %v6644_v6 = vrot.slane %v2573_v2, %v5694_v31 }
 0xc9d   :  { %v2627_v7 = vrot.slane %v2613_v3, %v5694_v31  ;;  %v2628_v42 = vcombine.high %v2620_v29, %v2620_v29  ;;  %v2632_v14 = vsel %vm907_vm0, %v2620_v29, 0.0 }
 0xc9e   :  { %v6648_v51 = vrot.slane %v2740_v4, %v5694_v31  ;;  %v6652_v10 = vcombine.high %v6644_v6, %v6644_v6 }
 0xc9f   :  { %v2633_v54 = vsel %vm907_vm0, %v2628_v42, 0.0  ;;  %v2635_v60 = vsel %vm907_vm0, %v2627_v7, 0.0 }
 0xca0   :  { %v2634_v52 = vadd.f32 %v2633_v54, %v2632_v14 }
 0xca2   :  { %v2636_v11 = vadd.f32 %v2635_v60, %v2634_v52 }
 0xca4   :  { %2637 = vadd.xlane.f32.xlu1 %v2636_v11 }
 0xd2d   :  { %v2638_v15 = vpop.xlane.xlu1 %2637 }
 0xd2e   :  { %v2639_v16 = vrot.slane %v2638_v15, 4 }
 0xd30   :  { %v2640_v17 = vadd.f32 %v2639_v16, %v2638_v15 }
 0xd32   :  { %v2641_v18 = vrot.slane %v2640_v17, 2 }
 0xd34   :  { %v2642_v38 = vadd.f32 %v2641_v18, %v2640_v17 }
 0xd36   :  { %v2643_v19 = vrot.slane %v2642_v38, 1 }
 0xd38   :  { %v2644_v32 = vadd.f32 %v2643_v19, %v2642_v38 }
 0xd3a   :  { %4962 = vpush %v2644_v32 }
 0xd6b   :  { %s4963_s5 = spop %4962 }
 0xd6c   :  { %s2646_s9 = smul.f32 0.0013020834, %s4963_s5 }
 0xd6e   :  { %s2648_s15 = sadd.f32 1e-05, %s2646_s9 }
 0xd70   :  { %v2649_v28 = vstv %s2648_s15 }
 0xd71   :  { %4998 = vrsqrt.f32 %v2649_v28 }
 0xd7e   :  { %v4999_v12 = vpop.eup %4998 }
 0xd7f   :  { %4964 = vpush %v4999_v12 }
 0xdb0   :  { %s4965_s4 = spop %4964 }
 0xdb1   :  { %s2652_s7 = smul.f32 %s4965_s4, %s4558_s2 }
 0xdb3   :  { %v2653_v49 = vstv %s2652_s7 }
 0xdb4   :  { %v2654_v30 = vmul.f32 %v2653_v49, %v2610_v63 }
 0xdb6   :  { %v2657_v23 = vadd.f32 %v2656_v27, %v2654_v30 }
 0xdb8   :  { %v2658_v26 = vmax.f32 %v2657_v23, 0.0 }
 0xdba   :  { %v2760_v39 = vcombine.high %v2658_v26, %v2658_v26  ;;  %v6660_v40 = vrot.slane %v2658_v26, %v5694_v31 }
 0xdbc   :  { %v6663_v43 = vrot.slane %v2760_v39, %v5694_v31  ;;  %v6667_v44 = vcombine.high %v6660_v40, %v6660_v40 }
 0xdbd   :  { %5158 = dma.done.wait [#allocation4], 18432 }
 0xdbe   :  { %5159 = vsyncadd [#allocation4], 4294948864  ;;  %v2785_v46 = vpack.c.bf16 %v6588_v48, %v6588_v48  ;;  %v2787_v21 = vpack.c.bf16 %v6596_v5, %v6596_v5  ;;  %v5000_v34 = vld [vmem:[#allocation3 + $0x78] sm:$0xff]   ;;  %v5004_v36 = vld [vmem:[#allocation3 + $0x70] sm:$0xff]   ;;  %v2784_v15 = vpack.c.bf16 %v6580_v8, %v6580_v8  ;;  %v2789_v17 = vpack.c.bf16 %v6600_v62, %v6600_v62  ;;  %s6748_s25 = sld [smem:[#allocation22_spill]] }
 0xdbf   :  { %v5001_v45 = vld [vmem:[#allocation3 + $0x38] sm:$0xff]   ;;  %4708 = vmatprep.subr.bf16.mxu0 %v5000_v34  ;;  %v5005_v55 = vld [vmem:[#allocation3 + $0x30] sm:$0xff]   ;;  %v5008_v48 = vld [vmem:[#allocation3 + $0x68] sm:$0xff]   ;;  %v2786_v38 = vpack.c.bf16 %v6584_v20, %v6584_v20  ;;  %v2791_v32 = vpack.c.bf16 %v6620_v57, %v6620_v57  ;;  %vm4331_vm1 = vcmask 1024   ;;  %s6749_s22 = sld [smem:[#allocation23_spill]] }
 0xdc0   :  { %3991 = vmatprep.mubr.bf16.mxu0 %v2785_v46  ;;  %4031 = vmatprep.mubr.bf16.mxu1 %v2787_v21  ;;  %v5002_v25 = vld [vmem:[#allocation3 + $0xf8] sm:$0xff]   ;;  %v5006_v35 = vld [vmem:[#allocation3 + $0xf0] sm:$0xff]   ;;  %v5009_v5 = vld [vmem:[#allocation3 + $0x28] sm:$0xff]  }
 0xdc1   :  { %4709 = vmatpush3.bf16.msra.mxu0 %v5001_v45  ;;  %v5003_v31 = vld [vmem:[#allocation3 + $0xb8] sm:$0xff]   ;;  %4730 = vmatprep.subr.bf16.mxu1 %v5002_v25  ;;  %v5007_v58 = vld [vmem:[#allocation3 + $0xb0] sm:$0xff]   ;;  %v5010_v37 = vld [vmem:[#allocation3 + $0xe8] sm:$0xff]  }
 0xdc2   :  { %4731 = vmatpush3.bf16.msra.mxu1 %v5003_v31  ;;  %4710 = vmatprep.subr.bf16.mxu0 %v5004_v36  ;;  %v5011_v50 = vld [vmem:[#allocation3 + $0xa8] sm:$0xff]   ;;  %v5012_v59 = vld [vmem:[#allocation3 + $0x60] sm:$0xff]   ;;  %v5016_v61 = vld [vmem:[#allocation3 + $0x58] sm:$0xff]  }
 0xdc3   :  { %4732 = vmatprep.subr.bf16.mxu1 %v5006_v35  ;;  %v5013_v41 = vld [vmem:[#allocation3 + $0x20] sm:$0xff]   ;;  %v5017_v63 = vld [vmem:[#allocation3 + $0x18] sm:$0xff]   ;;  %v5020_v2 = vld [vmem:[#allocation3 + $0x50] sm:$0xff]  }
 0xdc4   :  { %v5014_v53 = vld [vmem:[#allocation3 + $0xe0] sm:$0xff]   ;;  %v5018_v0 = vld [vmem:[#allocation3 + $0xd8] sm:$0xff]   ;;  %v5021_v3 = vld [vmem:[#allocation3 + $0x10] sm:$0xff]  }
 0xdc5   :  { %4711 = vmatpush3.bf16.msra.mxu0 %v5005_v55  ;;  %v5015_v47 = vld [vmem:[#allocation3 + $0xa0] sm:$0xff]   ;;  %v5019_v1 = vld [vmem:[#allocation3 + $0x98] sm:$0xff]   ;;  %v5022_v29 = vld [vmem:[#allocation3 + $0xd0] sm:$0xff]  }
 0xdc6   :  { %4733 = vmatpush3.bf16.msra.mxu1 %v5007_v58  ;;  %4712 = vmatprep.subr.bf16.mxu0 %v5008_v48  ;;  %v5023_v4 = vld [vmem:[#allocation3 + $0x90] sm:$0xff]   ;;  %v5024_v7 = vld [vmem:[#allocation3 + $0x48] sm:$0xff]   ;;  %v5028_v52 = vld [vmem:[#allocation3 + $0x40] sm:$0xff]  }
 0xdc7   :  { %4734 = vmatprep.subr.bf16.mxu1 %v5010_v37  ;;  %v5025_v42 = vld [vmem:[#allocation3 + $0x8] sm:$0xff]   ;;  %v5029_v60 = vld [vmem:[#allocation3] sm:$0xff]   ;;  %v5032_v18 = vld [vmem:[#allocation3 + $0x178] sm:$0xff]  }
 0xdc8   :  { %v5026_v14 = vld [vmem:[#allocation3 + $0xc8] sm:$0xff]   ;;  %v5030_v11 = vld [vmem:[#allocation3 + $0xc0] sm:$0xff]   ;;  %v5033_v19 = vld [vmem:[#allocation3 + $0x138] sm:$0xff]  }
 0xdc9   :  { %4713 = vmatpush3.bf16.msra.mxu0 %v5009_v5  ;;  %v5027_v54 = vld [vmem:[#allocation3 + $0x88] sm:$0xff]   ;;  %v5031_v16 = vld [vmem:[#allocation3 + $0x80] sm:$0xff]   ;;  %v5034_v28 = vld [vmem:[#allocation3 + $0x1f8] sm:$0xff]  }
 0xdca   :  { %4735 = vmatpush3.bf16.msra.mxu1 %v5011_v50  ;;  %4714 = vmatprep.subr.bf16.mxu0 %v5012_v59  ;;  %v5035_v8 = vld [vmem:[#allocation3 + $0x1b8] sm:$0xff]   ;;  %v5036_v12 = vld [vmem:[#allocation3 + $0x170] sm:$0xff]   ;;  %v5040_v27 = vld [vmem:[#allocation3 + $0x168] sm:$0xff]  }
 0xdcb   :  { %4736 = vmatprep.subr.bf16.mxu1 %v5014_v53  ;;  %v5037_v62 = vld [vmem:[#allocation3 + $0x130] sm:$0xff]   ;;  %v5041_v57 = vld [vmem:[#allocation3 + $0x128] sm:$0xff]   ;;  %v5044_v26 = vld [vmem:[#allocation3 + $0x160] sm:$0xff]  }
 0xdcc   :  { %v5038_v49 = vld [vmem:[#allocation3 + $0x1f0] sm:$0xff]   ;;  %v5042_v30 = vld [vmem:[#allocation3 + $0x1e8] sm:$0xff]   ;;  %v5045_v39 = vld [vmem:[#allocation3 + $0x120] sm:$0xff]  }
 0xdcd   :  { %4715 = vmatpush3.bf16.msra.mxu0 %v5013_v41  ;;  %v5039_v20 = vld [vmem:[#allocation3 + $0x1b0] sm:$0xff]   ;;  %v5043_v23 = vld [vmem:[#allocation3 + $0x1a8] sm:$0xff]   ;;  %v5046_v46 = vld [vmem:[#allocation3 + $0x1e0] sm:$0xff]  }
 0xdce   :  { %4737 = vmatpush3.bf16.msra.mxu1 %v5015_v47  ;;  %4716 = vmatprep.subr.bf16.mxu0 %v5016_v61  ;;  %v5047_v21 = vld [vmem:[#allocation3 + $0x1a0] sm:$0xff]   ;;  %v5048_v34 = vld [vmem:[#allocation3 + $0x158] sm:$0xff]   ;;  %v5052_v36 = vld [vmem:[#allocation3 + $0x150] sm:$0xff]   ;;  %v2788_v47 = vpack.c.bf16 %v6604_v9, %v6604_v9 }
 0xdcf   :  { %4738 = vmatprep.subr.bf16.mxu1 %v5018_v0  ;;  %v5049_v45 = vld [vmem:[#allocation3 + $0x118] sm:$0xff]   ;;  %v5053_v55 = vld [vmem:[#allocation3 + $0x110] sm:$0xff]   ;;  %v5056_v48 = vld [vmem:[#allocation3 + $0x148] sm:$0xff]  }
 0xdd0   :  { %v5050_v25 = vld [vmem:[#allocation3 + $0x1d8] sm:$0xff]   ;;  %v5054_v35 = vld [vmem:[#allocation3 + $0x1d0] sm:$0xff]   ;;  %v5057_v5 = vld [vmem:[#allocation3 + $0x108] sm:$0xff]  }
 0xdd1   :  { %4717 = vmatpush3.bf16.msra.mxu0 %v5017_v63  ;;  %v5051_v31 = vld [vmem:[#allocation3 + $0x198] sm:$0xff]   ;;  %v5055_v58 = vld [vmem:[#allocation3 + $0x190] sm:$0xff]   ;;  %v5058_v37 = vld [vmem:[#allocation3 + $0x1c8] sm:$0xff]   ;;  %v2793_v63 = vpack.c.bf16 %v6628_v22, %v6628_v22 }
 0xdd2   :  { %4739 = vmatpush3.bf16.msra.mxu1 %v5019_v1  ;;  %4718 = vmatprep.subr.bf16.mxu0 %v5020_v2  ;;  %v5059_v50 = vld [vmem:[#allocation3 + $0x188] sm:$0xff]   ;;  %v5060_v59 = vld [vmem:[#allocation3 + $0x140] sm:$0xff]   ;;  %v5064_v0 = vld [vmem:[#allocation3 + $0x278] sm:$0xff]   ;;  %v2790_v1 = vpack.c.bf16 %v6612_v33, %v6612_v33 }
 0xdd3   :  { %4740 = vmatprep.subr.bf16.mxu1 %v5022_v29  ;;  %v5061_v41 = vld [vmem:[#allocation3 + $0x100] sm:$0xff]   ;;  %v5065_v2 = vld [vmem:[#allocation3 + $0x238] sm:$0xff]   ;;  %v5069_v22 = vld [vmem:[#allocation3 + $0x230] sm:$0xff]  }
 0xdd4   :  { %v5062_v53 = vld [vmem:[#allocation3 + $0x1c0] sm:$0xff]   ;;  %v5066_v29 = vld [vmem:[#allocation3 + $0x2f8] sm:$0xff]   ;;  %v5071_v33 = vld [vmem:[#allocation3 + $0x2b0] sm:$0xff]  }
 0xdd5   :  { %4719 = vmatpush3.bf16.msra.mxu0 %v5021_v3  ;;  %v5063_v61 = vld [vmem:[#allocation3 + $0x180] sm:$0xff]   ;;  %v2795_v3 = vpack.c.bf16 %v6632_v13, %v6632_v13  ;;  %v5067_v9 = vld [vmem:[#allocation3 + $0x2b8] sm:$0xff]   ;;  %v5073_v13 = vld [vmem:[#allocation3 + $0x228] sm:$0xff]  }
 0xdd6   :  { %4741 = vmatpush3.bf16.msra.mxu1 %v5023_v4  ;;  %4720 = vmatprep.subr.bf16.mxu0 %v5024_v7  ;;  %v5068_v4 = vld [vmem:[#allocation3 + $0x270] sm:$0xff]  }
 0xdd7   :  { %4742 = vmatprep.subr.bf16.mxu1 %v5026_v14  ;;  %v5070_v7 = vld [vmem:[#allocation3 + $0x2f0] sm:$0xff]   ;;  %v5074_v14 = vld [vmem:[#allocation3 + $0x2e8] sm:$0xff]  }
 0xdd9   :  { %4721 = vmatpush3.bf16.msra.mxu0 %v5025_v42  ;;  %v5072_v42 = vld [vmem:[#allocation3 + $0x268] sm:$0xff]  }
 0xdda   :  { %4743 = vmatpush3.bf16.msra.mxu1 %v5027_v54  ;;  %4722 = vmatprep.subr.bf16.mxu0 %v5028_v52  ;;  %v5075_v54 = vld [vmem:[#allocation3 + $0x2a8] sm:$0xff]   ;;  %v5076_v52 = vld [vmem:[#allocation3 + $0x260] sm:$0xff]  }
 0xddb   :  { %4744 = vmatprep.subr.bf16.mxu1 %v5030_v11  ;;  %v5078_v11 = vld [vmem:[#allocation3 + $0x2e0] sm:$0xff]  }
 0xddd   :  { %4723 = vmatpush3.bf16.msra.mxu0 %v5029_v60  ;;  %v5077_v60 = vld [vmem:[#allocation3 + $0x220] sm:$0xff]  }
 0xdde   :  { %4745 = vmatpush3.bf16.msra.mxu1 %v5031_v16  ;;  %4752 = vmatprep.subr.bf16.mxu0 %v5032_v18  ;;  %v5080_v16 = vld [vmem:[#allocation3 + $0x258] sm:$0xff]  }
 0xddf   :  { %4774 = vmatprep.subr.bf16.mxu1 %v5034_v28  ;;  %v5082_v18 = vld [vmem:[#allocation3 + $0x2d8] sm:$0xff]   ;;  %v5086_v28 = vld [vmem:[#allocation3 + $0x2d0] sm:$0xff]  }
 0xde0   :  { %3992 = vmatmul.mubr.bf16.vlgmr.msra.gmra.mxu0 %v2784_v15  ;;  %v5079_v15 = vld [vmem:[#allocation3 + $0x2a0] sm:$0xff]  }
 0xde1   :  { %4753 = vmatpush3.bf16.msra.mxu0 %v5033_v19  ;;  %4071 = vmatprep.mubr.bf16.mxu0 %v2789_v17  ;;  %v5081_v17 = vld [vmem:[#allocation3 + $0x218] sm:$0xff]   ;;  %v5084_v19 = vld [vmem:[#allocation3 + $0x250] sm:$0xff]  }
 0xde2   :  { %4032 = vmatmul.mubr.bf16.vlgmr.msra.gmra.mxu1 %v2786_v38  ;;  %4754 = vmatprep.subr.bf16.mxu0 %v5036_v12  ;;  %v5083_v38 = vld [vmem:[#allocation3 + $0x298] sm:$0xff]   ;;  %v5088_v12 = vld [vmem:[#allocation3 + $0x248] sm:$0xff]  }
 0xde3   :  { %4775 = vmatpush3.bf16.msra.mxu1 %v5035_v8  ;;  %4111 = vmatprep.mubr.bf16.mxu1 %v2791_v32  ;;  %v5085_v32 = vld [vmem:[#allocation3 + $0x210] sm:$0xff]  }
 0xde4   :  { %4776 = vmatprep.subr.bf16.mxu1 %v5038_v49  ;;  %v5087_v8 = vld [vmem:[#allocation3 + $0x290] sm:$0xff]   ;;  %v5090_v49 = vld [vmem:[#allocation3 + $0x2c8] sm:$0xff]  }
 0xde5   :  { %4755 = vmatpush3.bf16.msra.mxu0 %v5037_v62  ;;  %v5089_v62 = vld [vmem:[#allocation3 + $0x208] sm:$0xff]  }
 0xde6   :  { %4756 = vmatprep.subr.bf16.mxu0 %v5040_v27  ;;  %v5092_v27 = vld [vmem:[#allocation3 + $0x240] sm:$0xff]  }
 0xde7   :  { %4777 = vmatpush3.bf16.msra.mxu1 %v5039_v20  ;;  %v5091_v20 = vld [vmem:[#allocation3 + $0x288] sm:$0xff]  }
 0xde8   :  { %4778 = vmatprep.subr.bf16.mxu1 %v5042_v30  ;;  %v5094_v30 = vld [vmem:[#allocation3 + $0x2c0] sm:$0xff]  }
 0xde9   :  { %4757 = vmatpush3.bf16.msra.mxu0 %v5041_v57  ;;  %v5093_v57 = vld [vmem:[#allocation3 + $0x200] sm:$0xff]  }
 0xdea   :  { %4758 = vmatprep.subr.bf16.mxu0 %v5044_v26  ;;  %v5095_v26 = vld [vmem:[#allocation3 + $0x280] sm:$0xff]  }
 0xdeb   :  { %4779 = vmatpush3.bf16.msra.mxu1 %v5043_v23  ;;  %v2792_v23 = vpack.c.bf16 %v6616_v56, %v6616_v56  ;;  %v5099_v56 = vld [vmem:[#allocation3 + $0x3b8] sm:$0xff]  }
 0xdec   :  { %4780 = vmatprep.subr.bf16.mxu1 %v5046_v46  ;;  %v5096_v46 = vld [vmem:[#allocation3 + $0x378] sm:$0xff]  }
 0xded   :  { %4759 = vmatpush3.bf16.msra.mxu0 %v5045_v39  ;;  %v2797_v39 = vpack.c.bf16 %v6652_v10, %v6652_v10  ;;  %v5101_v10 = vld [vmem:[#allocation3 + $0x330] sm:$0xff]  }
 0xdee   :  { %4760 = vmatprep.subr.bf16.mxu0 %v5048_v34  ;;  %v5097_v34 = vld [vmem:[#allocation3 + $0x338] sm:$0xff]  }
 0xdef   :  { %4781 = vmatpush3.bf16.msra.mxu1 %v5047_v21  ;;  %v2794_v21 = vpack.c.bf16 %v6636_v24, %v6636_v24  ;;  %v5103_v24 = vld [vmem:[#allocation3 + $0x3b0] sm:$0xff]  }
 0xdf0   :  { %4782 = vmatprep.subr.bf16.mxu1 %v5050_v25  ;;  %v5098_v25 = vld [vmem:[#allocation3 + $0x3f8] sm:$0xff]  }
 0xdf1   :  { %4761 = vmatpush3.bf16.msra.mxu0 %v5049_v45  ;;  %v2799_v45 = vpack.c.bf16 %v6660_v40, %v6660_v40  ;;  %v5105_v40 = vld [vmem:[#allocation3 + $0x328] sm:$0xff]  }
 0xdf2   :  { %4762 = vmatprep.subr.bf16.mxu0 %v5052_v36  ;;  %v5102_v36 = vld [vmem:[#allocation3 + $0x3f0] sm:$0xff]  }
 0xdf3   :  { %4783 = vmatpush3.bf16.msra.mxu1 %v5051_v31  ;;  %v5100_v31 = vld [vmem:[#allocation3 + $0x370] sm:$0xff]  }
 0xdf4   :  { %4784 = vmatprep.subr.bf16.mxu1 %v5054_v35  ;;  %v5106_v35 = vld [vmem:[#allocation3 + $0x3e8] sm:$0xff]  }
 0xdf5   :  { %4763 = vmatpush3.bf16.msra.mxu0 %v5053_v55  ;;  %v5104_v55 = vld [vmem:[#allocation3 + $0x368] sm:$0xff]  }
 0xdf6   :  { %4764 = vmatprep.subr.bf16.mxu0 %v5056_v48  ;;  %v5108_v48 = vld [vmem:[#allocation3 + $0x360] sm:$0xff]  }
 0xdf7   :  { %4785 = vmatpush3.bf16.msra.mxu1 %v5055_v58  ;;  %v5107_v58 = vld [vmem:[#allocation3 + $0x3a8] sm:$0xff]  }
 0xdf8   :  { %4786 = vmatprep.subr.bf16.mxu1 %v5058_v37  ;;  %v5110_v37 = vld [vmem:[#allocation3 + $0x3e0] sm:$0xff]  }
 0xdf9   :  { %4765 = vmatpush3.bf16.msra.mxu0 %v5057_v5  ;;  %v5109_v5 = vld [vmem:[#allocation3 + $0x320] sm:$0xff]  }
 0xdfa   :  { %4766 = vmatprep.subr.bf16.mxu0 %v5060_v59  ;;  %v5112_v59 = vld [vmem:[#allocation3 + $0x358] sm:$0xff]  }
 0xdfb   :  { %4787 = vmatpush3.bf16.msra.mxu1 %v5059_v50  ;;  %v5111_v50 = vld [vmem:[#allocation3 + $0x3a0] sm:$0xff]  }
 0xdfc   :  { %4788 = vmatprep.subr.bf16.mxu1 %v5062_v53  ;;  %v5114_v53 = vld [vmem:[#allocation3 + $0x3d8] sm:$0xff]  }
 0xdfd   :  { %4767 = vmatpush3.bf16.msra.mxu0 %v5061_v41  ;;  %v5113_v41 = vld [vmem:[#allocation3 + $0x318] sm:$0xff]  }
 0xdfe   :  { %4796 = vmatprep.subr.bf16.mxu0 %v5064_v0  ;;  %v5118_v0 = vld [vmem:[#allocation3 + $0x3d0] sm:$0xff]  }
 0xdff   :  { %4789 = vmatpush3.bf16.msra.mxu1 %v5063_v61  ;;  %v5116_v61 = vld [vmem:[#allocation3 + $0x350] sm:$0xff]  }
 0xe00   :  { %4072 = vmatmul.mubr.bf16.vlgmr.msra.gmra.mxu0 %v2788_v47  ;;  %4818 = vmatprep.subr.bf16.mxu1 %v5066_v29  ;;  %v5115_v47 = vld [vmem:[#allocation3 + $0x398] sm:$0xff]   ;;  %v5122_v29 = vld [vmem:[#allocation3 + $0x3c8] sm:$0xff]  }
 0xe01   :  { %4797 = vmatpush3.bf16.msra.mxu0 %v5065_v2  ;;  %4151 = vmatprep.mubr.bf16.mxu0 %v2793_v63  ;;  %v5117_v63 = vld [vmem:[#allocation3 + $0x310] sm:$0xff]   ;;  %v5120_v2 = vld [vmem:[#allocation3 + $0x348] sm:$0xff]  }
 0xe02   :  { %4112 = vmatmul.mubr.bf16.vlgmr.msra.gmra.mxu1 %v2790_v1  ;;  %4798 = vmatprep.subr.bf16.mxu0 %v5068_v4  ;;  %v5119_v1 = vld [vmem:[#allocation3 + $0x390] sm:$0xff]   ;;  %v5124_v4 = vld [vmem:[#allocation3 + $0x340] sm:$0xff]  }
 0xe03   :  { %4819 = vmatpush3.bf16.msra.mxu1 %v5067_v9  ;;  %4191 = vmatprep.mubr.bf16.mxu1 %v2795_v3  ;;  %v5121_v3 = vld [vmem:[#allocation3 + $0x308] sm:$0xff]  }
 0xe04   :  { %4820 = vmatprep.subr.bf16.mxu1 %v5070_v7  ;;  %v5123_v9 = vld [vmem:[#allocation3 + $0x388] sm:$0xff]   ;;  %v5126_v7 = vld [vmem:[#allocation3 + $0x3c0] sm:$0xff]  }
 0xe05   :  { %4799 = vmatpush3.bf16.msra.mxu0 %v5069_v22  ;;  %v5125_v22 = vld [vmem:[#allocation3 + $0x300] sm:$0xff]  }
 0xe06   :  { %4800 = vmatprep.subr.bf16.mxu0 %v5072_v42  ;;  %v5127_v42 = vld [vmem:[#allocation3 + $0x380] sm:$0xff]  }
 0xe07   :  { %4821 = vmatpush3.bf16.msra.mxu1 %v5071_v33  ;;  %v2796_v33 = vpack.c.bf16 %v6644_v6, %v6644_v6  ;;  %v5132_v6 = vld [vmem:[#allocation3 + $0x468] sm:$0xff]  }
 0xe08   :  { %4822 = vmatprep.subr.bf16.mxu1 %v5074_v14  ;;  %v5128_v14 = vld [vmem:[#allocation3 + $0x478] sm:$0xff]  }
 0xe09   :  { %4801 = vmatpush3.bf16.msra.mxu0 %v5073_v13  ;;  %v2801_v13 = vpack.c.bf16 %v6663_v43, %v6663_v43  ;;  %v5134_v43 = vld [vmem:[#allocation3 + $0x460] sm:$0xff]  }
 0xe0a   :  { %4802 = vmatprep.subr.bf16.mxu0 %v5076_v52  ;;  %v5129_v52 = vld [vmem:[#allocation3 + $0x438] sm:$0xff]  }
 0xe0b   :  { %4823 = vmatpush3.bf16.msra.mxu1 %v5075_v54  ;;  %v2798_v54 = vpack.c.bf16 %v6648_v51, %v6648_v51  ;;  %v5137_v51 = vld [vmem:[#allocation3 + $0x418] sm:$0xff]  }
 0xe0c   :  { %4824 = vmatprep.subr.bf16.mxu1 %v5078_v11  ;;  %v5131_v11 = vld [vmem:[#allocation3 + $0x430] sm:$0xff]  }
 0xe0d   :  { %4803 = vmatpush3.bf16.msra.mxu0 %v5077_v60  ;;  %v5130_v60 = vld [vmem:[#allocation3 + $0x470] sm:$0xff]  }
 0xe0e   :  { %4804 = vmatprep.subr.bf16.mxu0 %v5080_v16  ;;  %v5135_v16 = vld [vmem:[#allocation3 + $0x420] sm:$0xff]  }
 0xe0f   :  { %4825 = vmatpush3.bf16.msra.mxu1 %v5079_v15  ;;  %v5133_v15 = vld [vmem:[#allocation3 + $0x428] sm:$0xff]  }
 0xe10   :  { %4826 = vmatprep.subr.bf16.mxu1 %v5082_v18  ;;  %v5138_v18 = vld [vmem:[#allocation3 + $0x450] sm:$0xff]  }
 0xe11   :  { %4805 = vmatpush3.bf16.msra.mxu0 %v5081_v17  ;;  %v5136_v17 = vld [vmem:[#allocation3 + $0x458] sm:$0xff]  }
 0xe12   :  { %4806 = vmatprep.subr.bf16.mxu0 %v5084_v19  ;;  %v5140_v19 = vld [vmem:[#allocation3 + $0x448] sm:$0xff]  }
 0xe13   :  { %4827 = vmatpush3.bf16.msra.mxu1 %v5083_v38  ;;  %v5139_v38 = vld [vmem:[#allocation3 + $0x410] sm:$0xff]  }
 0xe14   :  { %4828 = vmatprep.subr.bf16.mxu1 %v5086_v28  ;;  %v5142_v28 = vld [vmem:[#allocation3 + $0x440] sm:$0xff]  }
 0xe15   :  { %4807 = vmatpush3.bf16.msra.mxu0 %v5085_v32  ;;  %v5141_v32 = vld [vmem:[#allocation3 + $0x408] sm:$0xff]  }
 0xe16   :  { %4808 = vmatprep.subr.bf16.mxu0 %v5088_v12  ;;  %v2800_v12 = vpack.c.bf16 %v6667_v44, %v6667_v44 }
 0xe17   :  { %4829 = vmatpush3.bf16.msra.mxu1 %v5087_v8  ;;  %v5143_v8 = vld [vmem:[#allocation3 + $0x400] sm:$0xff]  }
 0xe18   :  { %4830 = vmatprep.subr.bf16.mxu1 %v5090_v49  ;;  %v4561_v49 = vld [vmem:[%s6748_s25] ss:$0 sm:$0xff] }
 0xe19   :  { %4809 = vmatpush3.bf16.msra.mxu0 %v5089_v62 }
 0xe1a   :  { %4810 = vmatprep.subr.bf16.mxu0 %v5092_v27 }
 0xe1b   :  { %4831 = vmatpush3.bf16.msra.mxu1 %v5091_v20 }
 0xe1c   :  { %4832 = vmatprep.subr.bf16.mxu1 %v5094_v30 }
 0xe1d   :  { %4811 = vmatpush3.bf16.msra.mxu0 %v5093_v57 }
 0xe1e   :  { %4840 = vmatprep.subr.bf16.mxu0 %v5096_v46 }
 0xe1f   :  { %4833 = vmatpush3.bf16.msra.mxu1 %v5095_v26 }
 0xe20   :  { %4152 = vmatmul.mubr.bf16.vlgmr.msra.gmra.mxu0 %v2792_v23  ;;  %4862 = vmatprep.subr.bf16.mxu1 %v5098_v25 }
 0xe21   :  { %4841 = vmatpush3.bf16.msra.mxu0 %v5097_v34  ;;  %4231 = vmatprep.mubr.bf16.mxu0 %v2797_v39 }
 0xe22   :  { %4192 = vmatmul.mubr.bf16.vlgmr.msra.gmra.mxu1 %v2794_v21  ;;  %4842 = vmatprep.subr.bf16.mxu0 %v5100_v31 }
 0xe23   :  { %4863 = vmatpush3.bf16.msra.mxu1 %v5099_v56  ;;  %4271 = vmatprep.mubr.bf16.mxu1 %v2799_v45 }
 0xe24   :  { %4864 = vmatprep.subr.bf16.mxu1 %v5102_v36 }
 0xe25   :  { %4843 = vmatpush3.bf16.msra.mxu0 %v5101_v10 }
 0xe26   :  { %4844 = vmatprep.subr.bf16.mxu0 %v5104_v55 }
 0xe27   :  { %4865 = vmatpush3.bf16.msra.mxu1 %v5103_v24 }
 0xe28   :  { %4866 = vmatprep.subr.bf16.mxu1 %v5106_v35 }
 0xe29   :  { %4845 = vmatpush3.bf16.msra.mxu0 %v5105_v40 }
 0xe2a   :  { %4846 = vmatprep.subr.bf16.mxu0 %v5108_v48 }
 0xe2b   :  { %4867 = vmatpush3.bf16.msra.mxu1 %v5107_v58 }
 0xe2c   :  { %4868 = vmatprep.subr.bf16.mxu1 %v5110_v37 }
 0xe2d   :  { %4847 = vmatpush3.bf16.msra.mxu0 %v5109_v5 }
 0xe2e   :  { %4848 = vmatprep.subr.bf16.mxu0 %v5112_v59 }
 0xe2f   :  { %4869 = vmatpush3.bf16.msra.mxu1 %v5111_v50 }
 0xe30   :  { %4870 = vmatprep.subr.bf16.mxu1 %v5114_v53 }
 0xe31   :  { %4849 = vmatpush3.bf16.msra.mxu0 %v5113_v41 }
 0xe32   :  { %4850 = vmatprep.subr.bf16.mxu0 %v5116_v61 }
 0xe33   :  { %4871 = vmatpush3.bf16.msra.mxu1 %v5115_v47 }
 0xe34   :  { %4872 = vmatprep.subr.bf16.mxu1 %v5118_v0 }
 0xe35   :  { %4851 = vmatpush3.bf16.msra.mxu0 %v5117_v63 }
 0xe36   :  { %4852 = vmatprep.subr.bf16.mxu0 %v5120_v2 }
 0xe37   :  { %4873 = vmatpush3.bf16.msra.mxu1 %v5119_v1 }
 0xe38   :  { %4874 = vmatprep.subr.bf16.mxu1 %v5122_v29 }
 0xe39   :  { %4853 = vmatpush3.bf16.msra.mxu0 %v5121_v3 }
 0xe3a   :  { %4854 = vmatprep.subr.bf16.mxu0 %v5124_v4 }
 0xe3b   :  { %4875 = vmatpush3.bf16.msra.mxu1 %v5123_v9 }
 0xe3c   :  { %4876 = vmatprep.subr.bf16.mxu1 %v5126_v7 }
 0xe3d   :  { %4855 = vmatpush3.bf16.msra.mxu0 %v5125_v22 }
 0xe3e   :  { %4884 = vmatprep.subr.bf16.mxu0 %v5128_v14 }
 0xe3f   :  { %4877 = vmatpush3.bf16.msra.mxu1 %v5127_v42 }
 0xe40   :  { %4232 = vmatmul.mubr.bf16.vlgmr.msra.gmra.mxu0 %v2796_v33 }
 0xe41   :  { %4885 = vmatpush3.bf16.msra.mxu0 %v5129_v52  ;;  %4311 = vmatprep.mubr.bf16.mxu0 %v2801_v13 }
 0xe42   :  { %4272 = vmatmul.mubr.bf16.vlgmr.msra.gmra.mxu1 %v2798_v54  ;;  %4886 = vmatprep.subr.bf16.mxu0 %v5130_v60 }
 0xe45   :  { %4887 = vmatpush3.bf16.msra.mxu0 %v5131_v11 }
 0xe46   :  { %4888 = vmatprep.subr.bf16.mxu0 %v5132_v6 }
 0xe49   :  { %4889 = vmatpush3.bf16.msra.mxu0 %v5133_v15 }
 0xe4a   :  { %4890 = vmatprep.subr.bf16.mxu0 %v5134_v43 }
 0xe4d   :  { %4891 = vmatpush3.bf16.msra.mxu0 %v5135_v16 }
 0xe4e   :  { %4892 = vmatprep.subr.bf16.mxu0 %v5136_v17  ;;  %v4706_v17 = vld [vmem:[%s6748_s25 + $0x1] ss:$0 sm:$0xff] }
 0xe51   :  { %4893 = vmatpush3.bf16.msra.mxu0 %v5137_v51 }
 0xe52   :  { %4894 = vmatprep.subr.bf16.mxu0 %v5138_v18 }
 0xe55   :  { %4895 = vmatpush3.bf16.msra.mxu0 %v5139_v38 }
 0xe56   :  { %4896 = vmatprep.subr.bf16.mxu0 %v5140_v19  ;;  %v4329_v19 = vstv %s6657_s20 }
 0xe59   :  { %4897 = vmatpush3.bf16.msra.mxu0 %v5141_v32 }
 0xe5a   :  { %4898 = vmatprep.subr.bf16.mxu0 %v5142_v28 }
 0xe5d   :  { %4899 = vmatpush3.bf16.msra.mxu0 %v5143_v8 }
 0xe60   :  { %4312 = vmatmul.mubr.bf16.vlgmr.msra.gmra.mxu0 %v2800_v12 }
 0xea0   :  { %v4724_v62 = vpop.f32.mrf.mxu0 }
 0xea2   :  { %v4725_v20 = vpop.f32.mrf.mxu0  ;;  %v4746_v27 = vpop.f32.mrf.mxu1 }
 0xea3   :  { %v4726_v57 = vadd.f32 %v4725_v20, %v4724_v62 }
 0xea4   :  { %v4727_v30 = vpop.f32.mrf.mxu0  ;;  %v4747_v23 = vpop.f32.mrf.mxu1 }
 0xea5   :  { %v3994_v26 = vadd.f32 %v4726_v57, %v4561_v49  ;;  %v4748_v39 = vadd.f32 %v4747_v23, %v4746_v27 }
 0xea6   :  { %v4728_v46 = vpop.f32.mrf.mxu0  ;;  %v4749_v21 = vpop.f32.mrf.mxu1 }
 0xea7   :  { %v4034_v34 = vadd.f32 %v4748_v39, %v3994_v26 }
 0xea8   :  { %v4750_v45 = vpop.f32.mrf.mxu1 }
 0xec0   :  { %v4768_v25 = vpop.f32.mrf.mxu0 }
 0xec2   :  { %v4769_v44 = vpop.f32.mrf.mxu0  ;;  %v4790_v56 = vpop.f32.mrf.mxu1 }
 0xec3   :  { %v4770_v31 = vadd.f32 %v4769_v44, %v4768_v25 }
 0xec4   :  { %v4771_v10 = vpop.f32.mrf.mxu0  ;;  %v4791_v36 = vpop.f32.mrf.mxu1 }
 0xec5   :  { %v4074_v24 = vadd.f32 %v4770_v31, %v4034_v34  ;;  %v4792_v55 = vadd.f32 %v4791_v36, %v4790_v56 }
 0xec6   :  { %v4772_v40 = vpop.f32.mrf.mxu0  ;;  %v4793_v35 = vpop.f32.mrf.mxu1 }
 0xec7   :  { %v4114_v58 = vadd.f32 %v4792_v55, %v4074_v24 }
 0xec8   :  { %v4794_v48 = vpop.f32.mrf.mxu1 }
 0xee0   :  { %v4812_v5 = vpop.f32.mrf.mxu0 }
 0xee2   :  { %v4813_v37 = vpop.f32.mrf.mxu0  ;;  %v4834_v50 = vpop.f32.mrf.mxu1 }
 0xee3   :  { %v4814_v22 = vadd.f32 %v4813_v37, %v4812_v5 }
 0xee4   :  { %v4815_v59 = vpop.f32.mrf.mxu0  ;;  %v4835_v41 = vpop.f32.mrf.mxu1 }
 0xee5   :  { %v4154_v7 = vadd.f32 %v4814_v22, %v4114_v58  ;;  %v4836_v33 = vadd.f32 %v4835_v41, %v4834_v50 }
 0xee6   :  { %v4816_v53 = vpop.f32.mrf.mxu0  ;;  %v4837_v47 = vpop.f32.mrf.mxu1 }
 0xee7   :  { %v4194_v13 = vadd.f32 %v4836_v33, %v4154_v7 }
 0xee8   :  { %v4838_v61 = vpop.f32.mrf.mxu1 }
 0xf00   :  { %v4856_v63 = vpop.f32.mrf.mxu0 }
 0xf02   :  { %v4857_v0 = vpop.f32.mrf.mxu0  ;;  %v4878_v1 = vpop.f32.mrf.mxu1 }
 0xf03   :  { %v4858_v42 = vadd.f32 %v4857_v0, %v4856_v63 }
 0xf04   :  { %v4859_v2 = vpop.f32.mrf.mxu0  ;;  %v4879_v3 = vpop.f32.mrf.mxu1 }
 0xf05   :  { %v4234_v14 = vadd.f32 %v4858_v42, %v4194_v13  ;;  %v4880_v54 = vadd.f32 %v4879_v3, %v4878_v1 }
 0xf06   :  { %v4860_v29 = vpop.f32.mrf.mxu0  ;;  %v4881_v9 = vpop.f32.mrf.mxu1 }
 0xf07   :  { %v4274_v11 = vadd.f32 %v4880_v54, %v4234_v14 }
 0xf08   :  { %v4882_v4 = vpop.f32.mrf.mxu1 }
 0xf20   :  { %v4900_v52 = vpop.f32.mrf.mxu0 }
 0xf22   :  { %v4901_v60 = vpop.f32.mrf.mxu0 }
 0xf23   :  { %v4902_v6 = vadd.f32 %v4901_v60, %v4900_v52 }
 0xf24   :  { %v4903_v15 = vpop.f32.mrf.mxu0 }
 0xf25   :  { %v4314_v43 = vadd.f32 %v4902_v6, %v4274_v11 }
 0xf26   :  { %v4904_v16 = vpop.f32.mrf.mxu0 }
 0xf27   :  { %v4319_v51 = vmax.f32 %v4314_v43, 0.0 }
 0xf29   :  { %v4325_v18 = vmul.f32 %v4706_v17, %v4319_v51 }
 0xf2b   :  { %v4326_v38 = vsel %vm907_vm0, %v4325_v18, 0.0 }
 0xf2c   :  { %4327 = vadd.xlane.f32.xlu0 %v4326_v38 }
 0xfb5   :  { %v4328_v32 = vpop.xlane.xlu0 %4327 }
 0xfb6   :  { %v4330_v28 = vadd.f32 %v4329_v19, %v4328_v32 }
 0xfb8   :  { %4332 = vst.msk [vmem:[%s6749_s22] sm:$0x3] %vm4331_vm1, %v4330_v28 }
 0xfb9   :  { %4337 = vsyncpa [#allocation6], 1 }
 0xfba   :  { %4338 = vsyncmov [#allocation4] }
 0xfbd   :  { %s4339_s27 = vpop.sfrf %4338 }
 0xfbe   :  { %p4707_p5 = scmp.ne.s32.totalorder %s4339_s27, 0 }
 0xfc0   :  { %4343 = shalt.err (%p4707_p5)  }

</bundles_post_ra>
